<compile_context>
chip_gen: v7x
topology: tpu7x:2x2x1
jax: 0.10.0
libtpu: 0.0.40
codegen_flags: <defaults>
</compile_context>

<pallas_src>
import functools

import jax
import jax.numpy as jnp
from jax.experimental import pallas as pl
from jax.experimental.pallas import tpu as pltpu


def get_mgrid(sidelen, dim=2, start=-1.0, end=1.0):
    """JAX port of the torch get_mgrid: flattened grid of coords in [-1, 1]."""
    axes = tuple(dim * [jnp.linspace(start, end, sidelen, dtype=jnp.float32)])
    mgrid = jnp.stack(jnp.meshgrid(*axes, indexing="ij"), axis=-1)
    return mgrid.reshape(-1, dim)


def _mlp_kernel(x_ref,
                w1_ref, b1_ref,
                w2_ref, b2_ref,
                w3_ref, b3_ref,
                w4_ref, b4_ref,
                w5_ref, b5_ref,
                o_ref, *, compute_dtype):
    """Whole 5-layer MLP for one tile of rows, entirely in VMEM."""
    x = x_ref[...]            # (tile_n, 2)  f32
    w1 = w1_ref[...]          # (2, 256)     f32

    # Layer 1 (K=2): two VPU broadcast-FMAs instead of a wasted MXU pass.
    h = x[:, 0:1] * w1[0:1, :] + x[:, 1:2] * w1[1:2, :] + b1_ref[...]
    h = jnp.maximum(h, 0.0)

    # Layers 2-4: 256x256 matmuls on the MXU, f32 accumulation.
    for w_ref, b_ref in ((w2_ref, b2_ref), (w3_ref, b3_ref), (w4_ref, b4_ref)):
        h = jnp.dot(h.astype(compute_dtype), w_ref[...],
                    preferred_element_type=jnp.float32) + b_ref[...]
        h = jnp.maximum(h, 0.0)

    # Layer 5: lane-dense padded output (128 lanes; first 3 are the real outs).
    out = jnp.dot(h.astype(compute_dtype), w5_ref[...],
                  preferred_element_type=jnp.float32) + b5_ref[...]
    o_ref[...] = out.astype(o_ref.dtype)


def relu_network_forward(coords, params, *, tile_n=512, use_bf16=False):
    """coords: (N, 2) f32; params: list of (W, b) with W (in, out), b (1, out).

    tile_n: rows per grid step. 512-2048 is the sweet spot; larger tiles need
    more VMEM (budgeted below via vmem_limit_bytes; fine even on v7x's 64 MiB).
    use_bf16: cast weights (and the dot operand) of the 256-wide matmuls to
    bf16 for the bf16 MXU path; accumulation and all elementwise work stay f32.
    """
    n, in_dim = coords.shape
    assert in_dim == 2
    hidden = params[0][0].shape[1]            # 256
    out_dim = params[-1][0].shape[1]          # 3

    # Pad rows to a multiple of tile_n (tail rows are sliced off afterwards).
    n_pad = pl.cdiv(n, tile_n) * tile_n
    coords_p = coords if n_pad == n else jnp.pad(coords, ((0, n_pad - n), (0, 0)))

    # Lane-dense padded last layer: (256, 3) -> (256, 128), zeros elsewhere.
    OUT_PAD = 128
    (w1, b1), (w2, b2), (w3, b3), (w4, b4), (w5, b5) = params
    w5p = jnp.zeros((hidden, OUT_PAD), jnp.float32).at[:, :out_dim].set(w5)
    b5p = jnp.zeros((1, OUT_PAD), jnp.float32).at[:, :out_dim].set(b5)

    compute_dtype = jnp.bfloat16 if use_bf16 else jnp.float32
    # Only the MXU weights get cast; layer-1 weights and all biases stay f32.
    w2c, w3c, w4c, w5c = (w.astype(compute_dtype) for w in (w2, w3, w4, w5p))

    flat = [coords_p, w1, b1, w2c, b2, w3c, b3, w4c, b4, w5c, b5p]

    def full_spec(arr):
        # Grid-invariant operand: whole array resident, constant block index.
        return pl.BlockSpec(arr.shape, lambda i: (0, 0))

    in_specs = [pl.BlockSpec((tile_n, in_dim), lambda i: (i, 0))]
    in_specs += [full_spec(a) for a in flat[1:]]
    out_spec = pl.BlockSpec((tile_n, OUT_PAD), lambda i: (i, 0))

    flops = 2 * n_pad * (in_dim * hidden + 3 * hidden * hidden + hidden * OUT_PAD)
    bytes_accessed = (coords_p.size * 4 + n_pad * OUT_PAD * 4
                      + sum(int(a.size) * a.dtype.itemsize for a in flat[1:]))

    out = pl.pallas_call(
        functools.partial(_mlp_kernel, compute_dtype=compute_dtype),
        out_shape=jax.ShapeDtypeStruct((n_pad, OUT_PAD), jnp.float32),
        grid_spec=pltpu.PrefetchScalarGridSpec(
            num_scalar_prefetch=0,
            grid=(n_pad // tile_n,),
            in_specs=in_specs,
            out_specs=out_spec,
        ),
        compiler_params=pltpu.CompilerParams(
            dimension_semantics=("parallel",),       # megacore / 2-TC sharding
            vmem_limit_bytes=32 * 1024 * 1024,       # explicit; safe on v5e..v7x
        ),
        cost_estimate=pl.CostEstimate(
            flops=flops, transcendentals=0, bytes_accessed=bytes_accessed),
    )(*flat)

    return out[:n, :out_dim]


def init_params(key):
    """Deterministic init matching the layer shapes of ReLuNetwork.__init__."""
    dims = [(2, 256), (256, 256), (256, 256), (256, 256), (256, 3)]
    params = []
    for (fan_in, fan_out) in dims:
        key, kw, kb = jax.random.split(key, 3)
        bound = 1.0 / jnp.sqrt(fan_in)
        w = jax.random.uniform(kw, (fan_in, fan_out), jnp.float32, -bound, bound)
        b = jax.random.uniform(kb, (1, fan_out), jnp.float32, -bound, bound)
        params.append((w, b))
    return params


def reference_forward(coords, params):
    h = coords
    for i, (w, b) in enumerate(params):
        h = h @ w + b
        if i < len(params) - 1:
            h = jnp.maximum(h, 0.0)
    return h


if __name__ == "__main__":
    key = jax.random.PRNGKey(0)
    params = init_params(key)

    # Small shape consistent with the module; sidelength=24 -> coords (576, 2),
    # which also exercises the row-padding path (576 -> 1024 with tile_n=512).
    sidelength = 24
    coords = get_mgrid(sidelength, 2)

    ref = reference_forward(coords, params)

    # Exact f32 path.
    out = jax.block_until_ready(
        relu_network_forward(coords, params, tile_n=512, use_bf16=False))
    assert out.shape == (sidelength * sidelength, 3)
    assert jnp.allclose(out, ref, atol=1e-4, rtol=1e-4), "f32 mismatch vs reference"

    # bf16-MXU fast path (looser tolerance vs the f32 reference).
    out_bf16 = jax.block_until_ready(
        relu_network_forward(coords, params, tile_n=512, use_bf16=True))
    assert jnp.allclose(out_bf16, ref, atol=5e-2, rtol=5e-2), "bf16 mismatch vs reference"

    print("KERNEL_OK")
</pallas_src>

<mosaic_0001>
module attributes {stable_mosaic.version = 11 : i64} {
  func.func @_mlp_kernel(%arg0: i32, %arg1: memref<512x2xf32, #tpu.memory_space<vmem>>, %arg2: memref<2x256xf32, #tpu.memory_space<vmem>>, %arg3: memref<1x256xf32, #tpu.memory_space<vmem>>, %arg4: memref<256x256xf32, #tpu.memory_space<vmem>>, %arg5: memref<1x256xf32, #tpu.memory_space<vmem>>, %arg6: memref<256x256xf32, #tpu.memory_space<vmem>>, %arg7: memref<1x256xf32, #tpu.memory_space<vmem>>, %arg8: memref<256x256xf32, #tpu.memory_space<vmem>>, %arg9: memref<1x256xf32, #tpu.memory_space<vmem>>, %arg10: memref<256x128xf32, #tpu.memory_space<vmem>>, %arg11: memref<1x128xf32, #tpu.memory_space<vmem>>, %arg12: memref<512x128xf32, #tpu.memory_space<vmem>>) attributes {dimension_semantics = [#tpu.dimension_semantics<parallel>], iteration_bounds = array<i64: 2>, scalar_prefetch = 0 : i64, scratch_operands = 0 : i64, tpu.core_type = #tpu.core_type<tc>, window_params = [{transform_indices = @transform_0, window_bounds = array<i64: 512, 2>}, {pipeline_mode = #tpu.pipeline_mode<synchronous>, transform_indices = @transform_1, window_bounds = array<i64: 2, 256>}, {pipeline_mode = #tpu.pipeline_mode<synchronous>, transform_indices = @transform_2, window_bounds = array<i64: 1, 256>}, {pipeline_mode = #tpu.pipeline_mode<synchronous>, transform_indices = @transform_3, window_bounds = array<i64: 256, 256>}, {pipeline_mode = #tpu.pipeline_mode<synchronous>, transform_indices = @transform_4, window_bounds = array<i64: 1, 256>}, {pipeline_mode = #tpu.pipeline_mode<synchronous>, transform_indices = @transform_5, window_bounds = array<i64: 256, 256>}, {pipeline_mode = #tpu.pipeline_mode<synchronous>, transform_indices = @transform_6, window_bounds = array<i64: 1, 256>}, {pipeline_mode = #tpu.pipeline_mode<synchronous>, transform_indices = @transform_7, window_bounds = array<i64: 256, 256>}, {pipeline_mode = #tpu.pipeline_mode<synchronous>, transform_indices = @transform_8, window_bounds = array<i64: 1, 256>}, {pipeline_mode = #tpu.pipeline_mode<synchronous>, transform_indices = @transform_9, window_bounds = array<i64: 256, 128>}, {pipeline_mode = #tpu.pipeline_mode<synchronous>, transform_indices = @transform_10, window_bounds = array<i64: 1, 128>}, {transform_indices = @transform_11, window_bounds = array<i64: 512, 128>}]} {
    %c0 = arith.constant 0 : index
    %c0_0 = arith.constant 0 : index
    %0 = vector.load %arg1[%c0, %c0_0] : memref<512x2xf32, #tpu.memory_space<vmem>>, vector<512x2xf32>
    %c0_1 = arith.constant 0 : index
    %c0_2 = arith.constant 0 : index
    %1 = vector.load %arg2[%c0_1, %c0_2] : memref<2x256xf32, #tpu.memory_space<vmem>>, vector<2x256xf32>
    %2 = vector.extract_strided_slice %0 {offsets = [0, 0], sizes = [512, 1], strides = [1, 1]} : vector<512x2xf32> to vector<512x1xf32>
    %3 = vector.extract_strided_slice %1 {offsets = [0, 0], sizes = [1, 256], strides = [1, 1]} : vector<2x256xf32> to vector<1x256xf32>
    %4 = vector.broadcast %2 : vector<512x1xf32> to vector<512x256xf32>
    %5 = vector.broadcast %3 : vector<1x256xf32> to vector<512x256xf32>
    %6 = arith.mulf %4, %5 : vector<512x256xf32>
    %7 = vector.extract_strided_slice %0 {offsets = [0, 1], sizes = [512, 1], strides = [1, 1]} : vector<512x2xf32> to vector<512x1xf32>
    %8 = vector.extract_strided_slice %1 {offsets = [1, 0], sizes = [1, 256], strides = [1, 1]} : vector<2x256xf32> to vector<1x256xf32>
    %9 = vector.broadcast %7 : vector<512x1xf32> to vector<512x256xf32>
    %10 = vector.broadcast %8 : vector<1x256xf32> to vector<512x256xf32>
    %11 = arith.mulf %9, %10 : vector<512x256xf32>
    %12 = arith.addf %6, %11 : vector<512x256xf32>
    %c0_3 = arith.constant 0 : index
    %c0_4 = arith.constant 0 : index
    %13 = vector.load %arg3[%c0_3, %c0_4] : memref<1x256xf32, #tpu.memory_space<vmem>>, vector<1x256xf32>
    %14 = vector.broadcast %13 : vector<1x256xf32> to vector<512x256xf32>
    %15 = arith.addf %12, %14 : vector<512x256xf32>
    %cst = arith.constant 0.000000e+00 : f32
    %16 = vector.broadcast %cst : f32 to vector<512x256xf32>
    %17 = arith.maximumf %15, %16 : vector<512x256xf32>
    %c0_5 = arith.constant 0 : index
    %c0_6 = arith.constant 0 : index
    %18 = vector.load %arg4[%c0_5, %c0_6] : memref<256x256xf32, #tpu.memory_space<vmem>>, vector<256x256xf32>
    %cst_7 = arith.constant dense<0.000000e+00> : vector<512x256xf32>
    %19 = tpu.matmul %17, %18, %cst_7 {dimension_numbers = #tpu.dot_dimension_numbers<[1], [0], [0], [1], [0, 0, 1, 1], [], []>} : vector<512x256xf32>, vector<256x256xf32>, vector<512x256xf32> -> vector<512x256xf32>
    %c0_8 = arith.constant 0 : index
    %c0_9 = arith.constant 0 : index
    %20 = vector.load %arg5[%c0_8, %c0_9] : memref<1x256xf32, #tpu.memory_space<vmem>>, vector<1x256xf32>
    %21 = vector.broadcast %20 : vector<1x256xf32> to vector<512x256xf32>
    %22 = arith.addf %19, %21 : vector<512x256xf32>
    %cst_10 = arith.constant 0.000000e+00 : f32
    %23 = vector.broadcast %cst_10 : f32 to vector<512x256xf32>
    %24 = arith.maximumf %22, %23 : vector<512x256xf32>
    %c0_11 = arith.constant 0 : index
    %c0_12 = arith.constant 0 : index
    %25 = vector.load %arg6[%c0_11, %c0_12] : memref<256x256xf32, #tpu.memory_space<vmem>>, vector<256x256xf32>
    %cst_13 = arith.constant dense<0.000000e+00> : vector<512x256xf32>
    %26 = tpu.matmul %24, %25, %cst_13 {dimension_numbers = #tpu.dot_dimension_numbers<[1], [0], [0], [1], [0, 0, 1, 1], [], []>} : vector<512x256xf32>, vector<256x256xf32>, vector<512x256xf32> -> vector<512x256xf32>
    %c0_14 = arith.constant 0 : index
    %c0_15 = arith.constant 0 : index
    %27 = vector.load %arg7[%c0_14, %c0_15] : memref<1x256xf32, #tpu.memory_space<vmem>>, vector<1x256xf32>
    %28 = vector.broadcast %27 : vector<1x256xf32> to vector<512x256xf32>
    %29 = arith.addf %26, %28 : vector<512x256xf32>
    %cst_16 = arith.constant 0.000000e+00 : f32
    %30 = vector.broadcast %cst_16 : f32 to vector<512x256xf32>
    %31 = arith.maximumf %29, %30 : vector<512x256xf32>
    %c0_17 = arith.constant 0 : index
    %c0_18 = arith.constant 0 : index
    %32 = vector.load %arg8[%c0_17, %c0_18] : memref<256x256xf32, #tpu.memory_space<vmem>>, vector<256x256xf32>
    %cst_19 = arith.constant dense<0.000000e+00> : vector<512x256xf32>
    %33 = tpu.matmul %31, %32, %cst_19 {dimension_numbers = #tpu.dot_dimension_numbers<[1], [0], [0], [1], [0, 0, 1, 1], [], []>} : vector<512x256xf32>, vector<256x256xf32>, vector<512x256xf32> -> vector<512x256xf32>
    %c0_20 = arith.constant 0 : index
    %c0_21 = arith.constant 0 : index
    %34 = vector.load %arg9[%c0_20, %c0_21] : memref<1x256xf32, #tpu.memory_space<vmem>>, vector<1x256xf32>
    %35 = vector.broadcast %34 : vector<1x256xf32> to vector<512x256xf32>
    %36 = arith.addf %33, %35 : vector<512x256xf32>
    %cst_22 = arith.constant 0.000000e+00 : f32
    %37 = vector.broadcast %cst_22 : f32 to vector<512x256xf32>
    %38 = arith.maximumf %36, %37 : vector<512x256xf32>
    %c0_23 = arith.constant 0 : index
    %c0_24 = arith.constant 0 : index
    %39 = vector.load %arg10[%c0_23, %c0_24] : memref<256x128xf32, #tpu.memory_space<vmem>>, vector<256x128xf32>
    %cst_25 = arith.constant dense<0.000000e+00> : vector<512x128xf32>
    %40 = tpu.matmul %38, %39, %cst_25 {dimension_numbers = #tpu.dot_dimension_numbers<[1], [0], [0], [1], [0, 0, 1, 1], [], []>} : vector<512x256xf32>, vector<256x128xf32>, vector<512x128xf32> -> vector<512x128xf32>
    %c0_26 = arith.constant 0 : index
    %c0_27 = arith.constant 0 : index
    %41 = vector.load %arg11[%c0_26, %c0_27] : memref<1x128xf32, #tpu.memory_space<vmem>>, vector<1x128xf32>
    %42 = vector.broadcast %41 : vector<1x128xf32> to vector<512x128xf32>
    %43 = arith.addf %40, %42 : vector<512x128xf32>
    %c0_28 = arith.constant 0 : index
    %c0_29 = arith.constant 0 : index
    %44 = vector.load %arg12[%c0_28, %c0_29] : memref<512x128xf32, #tpu.memory_space<vmem>>, vector<512x128xf32>
    tpu.vector_store %arg12[%c0_28, %c0_29], %43 {strides = array<i32>} : memref<512x128xf32, #tpu.memory_space<vmem>>, vector<512x128xf32>,
    return
  }
  func.func @transform_0(%arg0: i32) -> (i32, i32) {
    %c0_i32 = arith.constant 0 : i32
    %c0_i32_0 = arith.constant 0 : i32
    return %arg0, %c0_i32 : i32, i32
  }
  func.func @transform_1(%arg0: i32) -> (i32, i32) {
    %c0_i32 = arith.constant 0 : i32
    %c0_i32_0 = arith.constant 0 : i32
    %c0_i32_1 = arith.constant 0 : i32
    return %c0_i32, %c0_i32_0 : i32, i32
  }
  func.func @transform_2(%arg0: i32) -> (i32, i32) {
    %c0_i32 = arith.constant 0 : i32
    %c0_i32_0 = arith.constant 0 : i32
    %c0_i32_1 = arith.constant 0 : i32
    return %c0_i32, %c0_i32_0 : i32, i32
  }
  func.func @transform_3(%arg0: i32) -> (i32, i32) {
    %c0_i32 = arith.constant 0 : i32
    %c0_i32_0 = arith.constant 0 : i32
    %c0_i32_1 = arith.constant 0 : i32
    return %c0_i32, %c0_i32_0 : i32, i32
  }
  func.func @transform_4(%arg0: i32) -> (i32, i32) {
    %c0_i32 = arith.constant 0 : i32
    %c0_i32_0 = arith.constant 0 : i32
    %c0_i32_1 = arith.constant 0 : i32
    return %c0_i32, %c0_i32_0 : i32, i32
  }
  func.func @transform_5(%arg0: i32) -> (i32, i32) {
    %c0_i32 = arith.constant 0 : i32
    %c0_i32_0 = arith.constant 0 : i32
    %c0_i32_1 = arith.constant 0 : i32
    return %c0_i32, %c0_i32_0 : i32, i32
  }
  func.func @transform_6(%arg0: i32) -> (i32, i32) {
    %c0_i32 = arith.constant 0 : i32
    %c0_i32_0 = arith.constant 0 : i32
    %c0_i32_1 = arith.constant 0 : i32
    return %c0_i32, %c0_i32_0 : i32, i32
  }
  func.func @transform_7(%arg0: i32) -> (i32, i32) {
    %c0_i32 = arith.constant 0 : i32
    %c0_i32_0 = arith.constant 0 : i32
    %c0_i32_1 = arith.constant 0 : i32
    return %c0_i32, %c0_i32_0 : i32, i32
  }
  func.func @transform_8(%arg0: i32) -> (i32, i32) {
    %c0_i32 = arith.constant 0 : i32
    %c0_i32_0 = arith.constant 0 : i32
    %c0_i32_1 = arith.constant 0 : i32
    return %c0_i32, %c0_i32_0 : i32, i32
  }
  func.func @transform_9(%arg0: i32) -> (i32, i32) {
    %c0_i32 = arith.constant 0 : i32
    %c0_i32_0 = arith.constant 0 : i32
    %c0_i32_1 = arith.constant 0 : i32
    return %c0_i32, %c0_i32_0 : i32, i32
  }
  func.func @transform_10(%arg0: i32) -> (i32, i32) {
    %c0_i32 = arith.constant 0 : i32
    %c0_i32_0 = arith.constant 0 : i32
    %c0_i32_1 = arith.constant 0 : i32
    return %c0_i32, %c0_i32_0 : i32, i32
  }
  func.func @transform_11(%arg0: i32) -> (i32, i32) {
    %c0_i32 = arith.constant 0 : i32
    %c0_i32_0 = arith.constant 0 : i32
    return %arg0, %c0_i32 : i32, i32
  }
}

</mosaic_0001>

<bundles_post_ra>
// kernel: tpu_custom_call.1
= control target key start
LH: loop header
LB: loop body
LE: loop exit
PB: predicated region body
PF: predicated region fallthrough
CT: control target
= control target key end

     0   :  { %16 = vsyncpa [#allocation3], 0  ;;  %s6430_s0 = inlined_call_operand.vmem [shape: f32[1024,2], index: 0, kind: input, shape index: {}]   ;;  %s6431_s1 = inlined_call_operand.vmem [shape: f32[2,256], index: 1, kind: input, shape index: {}]   ;;  %s6432_s2 = inlined_call_operand.vmem [shape: f32[1,256], index: 2, kind: input, shape index: {}]   ;;  %s6433_s3 = inlined_call_operand.vmem [shape: f32[256,256], index: 3, kind: input, shape index: {}]   ;;  %s6434_s4 = inlined_call_operand.vmem [shape: f32[1,256], index: 4, kind: input, shape index: {}]   ;;  %s6435_s5 = inlined_call_operand.vmem [shape: f32[256,256], index: 5, kind: input, shape index: {}]   ;;  %s6436_s6 = inlined_call_operand.vmem [shape: f32[1,256], index: 6, kind: input, shape index: {}]   ;;  %s6437_s7 = inlined_call_operand.hbm [shape: f32[256,256], index: 7, kind: input, shape index: {}]   ;;  %s6438_s8 = inlined_call_operand.vmem [shape: f32[1,256], index: 8, kind: input, shape index: {}]   ;;  %s6439_s9 = inlined_call_operand.hbm [shape: f32[256,128], index: 9, kind: input, shape index: {}]   ;;  %s6440_s10 = inlined_call_operand.vmem [shape: f32[1,128], index: 10, kind: input, shape index: {}]   ;;  %s6441_s11 = inlined_call_operand.hbm [shape: f32[1024,128], index: 11, kind: output, shape index: {}]  }
   0x1   :  { %17 = vsyncpa [#allocation6], 0 }
   0x2   :  { %18 = vsyncpa [#allocation4], 0 }
   0x3   :  { %20 = vsyncpa [#allocation4 + $0x1], 0  ;;  %s4825_s17 = smov 0   ;;  %s4827_s18 = smov 0  }
   0x4   :  { %s4829_s19 = smov 0   ;;  %s4831_s20 = smov 0  }
   0x5 LB: > { %6450 = sst [smem:[#allocation11_spill]] %s4739_s17  ;;  %s4846_s21 = sadd.s32 4294967295, %s4751_s20   ;;  %s4751_s20 = sphi %s4831_s20, %s6468_s20   ;;  %s4747_s19 = sphi %s4829_s19, %s6470_s19   ;;  %s4743_s18 = sphi %s4827_s18, %s6472_s18   ;;  %s4739_s17 = sphi %s4825_s17, %s6471_s17  }
   0x6   : > { %6451 = sst [smem:[#allocation12_spill]] %s4747_s19  ;;  %s4293_s22 = sadd.s32 4294967294, %s4751_s20  }
   0x7   : > { %s4850_s23 = sadd.s32 1, %s4751_s20   ;;  %s269_s24 = sadd.s32 1, %s4747_s19 }
   0x8   : > { %6452 = sst [smem:[#allocation13_spill]] %s4850_s23  ;;  %s266_s25 = ssub.s32 %s4751_s20, %s4850_s23 }
   0x9   : > { %p279_p0 = scmp.ne.s32.totalorder %s4747_s19, %s4743_s18  ;;  %p267_p1 = scmp.eq.s32.totalorder %s266_s25, 0 }
   0xa   : > { %p280_p2 = scmp.eq.s32.totalorder %s4846_s21, 1  ;;  %p285_p3 = scmp.ne.s32.totalorder %s4743_s18, %s4739_s17 }
   0xb   : > { %p286_p4 = scmp.eq.s32.totalorder %s4293_s22, 1  ;;  %p4294_p7 = scmp.ge.s32.totalorder %s4751_s20, 1 }
   0xc   : > { %s4861_s26 = scalar_select %p267_p1, %s4747_s19, %s269_s24  }
   0xd   : > { %p4863_p5 = por %p280_p2, %p279_p0  ;;  %p4867_p6 = por %p286_p4, %p285_p3 }
   0xe   : > { %6453 = sst [smem:[#allocation14_spill]] %s4861_s26  ;;  %p293_p8 = scmp.lt.s32.totalorder %s4751_s20, 3 }
   0xf   : > { %s6454_s27 = scalar_select %p4863_p5, 1, 0 }
  0x10   : > { %s6455_s28 = scalar_select %p4867_p6, 1, 0 }
  0x11   : > { %p6443_p9 = scmp.eq.s32.totalorder %s4846_s21, 0  ;;  %p4874_p10 = pnand %p4294_p7, %p293_p8 }
  0x12   : > { %6456 = sst [smem:[#allocation15_spill]] %s6455_s28  ;;  %s4753_s30 = smov [#allocation2]  }
  0x13   : > { %s6457_s29 = scalar_select %p4874_p10, 1, 0 }
  0x14   : > { %s323_s12 = sshll.u32 %s4753_s30, 4  ;;  %p4561_p11 = pneg %p4874_p10  ;;  %s324_s12 = int_to_ptr.vmem [resolvable:$true] %s323_s12 }
  0x15   : > { %s4754_s14 = smov [#allocation5]   ;;  %s4625_s24 = scalar_lea.hbm %s6437_s7, 8192 }
  0x16   : > { %p4882_p12 = pnand %p6443_p9, %p4561_p11  ;;  %s339_s15 = sshll.u32 %s4754_s14, 4  ;;  %s4886_s15 = int_to_ptr.vmem [resolvable:$true] %s339_s15 }
  0x17   : > { %p4626_p13 = scmp.ne.s32.totalorder %s6437_s7, %s4625_s24  ;;  %p4632_p3 = scmp.lt.u32.totalorder %s4625_s24, %s6437_s7 }
  0x18   : > { %p4627_p0 = pneg %p4882_p12 }
  0x1a   : > { %p4628_p1 = pnand %p4627_p0, %p4626_p13 }
  0x1c   : > { %p4629_p2 = pneg %p4628_p1 }
  0x1e   : > { %p4634_p4 = pnand %p4632_p3, %p4629_p2 }
  0x20   : > { %4637 = shalt.err (!%p4634_p4)
}
  0x21   : > { %s4638_s14 = scalar_lea.vmem %s324_s12, 8192  ;;  %p4646_p9 = scmp.lt.s32.totalorder %s324_s12, %s324_s12 }
  0x22   : > { %p4639_p7 = scmp.ne.s32.totalorder %s324_s12, %s4638_s14  ;;  %p4647_p6 = scmp.lt.s32.totalorder %s4638_s14, %s4638_s14 }
  0x24   : > { %p4641_p8 = pnand %p4639_p7, %p4627_p0  ;;  %p4648_p5 = por %p4647_p6, %p4646_p9 }
  0x26   : > { %p4642_p11 = pneg %p4641_p8 }
  0x28   : > { %p4649_p10 = pnand %p4648_p5, %p4642_p11 }
  0x2a   : > { %4652 = shalt.err (!%p4649_p10)
}
  0x2b   : > { %s4755_s16 = smov 256   ;;  %s4756_s22 = smov 16  }
  0x2c   : > { %4564 = dma.hbm_to_vmem [thread:$0]  (!%p4882_p12), %s6437_s7, 8192, %s324_s12, [#allocation3], %s4755_s16, %s4755_s16, %s4756_s22  }
  0x2d   : > { %s4653_s30 = scalar_lea.hbm %s6439_s9, 4096 }
  0x2e   : > { %p4654_p13 = scmp.ne.s32.totalorder %s6439_s9, %s4653_s30  ;;  %p4660_p9 = scmp.lt.u32.totalorder %s4653_s30, %s6439_s9 }
  0x30   : > { %p4656_p5 = pnand %p4654_p13, %p4627_p0 }
  0x32   : > { %p4657_p6 = pneg %p4656_p5 }
  0x34   : > { %p4662_p10 = pnand %p4660_p9, %p4657_p6 }
  0x36   : > { %4665 = shalt.err (!%p4662_p10)
}
  0x37   : > { %s4666_s12 = scalar_lea.vmem %s4886_s15, 4096  ;;  %p4674_p4 = scmp.lt.s32.totalorder %s4886_s15, %s4886_s15 }
  0x38   : > { %p4667_p1 = scmp.ne.s32.totalorder %s4886_s15, %s4666_s12  ;;  %p4675_p7 = scmp.lt.s32.totalorder %s4666_s12, %s4666_s12 }
  0x3a   : > { %p4669_p2 = pnand %p4667_p1, %p4627_p0  ;;  %p4676_p8 = por %p4675_p7, %p4674_p4 }
  0x3c   : > { %p4670_p3 = pneg %p4669_p2 }
  0x3e   : > { %p4677_p11 = pnand %p4676_p8, %p4670_p3 }
  0x40   : > { %4680 = shalt.err (!%p4677_p11)
}
  0x41   : > { %s4757_s17 = smov 128   ;;  %s4758_s23 = smov 8  }
  0x42   : > { %4567 = dma.hbm_to_vmem [thread:$0]  (!%p4882_p12), %s6439_s9, 4096, %s4886_s15, [#allocation6], %s4757_s17, %s4757_s17, %s4758_s23  }
  0x43   : > { %p6459_p13 = scmp.ne.s32.totalorder %s6457_s29, 0 }
  0x44   : > { %p6460_p0 = scmp.eq.s32.totalorder (!%p6459_p13), %s4846_s21, 0 }
  0x45   : > { %367 = sbr.rel (%p6459_p13) target bundleno = 1364 (0x554), region = 64 }
  0x4c   : > { %4726 = dma.done.wait (%p6460_p0), [#allocation3], 8192   ;;  %p6461_p5 = pmov %p6460_p0 }
  0x4d   : > { %p6462_p6 = pmov %p6460_p0 }
  0x4e   : > { %4728 = vsyncadd (%p6461_p5), [#allocation3], 4294959104 }
  0x4f   : > { %4730 = dma.done.wait (%p6462_p6), [#allocation6], 4096   ;;  %p6463_p9 = pmov %p6460_p0 }
  0x50   : > { %s4302_s13 = sshll.u32 %s4846_s21, 6  ;;  %v4759_v0 = vmov 0   ;;  %v4760_v3 = vmov 1   ;;  %v1749_v5 = vld [vmem:[%s6433_s3 + $0x8] sm:$0xff]  ;;  %v1751_v6 = vld [vmem:[%s6433_s3 + $0x18] sm:$0xff]  ;;  %v1748_v7 = vld [vmem:[%s6433_s3] sm:$0xff] }
  0x51   : > { %4732 = vsyncadd (%p6463_p9), [#allocation6], 4294963200  ;;  %4622 = vset.pattern.permute.xlu1 %v4759_v0  ;;  %4620 = vset.pattern.permute.xlu0 %v4759_v0  ;;  %p412_p12 = scmp.lt.s32.totalorder %s4302_s13, 127  ;;  %v1750_v8 = vld [vmem:[%s6433_s3 + $0x10] sm:$0xff]  ;;  %v4311_v9 = vpack.c.bf16 %v1751_v6, %v1749_v5  ;;  %v1753_v11 = vld [vmem:[%s6433_s3 + $0x28] sm:$0xff]  ;;  %s408_s22 = sand.u32 1, %s4743_s18  }
  0x52   : > { %v4313_v10 = vpack.c.bf16 %v1750_v8, %v1748_v7  ;;  %v1755_v12 = vld [vmem:[%s6433_s3 + $0x38] sm:$0xff]  ;;  %v1752_v14 = vld [vmem:[%s6433_s3 + $0x20] sm:$0xff]  ;;  %v1754_v15 = vld [vmem:[%s6433_s3 + $0x30] sm:$0xff]  ;;  %s4301_s26 = sshll.u32 %s408_s22, 9  ;;  %s4310_s14 = sshll.u32 %s4846_s21, 13 }
  0x53   : > { %s6474_s13 = smov (!%p412_p12, %s4302_s13), 127  ;;  %v4315_v13 = vpack.c.bf16 %v1755_v12, %v1753_v11  ;;  %v1757_v16 = vld [vmem:[%s6433_s3 + $0x48] sm:$0xff]  ;;  %v1759_v17 = vld [vmem:[%s6433_s3 + $0x58] sm:$0xff]  ;;  %4312 = vmatprep.subr.bf16.mxu0 %v4311_v9  ;;  %v4317_v19 = vpack.c.bf16 %v1754_v15, %v1752_v14  ;;  %v1756_v21 = vld [vmem:[%s6433_s3 + $0x40] sm:$0xff]  ;;  %s6231_s30 = scalar_lea.vmem [#allocation7], %s4301_s26 }
  0x54   : > { %s4303_s29 = sshll.u32 %s6474_s13, 3  ;;  %4314 = vmatpush1.bf16.msra.mxu0 %v4313_v10  ;;  %v4319_v20 = vpack.c.bf16 %v1759_v17, %v1757_v16  ;;  %v1758_v22 = vld [vmem:[%s6433_s3 + $0x50] sm:$0xff]  ;;  %v1761_v23 = vld [vmem:[%s6433_s3 + $0x68] sm:$0xff]  ;;  %v1763_v24 = vld [vmem:[%s6433_s3 + $0x78] sm:$0xff]  ;;  %s4209_s12 = sshll.u32 %s6231_s30, 4  ;;  %s6383_s12 = int_to_ptr.vmem [resolvable:$true] %s4209_s12 }
  0x55   : > { %s4949_s19 = scalar_lea.vmem %s6430_s0, %s4303_s29  ;;  %4316 = vmatprep.subr.bf16.mxu0 %v4315_v13  ;;  %v4321_v26 = vpack.c.bf16 %v1758_v22, %v1756_v21  ;;  %v4323_v27 = vpack.c.bf16 %v1763_v24, %v1761_v23  ;;  %v1760_v28 = vld [vmem:[%s6433_s3 + $0x60] sm:$0xff]  ;;  %v1762_v29 = vld [vmem:[%s6433_s3 + $0x70] sm:$0xff]  ;;  %v1765_v30 = vld [vmem:[%s6433_s3 + $0x88] sm:$0xff]  ;;  %s6389_s28 = scalar_lea.sflag [#allocation4], %s408_s22 }
  0x56   : > { %v419_v1 = vld [vmem:[%s4949_s19 + $0x8] sm:$0xff]  ;;  %v418_v2 = vld [vmem:[%s4949_s19] sm:$0xff]  ;;  %v420_v4 = vld [vmem:[%s4949_s19 + $0x10] sm:$0xff]  ;;  %v4325_v33 = vpack.c.bf16 %v1762_v29, %v1760_v28  ;;  %s4681_s21 = scalar_lea.vmem %s6383_s12, 8192  ;;  %p6464_p1 = scmp.ne.s32.totalorder %s6454_s27, 0 }
  0x57   : > { %490 = vperm.xlu1 %4622, %v419_v1   ;;  %485 = vperm.xlu0 %4620, %v418_v2   ;;  %v421_v18 = vld [vmem:[%s4949_s19 + $0x18] sm:$0xff]  ;;  %v422_v25 = vld [vmem:[%s4949_s19 + $0x20] sm:$0xff]  ;;  %v423_v32 = vld [vmem:[%s4949_s19 + $0x28] sm:$0xff]  ;;  %p4682_p10 = scmp.ne.s32.totalorder %s6383_s12, %s4681_s21  ;;  %s4762_s16 = smov [#allocation7]  }
  0x58   : > { %4318 = vmatpush1.bf16.msra.mxu0 %v4317_v19  ;;  %v1767_v31 = vld [vmem:[%s6433_s3 + $0x98] sm:$0xff]  ;;  %v1764_v35 = vld [vmem:[%s6433_s3 + $0x80] sm:$0xff]  ;;  %v1766_v36 = vld [vmem:[%s6433_s3 + $0x90] sm:$0xff]  ;;  %s4685_s13 = sshll.u32 %s4762_s16, 4  ;;  %s4686_s13 = int_to_ptr.vmem [resolvable:$false] %s4685_s13 }
  0x59   : > { %4320 = vmatprep.subr.bf16.mxu0 %v4319_v20  ;;  %v4327_v34 = vpack.c.bf16 %v1767_v31, %v1765_v30  ;;  %v1769_v37 = vld [vmem:[%s6433_s3 + $0xa8] sm:$0xff]  ;;  %v1771_v38 = vld [vmem:[%s6433_s3 + $0xb8] sm:$0xff]  ;;  %v424_v39 = vld [vmem:[%s4949_s19 + $0x30] sm:$0xff]  ;;  %v4329_v40 = vpack.c.bf16 %v1766_v36, %v1764_v35  ;;  %p4683_p2 = pnand %p4682_p10, %p6464_p1  ;;  %s4687_s29 = scalar_lea.vmem %s4686_s13, 16384 }
  0x5a   : > { %v4331_v41 = vpack.c.bf16 %v1771_v38, %v1769_v37  ;;  %v1768_v42 = vld [vmem:[%s6433_s3 + $0xa0] sm:$0xff]  ;;  %v1770_v43 = vld [vmem:[%s6433_s3 + $0xb0] sm:$0xff]  ;;  %v1773_v44 = vld [vmem:[%s6433_s3 + $0xc8] sm:$0xff]  ;;  %p4688_p4 = scmp.lt.s32.totalorder %s6383_s12, %s4686_s13  ;;  %p4689_p7 = scmp.lt.s32.totalorder %s4687_s29, %s4681_s21 }
  0x5b   : > { %4623 = vset.pattern.permute.xlu1 %v4760_v3  ;;  %4621 = vset.pattern.permute.xlu0 %v4760_v3  ;;  %v1775_v45 = vld [vmem:[%s6433_s3 + $0xd8] sm:$0xff]  ;;  %v4333_v47 = vpack.c.bf16 %v1770_v43, %v1768_v42  ;;  %v1772_v49 = vld [vmem:[%s6433_s3 + $0xc0] sm:$0xff]  ;;  %v1774_v50 = vld [vmem:[%s6433_s3 + $0xd0] sm:$0xff]  ;;  %p4684_p3 = pneg %p4683_p2 }
  0x5c   : > { %955 = vperm.xlu1 %4623, %v419_v1   ;;  %951 = vperm.xlu0 %4621, %v418_v2   ;;  %v425_v46 = vld [vmem:[%s4949_s19 + $0x38] sm:$0xff]  ;;  %v4335_v48 = vpack.c.bf16 %v1775_v45, %v1773_v44  ;;  %v1777_v51 = vld [vmem:[%s6433_s3 + $0xe8] sm:$0xff]  ;;  %v426_v53 = vld [vmem:[%s4949_s19 + $0x40] sm:$0xff]  ;;  %v4337_v54 = vpack.c.bf16 %v1774_v50, %v1772_v49  ;;  %p4690_p8 = por %p4689_p7, %p4688_p4 }
  0x5d   : > { %4322 = vmatpush1.bf16.msra.mxu0 %v4321_v26  ;;  %v1779_v52 = vld [vmem:[%s6433_s3 + $0xf8] sm:$0xff]  ;;  %v1776_v56 = vld [vmem:[%s6433_s3 + $0xe0] sm:$0xff]  ;;  %v1778_v57 = vld [vmem:[%s6433_s3 + $0xf0] sm:$0xff] }
  0x5e   : > { %4324 = vmatprep.subr.bf16.mxu0 %v4323_v27  ;;  %v4339_v55 = vpack.c.bf16 %v1779_v52, %v1777_v51  ;;  %v1781_v58 = vld [vmem:[%s6433_s3 + $0x108] sm:$0xff]  ;;  %v1783_v59 = vld [vmem:[%s6433_s3 + $0x118] sm:$0xff]  ;;  %v4341_v61 = vpack.c.bf16 %v1778_v57, %v1776_v56  ;;  %v1780_v63 = vld [vmem:[%s6433_s3 + $0x100] sm:$0xff]  ;;  %p4691_p11 = pnand %p4690_p8, %p4684_p3 }
  0x5f   : > { %v427_v60 = vld [vmem:[%s4949_s19 + $0x48] sm:$0xff]  ;;  %v4343_v62 = vpack.c.bf16 %v1783_v59, %v1781_v58  ;;  %v1787_v2 = vld [vmem:[%s6433_s3 + $0x138] sm:$0xff]  ;;  %v428_v3 = vld [vmem:[%s4949_s19 + $0x50] sm:$0xff] }
  0x60   : > { %4624 = vset.pattern.permute.xlu1 %v4759_v0  ;;  %959 = vperm.xlu0 %4621, %v420_v4   ;;  %v1782_v0 = vld [vmem:[%s6433_s3 + $0x110] sm:$0xff]  ;;  %v1785_v1 = vld [vmem:[%s6433_s3 + $0x128] sm:$0xff]  ;;  %v1784_v6 = vld [vmem:[%s6433_s3 + $0x120] sm:$0xff] }
  0x61   : > { %495 = vperm.xlu1 %4624, %v420_v4   ;;  %4326 = vmatpush1.bf16.msra.mxu0 %v4325_v33  ;;  %v4345_v4 = vpack.c.bf16 %v1782_v0, %v1780_v63  ;;  %v4347_v5 = vpack.c.bf16 %v1787_v2, %v1785_v1  ;;  %v1786_v7 = vld [vmem:[%s6433_s3 + $0x130] sm:$0xff]  ;;  %v1789_v8 = vld [vmem:[%s6433_s3 + $0x148] sm:$0xff]  ;;  %v1791_v9 = vld [vmem:[%s6433_s3 + $0x158] sm:$0xff]  ;;  %v804_v63 = vlaneseq }
  0x62   : > { %4328 = vmatprep.subr.bf16.mxu0 %v4327_v34  ;;  %v429_v10 = vld [vmem:[%s4949_s19 + $0x58] sm:$0xff]  ;;  %v4349_v11 = vpack.c.bf16 %v1786_v7, %v1784_v6  ;;  %v4351_v12 = vpack.c.bf16 %v1791_v9, %v1789_v8  ;;  %v1788_v13 = vld [vmem:[%s6433_s3 + $0x140] sm:$0xff]  ;;  %v1790_v14 = vld [vmem:[%s6433_s3 + $0x150] sm:$0xff] }
  0x63   : > { %v1793_v15 = vld [vmem:[%s6433_s3 + $0x168] sm:$0xff]  ;;  %v1795_v16 = vld [vmem:[%s6433_s3 + $0x178] sm:$0xff]  ;;  %v430_v17 = vld [vmem:[%s4949_s19 + $0x60] sm:$0xff]  ;;  %v805_v1 = vshrl.u32 %v804_v63, 7 }
  0x64   : > { %963 = vperm.xlu0 %4621, %v421_v18   ;;  %v4355_v19 = vpack.c.bf16 %v1795_v16, %v1793_v15  ;;  %v1792_v20 = vld [vmem:[%s6433_s3 + $0x160] sm:$0xff]  ;;  %v1794_v21 = vld [vmem:[%s6433_s3 + $0x170] sm:$0xff]  ;;  %v1797_v22 = vld [vmem:[%s6433_s3 + $0x188] sm:$0xff] }
  0x65   : > { %500 = vperm.xlu1 %4624, %v421_v18   ;;  %4330 = vmatpush1.bf16.msra.mxu0 %v4329_v40  ;;  %v4353_v18 = vpack.c.bf16 %v1790_v14, %v1788_v13  ;;  %v1799_v23 = vld [vmem:[%s6433_s3 + $0x198] sm:$0xff]  ;;  %v431_v24 = vld [vmem:[%s4949_s19 + $0x68] sm:$0xff]  ;;  %v1796_v27 = vld [vmem:[%s6433_s3 + $0x180] sm:$0xff]  ;;  %v5179_v6 = vsub.s32 1, %v805_v1  ;;  %v1212_v7 = vsub.s32 3, %v805_v1 }
  0x66   : > { %4332 = vmatprep.subr.bf16.mxu0 %v4331_v41  ;;  %v4359_v26 = vpack.c.bf16 %v1799_v23, %v1797_v22  ;;  %v1798_v28 = vld [vmem:[%s6433_s3 + $0x190] sm:$0xff]  ;;  %v1801_v29 = vld [vmem:[%s6433_s3 + $0x1a8] sm:$0xff]  ;;  %v1803_v30 = vld [vmem:[%s6433_s3 + $0x1b8] sm:$0xff] }
  0x67   : > { %v432_v31 = vld [vmem:[%s4949_s19 + $0x70] sm:$0xff]  ;;  %v4363_v33 = vpack.c.bf16 %v1803_v30, %v1801_v29  ;;  %v1800_v34 = vld [vmem:[%s6433_s3 + $0x1a0] sm:$0xff]  ;;  %v1805_v36 = vld [vmem:[%s6433_s3 + $0x1c8] sm:$0xff] }
  0x68   : > { %967 = vperm.xlu0 %4621, %v422_v25   ;;  %v1802_v35 = vld [vmem:[%s6433_s3 + $0x1b0] sm:$0xff]  ;;  %v1807_v37 = vld [vmem:[%s6433_s3 + $0x1d8] sm:$0xff]  ;;  %v1804_v41 = vld [vmem:[%s6433_s3 + $0x1c0] sm:$0xff] }
  0x69   : > { %505 = vperm.xlu1 %4624, %v422_v25   ;;  %4334 = vmatpush1.bf16.msra.mxu0 %v4333_v47  ;;  %v4357_v25 = vpack.c.bf16 %v1794_v21, %v1792_v20  ;;  %v433_v38 = vld [vmem:[%s4949_s19 + $0x78] sm:$0xff]  ;;  %v4367_v40 = vpack.c.bf16 %v1807_v37, %v1805_v36  ;;  %v1806_v42 = vld [vmem:[%s6433_s3 + $0x1d0] sm:$0xff]  ;;  %v1809_v43 = vld [vmem:[%s6433_s3 + $0x1e8] sm:$0xff] }
  0x6a   : > { %4336 = vmatprep.subr.bf16.mxu0 %v4335_v48  ;;  %v1811_v44 = vld [vmem:[%s6433_s3 + $0x1f8] sm:$0xff]  ;;  %v434_v45 = vld [vmem:[%s4949_s19 + $0x80] sm:$0xff]  ;;  %v1810_v49 = vld [vmem:[%s6433_s3 + $0x1f0] sm:$0xff] }
  0x6b   : > { %v4371_v47 = vpack.c.bf16 %v1811_v44, %v1809_v43  ;;  %v1808_v48 = vld [vmem:[%s6433_s3 + $0x1e0] sm:$0xff]  ;;  %v435_v50 = vld [vmem:[%s4949_s19 + $0x88] sm:$0xff]  ;;  %v436_v52 = vld [vmem:[%s4949_s19 + $0x90] sm:$0xff] }
  0x6c   : > { %971 = vperm.xlu0 %4621, %v423_v32   ;;  %v4373_v51 = vpack.c.bf16 %v1810_v49, %v1808_v48  ;;  %v440_v56 = vld [vmem:[%s4949_s19 + $0xb0] sm:$0xff]  ;;  %v441_v57 = vld [vmem:[%s4949_s19 + $0xb8] sm:$0xff]  ;;  %v442_v58 = vld [vmem:[%s4949_s19 + $0xc0] sm:$0xff] }
  0x6d   : > { %510 = vperm.xlu1 %4624, %v423_v32   ;;  %4338 = vmatpush1.bf16.msra.mxu0 %v4337_v54  ;;  %v4361_v32 = vpack.c.bf16 %v1798_v28, %v1796_v27  ;;  %v438_v54 = vld [vmem:[%s4949_s19 + $0xa0] sm:$0xff]  ;;  %v443_v59 = vld [vmem:[%s4949_s19 + $0xc8] sm:$0xff]  ;;  %v448_v2 = vld [vmem:[%s4949_s19 + $0xf0] sm:$0xff] }
  0x6e   : > { %4340 = vmatprep.subr.bf16.mxu0 %v4339_v55  ;;  %v439_v55 = vld [vmem:[%s4949_s19 + $0xa8] sm:$0xff]  ;;  %v449_v8 = vld [vmem:[%s4949_s19 + $0xf8] sm:$0xff]  ;;  %v450_v13 = vld [vmem:[%s4949_s19 + $0x100] sm:$0xff] }
  0x6f   : > { %v447_v0 = vld [vmem:[%s4949_s19 + $0xe8] sm:$0xff] }
  0x70   : > { %975 = vperm.xlu0 %4621, %v424_v39   ;;  %v451_v21 = vld [vmem:[%s4949_s19 + $0x108] sm:$0xff] }
  0x71   : > { %515 = vperm.xlu1 %4624, %v424_v39   ;;  %4342 = vmatpush1.bf16.msra.mxu0 %v4341_v61  ;;  %v4365_v39 = vpack.c.bf16 %v1802_v35, %v1800_v34  ;;  %v445_v61 = vld [vmem:[%s4949_s19 + $0xd8] sm:$0xff]  ;;  %v452_v34 = vld [vmem:[%s4949_s19 + $0x110] sm:$0xff] }
  0x72   : > { %4344 = vmatprep.subr.bf16.mxu0 %v4343_v62  ;;  %v446_v62 = vld [vmem:[%s4949_s19 + $0xe0] sm:$0xff] }
  0x74   : > { %979 = vperm.xlu0 %4621, %v425_v46  }
  0x75   : > { %520 = vperm.xlu1 %4624, %v425_v46   ;;  %4346 = vmatpush1.bf16.msra.mxu0 %v4345_v4  ;;  %v4369_v46 = vpack.c.bf16 %v1806_v42, %v1804_v41  ;;  %v810_v4 = vsub.s32 2, %v805_v1 }
  0x76   : > { %4348 = vmatprep.subr.bf16.mxu0 %v4347_v5  ;;  %v482_v5 = vld [vmem:[%s6431_s1] sm:$0xf] }
  0x78   : > { %983 = vperm.xlu0 %4621, %v426_v53  }
  0x79   : > { %525 = vperm.xlu1 %4624, %v426_v53   ;;  %4350 = vmatpush1.bf16.msra.mxu0 %v4349_v11  ;;  %v437_v53 = vld [vmem:[%s4949_s19 + $0x98] sm:$0xff]  ;;  %v1209_v11 = vrot.slane %v482_v5, %v5179_v6 }
  0x7a   : > { %4352 = vmatprep.subr.bf16.mxu0 %v4351_v12  ;;  %v1213_v12 = vrot.slane %v482_v5, %v1212_v7 }
  0x7c   : > { %987 = vperm.xlu0 %4621, %v427_v60   ;;  %v5198_v20 = vrot.slane %v1213_v12, %v5179_v6  ;;  %v455_v12 = vld [vmem:[%s4949_s19 + $0x128] sm:$0xff] }
  0x7d   : > { %530 = vperm.xlu1 %4624, %v427_v60   ;;  %4354 = vmatpush1.bf16.msra.mxu0 %v4353_v18  ;;  %v444_v60 = vld [vmem:[%s4949_s19 + $0xd0] sm:$0xff]  ;;  %v1480_v18 = vld [vmem:[%s6432_s2] sm:$0x3] }
  0x7e   : > { %4356 = vmatprep.subr.bf16.mxu0 %v4355_v19  ;;  %v5195_v19 = vrot.slane %v1209_v11, %v5179_v6  ;;  %v5205_v23 = vrot.slane %v1480_v18, %v5179_v6 }
  0x80   : > { %991 = vperm.xlu0 %4621, %v428_v3  }
  0x81   : > { %535 = vperm.xlu1 %4624, %v428_v3   ;;  %4358 = vmatpush1.bf16.msra.mxu0 %v4357_v25  ;;  %v5174_v3 = vsub.s32 0, %v805_v1 }
  0x82   : > { %4360 = vmatprep.subr.bf16.mxu0 %v4359_v26 }
  0x83   : > { %v807_v9 = vrot.slane %v482_v5, %v5174_v3  ;;  %v5202_v22 = vrot.slane %v1480_v18, %v5174_v3 }
  0x84   : > { %995 = vperm.xlu0 %4621, %v429_v10  }
  0x85   : > { %540 = vperm.xlu1 %4624, %v429_v10   ;;  %4362 = vmatpush1.bf16.msra.mxu0 %v4361_v32  ;;  %v811_v10 = vrot.slane %v482_v5, %v810_v4  ;;  %v5186_v16 = vrot.slane %v807_v9, %v5174_v3 }
  0x86   : > { %4364 = vmatprep.subr.bf16.mxu0 %v4363_v33 }
  0x88   : > { %999 = vperm.xlu0 %4621, %v430_v17  }
  0x89   : > { %545 = vperm.xlu1 %4624, %v430_v17   ;;  %4366 = vmatpush1.bf16.msra.mxu0 %v4365_v39  ;;  %v5189_v17 = vrot.slane %v811_v10, %v5174_v3 }
  0x8a   : > { %4368 = vmatprep.subr.bf16.mxu0 %v4367_v40 }
  0x8c   : > { %1003 = vperm.xlu0 %4621, %v431_v24  }
  0x8d   : > { %550 = vperm.xlu1 %4624, %v431_v24   ;;  %4370 = vmatpush1.bf16.msra.mxu0 %v4369_v46 }
  0x8e   : > { %4372 = vmatprep.subr.bf16.mxu0 %v4371_v47  ;;  %v453_v47 = vld [vmem:[%s4949_s19 + $0x118] sm:$0xff] }
  0x90   : > { %1007 = vperm.xlu0 %4621, %v432_v31  }
  0x91   : > { %555 = vperm.xlu1 %4624, %v432_v31   ;;  %4374 = vmatpush1.bf16.msra.mxu0 %v4373_v51 }
  0x94   : > { %1011 = vperm.xlu0 %4621, %v433_v38  }
  0x95   : > { %560 = vperm.xlu1 %4624, %v433_v38  }
  0x98   : > { %1015 = vperm.xlu0 %4621, %v434_v45  }
  0x99   : > { %565 = vperm.xlu1 %4624, %v434_v45  }
  0x9c   : > { %1019 = vperm.xlu0 %4621, %v435_v50  }
  0x9d   : > { %570 = vperm.xlu1 %4624, %v435_v50  }
  0xa0   : > { %1023 = vperm.xlu0 %4621, %v436_v52  }
  0xa1   : > { %575 = vperm.xlu1 %4624, %v436_v52  }
  0xa4   : > { %1027 = vperm.xlu0 %4621, %v437_v53  }
  0xa5   : > { %580 = vperm.xlu1 %4624, %v437_v53  }
  0xa8   : > { %1031 = vperm.xlu0 %4621, %v438_v54  }
  0xa9   : > { %585 = vperm.xlu1 %4624, %v438_v54  }
  0xac   : > { %1035 = vperm.xlu0 %4621, %v439_v55  }
  0xad   : > { %590 = vperm.xlu1 %4624, %v439_v55  }
  0xb0   : > { %1039 = vperm.xlu0 %4621, %v440_v56  }
  0xb1   : > { %595 = vperm.xlu1 %4624, %v440_v56  }
  0xb4   : > { %1043 = vperm.xlu0 %4621, %v441_v57  }
  0xb5   : > { %600 = vperm.xlu1 %4624, %v441_v57  }
  0xb8   : > { %1047 = vperm.xlu0 %4621, %v442_v58  }
  0xb9   : > { %605 = vperm.xlu1 %4624, %v442_v58  }
  0xbc   : > { %1051 = vperm.xlu0 %4621, %v443_v59  }
  0xbd   : > { %610 = vperm.xlu1 %4624, %v443_v59  }
  0xc0   : > { %1055 = vperm.xlu0 %4621, %v444_v60  }
  0xc1   : > { %615 = vperm.xlu1 %4624, %v444_v60  }
  0xc4   : > { %1059 = vperm.xlu0 %4621, %v445_v61  }
  0xc5   : > { %620 = vperm.xlu1 %4624, %v445_v61   ;;  %v454_v61 = vld [vmem:[%s4949_s19 + $0x120] sm:$0xff] }
  0xc8   : > { %1063 = vperm.xlu0 %4621, %v446_v62  }
  0xc9   : > { %625 = vperm.xlu1 %4624, %v446_v62  }
  0xcc   : > { %1067 = vperm.xlu0 %4621, %v447_v0  }
  0xcd   : > { %630 = vperm.xlu1 %4624, %v447_v0  }
  0xd0   : > { %1071 = vperm.xlu0 %4621, %v448_v2  }
  0xd1   : > { %635 = vperm.xlu1 %4624, %v448_v2  }
  0xd4   : > { %1075 = vperm.xlu0 %4621, %v449_v8  }
  0xd5   : > { %640 = vperm.xlu1 %4624, %v449_v8  }
  0xd6   : > { %v486_v14 = vpop.permute.xlu0 %485  ;;  %v491_v15 = vpop.permute.xlu1 %490 }
  0xd7   : > { %v822_v24 = vmul.f32 %v5186_v16, %v486_v14  ;;  %v823_v25 = vmul.f32 %v5189_v17, %v486_v14  ;;  %v824_v26 = vmul.f32 %v5186_v16, %v491_v15  ;;  %v825_v27 = vmul.f32 %v5189_v17, %v491_v15 }
  0xd8   : > { %1079 = vperm.xlu0 %4621, %v450_v13  }
  0xd9   : > { %645 = vperm.xlu1 %4624, %v450_v13  }
  0xdb   : > { %v956_v28 = vpop.permute.xlu1 %955  ;;  %v952_v29 = vpop.permute.xlu0 %951 }
  0xdc   : > { %v1226_v30 = vmul.f32 %v5195_v19, %v956_v28  ;;  %v1227_v31 = vmul.f32 %v5198_v20, %v956_v28  ;;  %v1224_v32 = vmul.f32 %v5195_v19, %v952_v29  ;;  %v1225_v33 = vmul.f32 %v5198_v20, %v952_v29  ;;  %1083 = vperm.xlu0 %4621, %v451_v21  }
  0xdd   : > { %650 = vperm.xlu1 %4624, %v451_v21  }
  0xde   : > { %v1354_v35 = vadd.f32 %v1226_v30, %v824_v26  ;;  %v1355_v36 = vadd.f32 %v1227_v31, %v825_v27  ;;  %v1352_v37 = vadd.f32 %v1224_v32, %v822_v24  ;;  %v1353_v38 = vadd.f32 %v1225_v33, %v823_v25  ;;  %v456_v31 = vld [vmem:[%s4949_s19 + $0x130] sm:$0xff] }
  0xdf   : > { %v960_v39 = vpop.permute.xlu0 %959 }
  0xe0   : > { %v1228_v40 = vmul.f32 %v5195_v19, %v960_v39  ;;  %v1229_v41 = vmul.f32 %v5198_v20, %v960_v39  ;;  %v496_v42 = vpop.permute.xlu1 %495  ;;  %1087 = vperm.xlu0 %4621, %v452_v34   ;;  %v1493_v43 = vadd.f32 %v5205_v23, %v1353_v38  ;;  %v1492_v44 = vadd.f32 %v5202_v22, %v1352_v37 }
  0xe1   : > { %v826_v45 = vmul.f32 %v5186_v16, %v496_v42  ;;  %v827_v46 = vmul.f32 %v5189_v17, %v496_v42  ;;  %655 = vperm.xlu1 %4624, %v452_v34   ;;  %v1495_v48 = vadd.f32 %v5205_v23, %v1355_v36  ;;  %v1494_v51 = vadd.f32 %v5202_v22, %v1354_v35 }
  0xe2   : > { %v1621_v49 = vmax.f32 %v1493_v43, 0.0  ;;  %v1620_v50 = vmax.f32 %v1492_v44, 0.0  ;;  %v457_v44 = vld [vmem:[%s4949_s19 + $0x138] sm:$0xff] }
  0xe3   : > { %v1356_v52 = vadd.f32 %v1228_v40, %v826_v45  ;;  %v1357_v53 = vadd.f32 %v1229_v41, %v827_v46  ;;  %v964_v54 = vpop.permute.xlu0 %963  ;;  %v1623_v58 = vmax.f32 %v1495_v48, 0.0  ;;  %v1622_v63 = vmax.f32 %v1494_v51, 0.0 }
  0xe4   : > { %v1230_v55 = vmul.f32 %v5195_v19, %v964_v54  ;;  %v1231_v56 = vmul.f32 %v5198_v20, %v964_v54  ;;  %v501_v57 = vpop.permute.xlu1 %500  ;;  %1091 = vperm.xlu0 %4621, %v453_v47   ;;  %1888 = vmatprep.mubr.f32.mxu0 %v1621_v49 }
  0xe5   : > { %v828_v59 = vmul.f32 %v5186_v16, %v501_v57  ;;  %v829_v60 = vmul.f32 %v5189_v17, %v501_v57  ;;  %660 = vperm.xlu1 %4624, %v453_v47   ;;  %1889 = vmatmul.mubr.f32.vlgmr.msra.gmra.mrb[0].mxu0 %v1620_v50  ;;  %v1497_v62 = vadd.f32 %v5205_v23, %v1357_v53  ;;  %v458_v57 = vld [vmem:[%s4949_s19 + $0x140] sm:$0xff] }
  0xe6   : > { %1894 = vmatprep.mubr.f32.mxu0 %v1623_v58  ;;  %v1496_v5 = vadd.f32 %v5202_v22, %v1356_v52 }
  0xe7   : > { %v1358_v0 = vadd.f32 %v1230_v55, %v828_v59  ;;  %v1359_v1 = vadd.f32 %v1231_v56, %v829_v60  ;;  %v968_v2 = vpop.permute.xlu0 %967  ;;  %v1625_v4 = vmax.f32 %v1497_v62, 0.0 }
  0xe8   : > { %v1232_v7 = vmul.f32 %v5195_v19, %v968_v2  ;;  %v1233_v8 = vmul.f32 %v5198_v20, %v968_v2  ;;  %v506_v9 = vpop.permute.xlu1 %505  ;;  %1095 = vperm.xlu0 %4621, %v454_v61   ;;  %v1624_v24 = vmax.f32 %v1496_v5, 0.0 }
  0xe9   : > { %v830_v10 = vmul.f32 %v5186_v16, %v506_v9  ;;  %v831_v11 = vmul.f32 %v5189_v17, %v506_v9  ;;  %665 = vperm.xlu1 %4624, %v454_v61   ;;  %1895 = vmatmul.mubr.f32.gmra.mrb[2].mxu0 %v1622_v63  ;;  %v1499_v13 = vadd.f32 %v5205_v23, %v1359_v1 }
  0xea   : > { %1900 = vmatprep.mubr.f32.mxu0 %v1625_v4  ;;  %v1498_v14 = vadd.f32 %v5202_v22, %v1358_v0 }
  0xeb   : > { %v1360_v15 = vadd.f32 %v1232_v7, %v830_v10  ;;  %v1361_v18 = vadd.f32 %v1233_v8, %v831_v11  ;;  %v972_v21 = vpop.permute.xlu0 %971  ;;  %v1627_v25 = vmax.f32 %v1499_v13, 0.0  ;;  %v459_v8 = vld [vmem:[%s4949_s19 + $0x148] sm:$0xff] }
  0xec   : > { %v1234_v26 = vmul.f32 %v5195_v19, %v972_v21  ;;  %v1235_v27 = vmul.f32 %v5198_v20, %v972_v21  ;;  %v511_v28 = vpop.permute.xlu1 %510  ;;  %1099 = vperm.xlu0 %4621, %v455_v12   ;;  %v1626_v33 = vmax.f32 %v1498_v14, 0.0 }
  0xed   : > { %v832_v29 = vmul.f32 %v5186_v16, %v511_v28  ;;  %v833_v30 = vmul.f32 %v5189_v17, %v511_v28  ;;  %670 = vperm.xlu1 %4624, %v455_v12   ;;  %1901 = vmatmul.mubr.f32.gmra.mrb[4].mxu0 %v1624_v24  ;;  %v1501_v32 = vadd.f32 %v5205_v23, %v1361_v18 }
  0xee   : > { %1906 = vmatprep.mubr.f32.mxu0 %v1627_v25  ;;  %v1500_v38 = vadd.f32 %v5202_v22, %v1360_v15 }
  0xef   : > { %v1362_v34 = vadd.f32 %v1234_v26, %v832_v29  ;;  %v1363_v35 = vadd.f32 %v1235_v27, %v833_v30  ;;  %v976_v36 = vpop.permute.xlu0 %975  ;;  %v1629_v37 = vmax.f32 %v1501_v32, 0.0  ;;  %v460_v27 = vld [vmem:[%s4949_s19 + $0x150] sm:$0xff]  ;;  %v2402_v29 = vld [vmem:[%s6435_s5 + $0x8] sm:$0xff]  ;;  %v2404_v30 = vld [vmem:[%s6435_s5 + $0x18] sm:$0xff] }
  0xf0   : > { %v1236_v39 = vmul.f32 %v5195_v19, %v976_v36  ;;  %v1237_v40 = vmul.f32 %v5198_v20, %v976_v36  ;;  %v516_v41 = vpop.permute.xlu1 %515  ;;  %1103 = vperm.xlu0 %4621, %v456_v31   ;;  %v1628_v50 = vmax.f32 %v1500_v38, 0.0 }
  0xf1   : > { %v834_v42 = vmul.f32 %v5186_v16, %v516_v41  ;;  %v835_v43 = vmul.f32 %v5189_v17, %v516_v41  ;;  %675 = vperm.xlu1 %4624, %v456_v31   ;;  %1907 = vmatmul.mubr.f32.gmra.mrb[6].mxu0 %v1626_v33  ;;  %v1503_v45 = vadd.f32 %v5205_v23, %v1363_v35  ;;  %v2403_v35 = vld [vmem:[%s6435_s5 + $0x10] sm:$0xff] }
  0xf2   : > { %1912 = vmatprep.mubr.f32.mxu0 %v1629_v37  ;;  %v1502_v46 = vadd.f32 %v5202_v22, %v1362_v34  ;;  %v4375_v33 = vpack.c.bf16 %v2404_v30, %v2402_v29  ;;  %v2401_v34 = vld [vmem:[%s6435_s5] sm:$0xff]  ;;  %v2414_v30 = vld [vmem:[%s6435_s5 + $0x68] sm:$0xff] }
  0xf3   : > { %v1364_v47 = vadd.f32 %v1236_v39, %v834_v42  ;;  %v1365_v48 = vadd.f32 %v1237_v40, %v835_v43  ;;  %v980_v49 = vpop.permute.xlu0 %979  ;;  %v1631_v51 = vmax.f32 %v1503_v45, 0.0  ;;  %v4377_v40 = vpack.c.bf16 %v2403_v35, %v2401_v34  ;;  %v2413_v35 = vld [vmem:[%s6435_s5 + $0x60] sm:$0xff] }
  0xf4   : > { %v1238_v52 = vmul.f32 %v5195_v19, %v980_v49  ;;  %v1239_v53 = vmul.f32 %v5198_v20, %v980_v49  ;;  %v521_v54 = vpop.permute.xlu1 %520  ;;  %1107 = vperm.xlu0 %4621, %v457_v44   ;;  %v1630_v59 = vmax.f32 %v1502_v46, 0.0  ;;  %4376 = vmatprep.subr.bf16.mxu1 %v4375_v33  ;;  %v461_v46 = vld [vmem:[%s4949_s19 + $0x158] sm:$0xff] }
  0xf5   : > { %v836_v55 = vmul.f32 %v5186_v16, %v521_v54  ;;  %v837_v56 = vmul.f32 %v5189_v17, %v521_v54  ;;  %680 = vperm.xlu1 %4624, %v457_v44   ;;  %1913 = vmatmul.mubr.f32.gmra.mrb[8].mxu0 %v1628_v50  ;;  %v1505_v58 = vadd.f32 %v5205_v23, %v1365_v48  ;;  %v2406_v48 = vld [vmem:[%s6435_s5 + $0x28] sm:$0xff]  ;;  %v2408_v49 = vld [vmem:[%s6435_s5 + $0x38] sm:$0xff]  ;;  %v2407_v54 = vld [vmem:[%s6435_s5 + $0x30] sm:$0xff] }
  0xf6   : > { %1918 = vmatprep.mubr.f32.mxu0 %v1631_v51  ;;  %v1504_v0 = vadd.f32 %v5202_v22, %v1364_v47  ;;  %4378 = vmatpush1.bf16.msra.mxu1 %v4377_v40 }
  0xf7   : > { %v1366_v60 = vadd.f32 %v1238_v52, %v836_v55  ;;  %v1367_v61 = vadd.f32 %v1239_v53, %v837_v56  ;;  %v984_v62 = vpop.permute.xlu0 %983  ;;  %v1633_v63 = vmax.f32 %v1505_v58, 0.0  ;;  %v4379_v52 = vpack.c.bf16 %v2408_v49, %v2406_v48  ;;  %v2405_v53 = vld [vmem:[%s6435_s5 + $0x20] sm:$0xff]  ;;  %v2418_v49 = vld [vmem:[%s6435_s5 + $0x88] sm:$0xff] }
  0xf8   : > { %v1240_v1 = vmul.f32 %v5195_v19, %v984_v62  ;;  %v1241_v2 = vmul.f32 %v5198_v20, %v984_v62  ;;  %v526_v4 = vpop.permute.xlu1 %525  ;;  %1111 = vperm.xlu0 %4621, %v458_v57   ;;  %v1632_v14 = vmax.f32 %v1504_v0, 0.0 }
  0xf9   : > { %v838_v5 = vmul.f32 %v5186_v16, %v526_v4  ;;  %v839_v7 = vmul.f32 %v5189_v17, %v526_v4  ;;  %685 = vperm.xlu1 %4624, %v458_v57   ;;  %1919 = vmatmul.mubr.f32.gmra.mrb[10].mxu0 %v1630_v59  ;;  %v1507_v9 = vadd.f32 %v5205_v23, %v1367_v61  ;;  %v2410_v4 = vld [vmem:[%s6435_s5 + $0x48] sm:$0xff] }
  0xfa   : > { %1924 = vmatprep.mubr.f32.mxu0 %v1633_v63  ;;  %v1506_v10 = vadd.f32 %v5202_v22, %v1366_v60  ;;  %v4381_v59 = vpack.c.bf16 %v2407_v54, %v2405_v53  ;;  %4380 = vmatprep.subr.bf16.mxu1 %v4379_v52  ;;  %v2417_v54 = vld [vmem:[%s6435_s5 + $0x80] sm:$0xff] }
  0xfb   : > { %v1368_v11 = vadd.f32 %v1240_v1, %v838_v5  ;;  %v1369_v12 = vadd.f32 %v1241_v2, %v839_v7  ;;  %v988_v13 = vpop.permute.xlu0 %987  ;;  %v1635_v15 = vmax.f32 %v1507_v9, 0.0  ;;  %v462_v1 = vld [vmem:[%s4949_s19 + $0x160] sm:$0xff]  ;;  %v2412_v5 = vld [vmem:[%s6435_s5 + $0x58] sm:$0xff] }
  0xfc   : > { %v1242_v18 = vmul.f32 %v5195_v19, %v988_v13  ;;  %v1243_v21 = vmul.f32 %v5198_v20, %v988_v13  ;;  %v531_v24 = vpop.permute.xlu1 %530  ;;  %1115 = vperm.xlu0 %4621, %v459_v8   ;;  %v1634_v31 = vmax.f32 %v1506_v10, 0.0  ;;  %4382 = vmatpush1.bf16.msra.mxu1 %v4381_v59  ;;  %v4383_v9 = vpack.c.bf16 %v2412_v5, %v2410_v4  ;;  %v2409_v10 = vld [vmem:[%s6435_s5 + $0x40] sm:$0xff]  ;;  %v2422_v5 = vld [vmem:[%s6435_s5 + $0xa8] sm:$0xff] }
  0xfd   : > { %v840_v25 = vmul.f32 %v5186_v16, %v531_v24  ;;  %v841_v26 = vmul.f32 %v5189_v17, %v531_v24  ;;  %690 = vperm.xlu1 %4624, %v459_v8   ;;  %1925 = vmatmul.mubr.f32.gmra.mrb[12].mxu0 %v1632_v14  ;;  %v1509_v28 = vadd.f32 %v5205_v23, %v1369_v12 }
  0xfe   : > { %1930 = vmatprep.mubr.f32.mxu0 %v1635_v15  ;;  %v1508_v32 = vadd.f32 %v5202_v22, %v1368_v11  ;;  %v2411_v11 = vld [vmem:[%s6435_s5 + $0x50] sm:$0xff]  ;;  %4384 = vmatprep.subr.bf16.mxu1 %v4383_v9 }
  0xff   : > { %v1370_v36 = vadd.f32 %v1242_v18, %v840_v25  ;;  %v1371_v37 = vadd.f32 %v1243_v21, %v841_v26  ;;  %v992_v38 = vpop.permute.xlu0 %991  ;;  %v1637_v39 = vmax.f32 %v1509_v28, 0.0  ;;  %v4385_v18 = vpack.c.bf16 %v2411_v11, %v2409_v10  ;;  %v463_v28 = vld [vmem:[%s4949_s19 + $0x168] sm:$0xff]  ;;  %v2421_v11 = vld [vmem:[%s6435_s5 + $0xa0] sm:$0xff] }
 0x100   : > { %v1244_v41 = vmul.f32 %v5195_v19, %v992_v38  ;;  %v1245_v42 = vmul.f32 %v5198_v20, %v992_v38  ;;  %v536_v43 = vpop.permute.xlu1 %535  ;;  %1119 = vperm.xlu0 %4621, %v460_v27   ;;  %v1636_v50 = vmax.f32 %v1508_v32, 0.0 }
 0x101   : > { %v842_v44 = vmul.f32 %v5186_v16, %v536_v43  ;;  %v843_v45 = vmul.f32 %v5189_v17, %v536_v43  ;;  %695 = vperm.xlu1 %4624, %v460_v27   ;;  %1931 = vmatmul.mubr.f32.gmra.mrb[14].mxu0 %v1634_v31  ;;  %v1511_v47 = vadd.f32 %v5205_v23, %v1371_v37  ;;  %v2416_v31 = vld [vmem:[%s6435_s5 + $0x78] sm:$0xff] }
 0x102   : > { %1936 = vmatprep.mubr.f32.mxu0 %v1637_v39  ;;  %v1510_v51 = vadd.f32 %v5202_v22, %v1370_v36  ;;  %4386 = vmatpush1.bf16.msra.mxu1 %v4385_v18  ;;  %v4387_v34 = vpack.c.bf16 %v2416_v31, %v2414_v30  ;;  %v2415_v36 = vld [vmem:[%s6435_s5 + $0x70] sm:$0xff]  ;;  %v2426_v31 = vld [vmem:[%s6435_s5 + $0xc8] sm:$0xff] }
 0x103   : > { %v1372_v55 = vadd.f32 %v1244_v41, %v842_v44  ;;  %v1373_v56 = vadd.f32 %v1245_v42, %v843_v45  ;;  %v996_v57 = vpop.permute.xlu0 %995  ;;  %v1639_v58 = vmax.f32 %v1511_v47, 0.0  ;;  %v4389_v41 = vpack.c.bf16 %v2415_v36, %v2413_v35  ;;  %v464_v47 = vld [vmem:[%s4949_s19 + $0x170] sm:$0xff]  ;;  %v2425_v36 = vld [vmem:[%s6435_s5 + $0xc0] sm:$0xff] }
 0x104   : > { %v1246_v60 = vmul.f32 %v5195_v19, %v996_v57  ;;  %v1247_v61 = vmul.f32 %v5198_v20, %v996_v57  ;;  %v541_v62 = vpop.permute.xlu1 %540  ;;  %1123 = vperm.xlu0 %4621, %v461_v46   ;;  %v1638_v7 = vmax.f32 %v1510_v51, 0.0  ;;  %4388 = vmatprep.subr.bf16.mxu1 %v4387_v34 }
 0x105   : > { %v844_v63 = vmul.f32 %v5186_v16, %v541_v62  ;;  %v845_v0 = vmul.f32 %v5189_v17, %v541_v62  ;;  %700 = vperm.xlu1 %4624, %v461_v46   ;;  %1937 = vmatmul.mubr.f32.gmra.mrb[16].mxu0 %v1636_v50  ;;  %v1513_v2 = vadd.f32 %v5205_v23, %v1373_v56  ;;  %v2420_v50 = vld [vmem:[%s6435_s5 + $0x98] sm:$0xff] }
 0x106   : > { %1942 = vmatprep.mubr.f32.mxu0 %v1639_v58  ;;  %v1512_v8 = vadd.f32 %v5202_v22, %v1372_v55  ;;  %4390 = vmatpush1.bf16.msra.mxu1 %v4389_v41  ;;  %v4391_v53 = vpack.c.bf16 %v2420_v50, %v2418_v49  ;;  %v2419_v55 = vld [vmem:[%s6435_s5 + $0x90] sm:$0xff]  ;;  %v467_v50 = vld [vmem:[%s4949_s19 + $0x188] sm:$0xff] }
 0x107   : > { %v1374_v12 = vadd.f32 %v1246_v60, %v844_v63  ;;  %v1375_v13 = vadd.f32 %v1247_v61, %v845_v0  ;;  %v1000_v14 = vpop.permute.xlu0 %999  ;;  %v1641_v15 = vmax.f32 %v1513_v2, 0.0  ;;  %v4393_v60 = vpack.c.bf16 %v2419_v55, %v2417_v54  ;;  %v465_v2 = vld [vmem:[%s4949_s19 + $0x178] sm:$0xff] }
 0x108   : > { %v1248_v21 = vmul.f32 %v5195_v19, %v1000_v14  ;;  %v1249_v24 = vmul.f32 %v5198_v20, %v1000_v14  ;;  %v546_v25 = vpop.permute.xlu1 %545  ;;  %1127 = vperm.xlu0 %4621, %v462_v1   ;;  %v1640_v32 = vmax.f32 %v1512_v8, 0.0  ;;  %4392 = vmatprep.subr.bf16.mxu1 %v4391_v53  ;;  %v2432_v53 = vld [vmem:[%s6435_s5 + $0xf8] sm:$0xff] }
 0x109   : > { %v846_v26 = vmul.f32 %v5186_v16, %v546_v25  ;;  %v847_v27 = vmul.f32 %v5189_v17, %v546_v25  ;;  %705 = vperm.xlu1 %4624, %v462_v1   ;;  %1943 = vmatmul.mubr.f32.gmra.mrb[18].mxu0 %v1638_v7  ;;  %v1515_v29 = vadd.f32 %v5205_v23, %v1375_v13  ;;  %v2424_v7 = vld [vmem:[%s6435_s5 + $0xb8] sm:$0xff] }
 0x10a   : > { %1948 = vmatprep.mubr.f32.mxu0 %v1641_v15  ;;  %v1514_v33 = vadd.f32 %v5202_v22, %v1374_v12  ;;  %4394 = vmatpush1.bf16.msra.mxu1 %v4393_v60  ;;  %v4395_v10 = vpack.c.bf16 %v2424_v7, %v2422_v5  ;;  %v2423_v12 = vld [vmem:[%s6435_s5 + $0xb0] sm:$0xff] }
 0x10b   : > { %v1376_v37 = vadd.f32 %v1248_v21, %v846_v26  ;;  %v1377_v38 = vadd.f32 %v1249_v24, %v847_v27  ;;  %v1004_v39 = vpop.permute.xlu0 %1003  ;;  %v1643_v40 = vmax.f32 %v1515_v29, 0.0  ;;  %v4397_v21 = vpack.c.bf16 %v2423_v12, %v2421_v11  ;;  %v466_v29 = vld [vmem:[%s4949_s19 + $0x180] sm:$0xff]  ;;  %v468_v11 = vld [vmem:[%s4949_s19 + $0x190] sm:$0xff] }
 0x10c   : > { %v1250_v42 = vmul.f32 %v5195_v19, %v1004_v39  ;;  %v1251_v43 = vmul.f32 %v5198_v20, %v1004_v39  ;;  %v551_v44 = vpop.permute.xlu1 %550  ;;  %1131 = vperm.xlu0 %4621, %v463_v28   ;;  %v1642_v51 = vmax.f32 %v1514_v33, 0.0  ;;  %4396 = vmatprep.subr.bf16.mxu1 %v4395_v10 }
 0x10d   : > { %v848_v45 = vmul.f32 %v5186_v16, %v551_v44  ;;  %v849_v46 = vmul.f32 %v5189_v17, %v551_v44  ;;  %710 = vperm.xlu1 %4624, %v463_v28   ;;  %1949 = vmatmul.mubr.f32.gmra.mrb[20].mxu0 %v1640_v32  ;;  %v1517_v48 = vadd.f32 %v5205_v23, %v1377_v38  ;;  %v2428_v32 = vld [vmem:[%s6435_s5 + $0xd8] sm:$0xff] }
 0x10e   : > { %1954 = vmatprep.mubr.f32.mxu0 %v1643_v40  ;;  %v1516_v52 = vadd.f32 %v5202_v22, %v1376_v37  ;;  %4398 = vmatpush1.bf16.msra.mxu1 %v4397_v21  ;;  %v4399_v35 = vpack.c.bf16 %v2428_v32, %v2426_v31  ;;  %v2427_v37 = vld [vmem:[%s6435_s5 + $0xd0] sm:$0xff]  ;;  %v2433_v21 = vld [vmem:[%s6435_s5 + $0x100] sm:$0xff] }
 0x10f   : > { %v1378_v56 = vadd.f32 %v1250_v42, %v848_v45  ;;  %v1379_v57 = vadd.f32 %v1251_v43, %v849_v46  ;;  %v1008_v58 = vpop.permute.xlu0 %1007  ;;  %v1645_v59 = vmax.f32 %v1517_v48, 0.0  ;;  %v4401_v42 = vpack.c.bf16 %v2427_v37, %v2425_v36  ;;  %v3055_v46 = vld [vmem:[#allocation2 + $0x8] sm:$0xff]  ;;  %v469_v36 = vld [vmem:[%s4949_s19 + $0x198] sm:$0xff] }
 0x110   : > { %v1252_v61 = vmul.f32 %v5195_v19, %v1008_v58  ;;  %v1253_v62 = vmul.f32 %v5198_v20, %v1008_v58  ;;  %v556_v63 = vpop.permute.xlu1 %555  ;;  %1135 = vperm.xlu0 %4621, %v464_v47   ;;  %v1644_v8 = vmax.f32 %v1516_v52, 0.0  ;;  %4400 = vmatprep.subr.bf16.mxu1 %v4399_v35  ;;  %v2430_v52 = vld [vmem:[%s6435_s5 + $0xe8] sm:$0xff]  ;;  %v2429_v58 = vld [vmem:[%s6435_s5 + $0xe0] sm:$0xff] }
 0x111   : > { %v850_v0 = vmul.f32 %v5186_v16, %v556_v63  ;;  %v851_v1 = vmul.f32 %v5189_v17, %v556_v63  ;;  %715 = vperm.xlu1 %4624, %v464_v47   ;;  %1955 = vmatmul.mubr.f32.gmra.mrb[22].mxu0 %v1642_v51  ;;  %v1519_v4 = vadd.f32 %v5205_v23, %v1379_v57  ;;  %v3057_v47 = vld [vmem:[#allocation2 + $0x18] sm:$0xff] }
 0x112   : > { %1960 = vmatprep.mubr.f32.mxu0 %v1645_v59  ;;  %v1518_v9 = vadd.f32 %v5202_v22, %v1378_v56  ;;  %4402 = vmatpush1.bf16.msra.mxu1 %v4401_v42  ;;  %v4439_v56 = vpack.c.bf16 %v3057_v47, %v3055_v46  ;;  %v4403_v57 = vpack.c.bf16 %v2432_v53, %v2430_v52  ;;  %v2431_v59 = vld [vmem:[%s6435_s5 + $0xf0] sm:$0xff]  ;;  %v2437_v42 = vld [vmem:[%s6435_s5 + $0x120] sm:$0xff] }
 0x113   : > { %v1380_v13 = vadd.f32 %v1252_v61, %v850_v0  ;;  %v1381_v14 = vadd.f32 %v1253_v62, %v851_v1  ;;  %v1012_v15 = vpop.permute.xlu0 %1011  ;;  %v1647_v18 = vmax.f32 %v1519_v4, 0.0  ;;  %v3054_v0 = vld [vmem:[#allocation2] sm:$0xff]  ;;  %v3056_v1 = vld [vmem:[#allocation2 + $0x10] sm:$0xff] }
 0x114   : > { %v1254_v24 = vmul.f32 %v5195_v19, %v1012_v15  ;;  %v1255_v25 = vmul.f32 %v5198_v20, %v1012_v15  ;;  %v561_v26 = vpop.permute.xlu1 %560  ;;  %1139 = vperm.xlu0 %4621, %v465_v2   ;;  %v1646_v33 = vmax.f32 %v1518_v9, 0.0  ;;  %4440 = vmatprep.subr.bf16.mxu0 %v4439_v56 }
 0x115   : > { %v852_v27 = vmul.f32 %v5186_v16, %v561_v26  ;;  %v853_v28 = vmul.f32 %v5189_v17, %v561_v26  ;;  %720 = vperm.xlu1 %4624, %v465_v2   ;;  %1961 = vmatmul.mubr.f32.gmra.mrb[24].mxu0 %v1644_v8  ;;  %v1521_v30 = vadd.f32 %v5205_v23, %v1381_v14  ;;  %v2436_v14 = vld [vmem:[%s6435_s5 + $0x118] sm:$0xff] }
 0x116   : > { %1966 = vmatprep.mubr.f32.mxu0 %v1647_v18  ;;  %v1520_v34 = vadd.f32 %v5202_v22, %v1380_v13  ;;  %v4405_v2 = vpack.c.bf16 %v2431_v59, %v2429_v58  ;;  %v4441_v8 = vpack.c.bf16 %v3056_v1, %v3054_v0  ;;  %v2434_v13 = vld [vmem:[%s6435_s5 + $0x108] sm:$0xff]  ;;  %4404 = vmatprep.subr.bf16.mxu1 %v4403_v57  ;;  %v2444_v58 = vld [vmem:[%s6435_s5 + $0x158] sm:$0xff] }
 0x117   : > { %v1382_v38 = vadd.f32 %v1254_v24, %v852_v27  ;;  %v1383_v39 = vadd.f32 %v1255_v25, %v853_v28  ;;  %v1016_v40 = vpop.permute.xlu0 %1015  ;;  %v1649_v41 = vmax.f32 %v1521_v30, 0.0  ;;  %v4407_v18 = vpack.c.bf16 %v2436_v14, %v2434_v13  ;;  %v2435_v24 = vld [vmem:[%s6435_s5 + $0x110] sm:$0xff]  ;;  %v2442_v57 = vld [vmem:[%s6435_s5 + $0x148] sm:$0xff] }
 0x118   : > { %v1256_v43 = vmul.f32 %v5195_v19, %v1016_v40  ;;  %v1257_v44 = vmul.f32 %v5198_v20, %v1016_v40  ;;  %v566_v45 = vpop.permute.xlu1 %565  ;;  %1143 = vperm.xlu0 %4621, %v466_v29   ;;  %v1648_v54 = vmax.f32 %v1520_v34, 0.0  ;;  %4442 = vmatpush1.bf16.msra.mxu0 %v4441_v8  ;;  %v2446_v14 = vld [vmem:[%s6435_s5 + $0x168] sm:$0xff] }
 0x119   : > { %v854_v48 = vmul.f32 %v5186_v16, %v566_v45  ;;  %v855_v49 = vmul.f32 %v5189_v17, %v566_v45  ;;  %725 = vperm.xlu1 %4624, %v466_v29   ;;  %1967 = vmatmul.mubr.f32.gmra.mrb[26].mxu0 %v1646_v33  ;;  %v1523_v51 = vadd.f32 %v5205_v23, %v1383_v39  ;;  %v2440_v39 = vld [vmem:[%s6435_s5 + $0x138] sm:$0xff] }
 0x11a   : > { %1972 = vmatprep.mubr.f32.mxu0 %v1649_v41  ;;  %v1522_v55 = vadd.f32 %v5202_v22, %v1382_v38  ;;  %4406 = vmatpush1.bf16.msra.mxu1 %v4405_v2  ;;  %v4409_v33 = vpack.c.bf16 %v2435_v24, %v2433_v21  ;;  %v2438_v38 = vld [vmem:[%s6435_s5 + $0x128] sm:$0xff]  ;;  %v2445_v24 = vld [vmem:[%s6435_s5 + $0x160] sm:$0xff] }
 0x11b   : > { %v1384_v60 = vadd.f32 %v1256_v43, %v854_v48  ;;  %v1385_v61 = vadd.f32 %v1257_v44, %v855_v49  ;;  %v1020_v62 = vpop.permute.xlu0 %1019  ;;  %v1651_v63 = vmax.f32 %v1523_v51, 0.0  ;;  %4408 = vmatprep.subr.bf16.mxu1 %v4407_v18  ;;  %v4411_v41 = vpack.c.bf16 %v2440_v39, %v2438_v38  ;;  %v2439_v43 = vld [vmem:[%s6435_s5 + $0x130] sm:$0xff] }
 0x11c   : > { %v1258_v4 = vmul.f32 %v5195_v19, %v1020_v62  ;;  %v1259_v5 = vmul.f32 %v5198_v20, %v1020_v62  ;;  %v571_v7 = vpop.permute.xlu1 %570  ;;  %1147 = vperm.xlu0 %4621, %v467_v50   ;;  %v1650_v28 = vmax.f32 %v1522_v55, 0.0  ;;  %v4413_v52 = vpack.c.bf16 %v2439_v43, %v2437_v42  ;;  %v470_v55 = vld [vmem:[%s4949_s19 + $0x1a0] sm:$0xff]  ;;  %v2443_v62 = vld [vmem:[%s6435_s5 + $0x150] sm:$0xff]  ;;  %v2450_v43 = vld [vmem:[%s6435_s5 + $0x188] sm:$0xff] }
 0x11d   : > { %v856_v9 = vmul.f32 %v5186_v16, %v571_v7  ;;  %v857_v10 = vmul.f32 %v5189_v17, %v571_v7  ;;  %730 = vperm.xlu1 %4624, %v467_v50   ;;  %1973 = vmatmul.mubr.f32.gmra.mrb[28].mxu0 %v1648_v54  ;;  %v1525_v12 = vadd.f32 %v5205_v23, %v1385_v61  ;;  %v2441_v61 = vld [vmem:[%s6435_s5 + $0x140] sm:$0xff]  ;;  %v3060_v38 = vld [vmem:[#allocation2 + $0x30] sm:$0xff] }
 0x11e   : > { %1978 = vmatprep.mubr.f32.mxu0 %v1651_v63  ;;  %v1524_v15 = vadd.f32 %v5202_v22, %v1384_v60  ;;  %4410 = vmatpush1.bf16.msra.mxu1 %v4409_v33  ;;  %v4415_v60 = vpack.c.bf16 %v2444_v58, %v2442_v57 }
 0x11f   : > { %v1386_v25 = vadd.f32 %v1258_v4, %v856_v9  ;;  %v1387_v26 = vadd.f32 %v1259_v5, %v857_v10  ;;  %v1024_v27 = vpop.permute.xlu0 %1023  ;;  %v1653_v29 = vmax.f32 %v1525_v12, 0.0  ;;  %4412 = vmatprep.subr.bf16.mxu1 %v4411_v41  ;;  %v4417_v9 = vpack.c.bf16 %v2443_v62, %v2441_v61  ;;  %v471_v12 = vld [vmem:[%s4949_s19 + $0x1a8] sm:$0xff]  ;;  %v472_v41 = vld [vmem:[%s4949_s19 + $0x1b0] sm:$0xff]  ;;  %v473_v61 = vld [vmem:[%s4949_s19 + $0x1b8] sm:$0xff] }
 0x120   : > { %v1260_v30 = vmul.f32 %v5195_v19, %v1024_v27  ;;  %v1261_v31 = vmul.f32 %v5198_v20, %v1024_v27  ;;  %v576_v32 = vpop.permute.xlu1 %575  ;;  %1151 = vperm.xlu0 %4621, %v468_v11   ;;  %v1652_v40 = vmax.f32 %v1524_v15, 0.0  ;;  %v2448_v15 = vld [vmem:[%s6435_s5 + $0x178] sm:$0xff] }
 0x121   : > { %v858_v34 = vmul.f32 %v5186_v16, %v576_v32  ;;  %v859_v35 = vmul.f32 %v5189_v17, %v576_v32  ;;  %735 = vperm.xlu1 %4624, %v468_v11   ;;  %1979 = vmatmul.mubr.f32.gmra.mrb[30].mxu0 %v1650_v28  ;;  %v1527_v37 = vadd.f32 %v5205_v23, %v1387_v26  ;;  %v3058_v32 = vld [vmem:[#allocation2 + $0x20] sm:$0xff] }
 0x122   : > { %1984 = vmatprep.mubr.f32.mxu0 %v1653_v29  ;;  %v1526_v48 = vadd.f32 %v5202_v22, %v1386_v25  ;;  %4414 = vmatpush1.bf16.msra.mxu1 %v4413_v52  ;;  %v2447_v25 = vld [vmem:[%s6435_s5 + $0x170] sm:$0xff]  ;;  %v4419_v33 = vpack.c.bf16 %v2448_v15, %v2446_v14 }
 0x123   : > { %v1388_v44 = vadd.f32 %v1260_v30, %v858_v34  ;;  %v1389_v45 = vadd.f32 %v1261_v31, %v859_v35  ;;  %v1028_v46 = vpop.permute.xlu0 %1027  ;;  %v1655_v47 = vmax.f32 %v1527_v37, 0.0  ;;  %4416 = vmatprep.subr.bf16.mxu1 %v4415_v60  ;;  %v3059_v30 = vld [vmem:[#allocation2 + $0x28] sm:$0xff]  ;;  %v3061_v31 = vld [vmem:[#allocation2 + $0x38] sm:$0xff] }
 0x124   : > { %v1262_v49 = vmul.f32 %v5195_v19, %v1028_v46  ;;  %v1263_v50 = vmul.f32 %v5198_v20, %v1028_v46  ;;  %v581_v51 = vpop.permute.xlu1 %580  ;;  %1155 = vperm.xlu0 %4621, %v469_v36   ;;  %v1654_v2 = vmax.f32 %v1526_v48, 0.0  ;;  %v4443_v37 = vpack.c.bf16 %v3061_v31, %v3059_v30 }
 0x125   : > { %v860_v53 = vmul.f32 %v5186_v16, %v581_v51  ;;  %v861_v54 = vmul.f32 %v5189_v17, %v581_v51  ;;  %740 = vperm.xlu1 %4624, %v469_v36   ;;  %1985 = vmatmul.mubr.f32.gmra.mrb[32].mxu0 %v1652_v40  ;;  %v1529_v56 = vadd.f32 %v5205_v23, %v1389_v45 }
 0x126   : > { %1990 = vmatprep.mubr.f32.mxu0 %v1655_v47  ;;  %v1528_v59 = vadd.f32 %v5202_v22, %v1388_v44  ;;  %4418 = vmatpush1.bf16.msra.mxu1 %v4417_v9  ;;  %v2452_v44 = vld [vmem:[%s6435_s5 + $0x198] sm:$0xff]  ;;  %v4445_v47 = vpack.c.bf16 %v3060_v38, %v3058_v32  ;;  %v4421_v48 = vpack.c.bf16 %v2447_v25, %v2445_v24  ;;  %v474_v24 = vld [vmem:[%s4949_s19 + $0x1c0] sm:$0xff] }
 0x127   : > { %v1390_v63 = vadd.f32 %v1262_v49, %v860_v53  ;;  %v1391_v0 = vadd.f32 %v1263_v50, %v861_v54  ;;  %v1032_v1 = vpop.permute.xlu0 %1031  ;;  %v1657_v4 = vmax.f32 %v1529_v56, 0.0  ;;  %4444 = vmatprep.subr.bf16.mxu0 %v4443_v37  ;;  %4420 = vmatprep.subr.bf16.mxu1 %v4419_v33  ;;  %v4423_v53 = vpack.c.bf16 %v2452_v44, %v2450_v43  ;;  %v2449_v54 = vld [vmem:[%s6435_s5 + $0x180] sm:$0xff]  ;;  %v2459_v37 = vld [vmem:[%s6435_s5 + $0x1d0] sm:$0xff]  ;;  %v475_v43 = vld [vmem:[%s4949_s19 + $0x1c8] sm:$0xff] }
 0x128   : > { %v1264_v5 = vmul.f32 %v5195_v19, %v1032_v1  ;;  %v1265_v7 = vmul.f32 %v5198_v20, %v1032_v1  ;;  %v586_v8 = vpop.permute.xlu1 %585  ;;  %1159 = vperm.xlu0 %4621, %v470_v55   ;;  %v1656_v18 = vmax.f32 %v1528_v59, 0.0  ;;  %4446 = vmatpush1.bf16.msra.mxu0 %v4445_v47 }
 0x129   : > { %v862_v10 = vmul.f32 %v5186_v16, %v586_v8  ;;  %v863_v11 = vmul.f32 %v5189_v17, %v586_v8  ;;  %745 = vperm.xlu1 %4624, %v470_v55   ;;  %1991 = vmatmul.mubr.f32.gmra.mrb[34].mxu0 %v1654_v2  ;;  %v1531_v13 = vadd.f32 %v5205_v23, %v1391_v0  ;;  %v2451_v55 = vld [vmem:[%s6435_s5 + $0x190] sm:$0xff]  ;;  %v2456_v0 = vld [vmem:[%s6435_s5 + $0x1b8] sm:$0xff] }
 0x12a   : > { %1996 = vmatprep.mubr.f32.mxu0 %v1657_v4  ;;  %v1530_v21 = vadd.f32 %v5202_v22, %v1390_v63  ;;  %v2454_v63 = vld [vmem:[%s6435_s5 + $0x1a8] sm:$0xff]  ;;  %4422 = vmatpush1.bf16.msra.mxu1 %v4421_v48  ;;  %v4425_v4 = vpack.c.bf16 %v2451_v55, %v2449_v54 }
 0x12b   : > { %v1392_v26 = vadd.f32 %v1264_v5, %v862_v10  ;;  %v1393_v27 = vadd.f32 %v1265_v7, %v863_v11  ;;  %v1036_v28 = vpop.permute.xlu0 %1035  ;;  %v1659_v29 = vmax.f32 %v1531_v13, 0.0  ;;  %4424 = vmatprep.subr.bf16.mxu1 %v4423_v53  ;;  %v4427_v10 = vpack.c.bf16 %v2456_v0, %v2454_v63  ;;  %v2453_v11 = vld [vmem:[%s6435_s5 + $0x1a0] sm:$0xff]  ;;  %v3064_v0 = vld [vmem:[#allocation2 + $0x50] sm:$0xff] }
 0x12c   : > { %v1266_v34 = vmul.f32 %v5195_v19, %v1036_v28  ;;  %v1267_v35 = vmul.f32 %v5198_v20, %v1036_v28  ;;  %v591_v36 = vpop.permute.xlu1 %590  ;;  %1163 = vperm.xlu0 %4621, %v471_v12   ;;  %v1658_v45 = vmax.f32 %v1530_v21, 0.0 }
 0x12d   : > { %v864_v39 = vmul.f32 %v5186_v16, %v591_v36  ;;  %v865_v40 = vmul.f32 %v5189_v17, %v591_v36  ;;  %750 = vperm.xlu1 %4624, %v471_v12   ;;  %1997 = vmatmul.mubr.f32.gmra.mrb[36].mxu0 %v1656_v18  ;;  %v1533_v42 = vadd.f32 %v5205_v23, %v1393_v27  ;;  %v2455_v12 = vld [vmem:[%s6435_s5 + $0x1b0] sm:$0xff]  ;;  %v2460_v27 = vld [vmem:[%s6435_s5 + $0x1d8] sm:$0xff]  ;;  %v2457_v36 = vld [vmem:[%s6435_s5 + $0x1c0] sm:$0xff] }
 0x12e   : > { %2002 = vmatprep.mubr.f32.mxu0 %v1659_v29  ;;  %v1532_v46 = vadd.f32 %v5202_v22, %v1392_v26  ;;  %v2458_v26 = vld [vmem:[%s6435_s5 + $0x1c8] sm:$0xff]  ;;  %4426 = vmatpush1.bf16.msra.mxu1 %v4425_v4  ;;  %v4429_v30 = vpack.c.bf16 %v2455_v12, %v2453_v11  ;;  %v476_v4 = vld [vmem:[%s4949_s19 + $0x1d0] sm:$0xff] }
 0x12f   : > { %v1394_v49 = vadd.f32 %v1266_v34, %v864_v39  ;;  %v1395_v50 = vadd.f32 %v1267_v35, %v865_v40  ;;  %v1040_v51 = vpop.permute.xlu0 %1039  ;;  %v1661_v52 = vmax.f32 %v1533_v42, 0.0  ;;  %4428 = vmatprep.subr.bf16.mxu1 %v4427_v10  ;;  %v4431_v35 = vpack.c.bf16 %v2460_v27, %v2458_v26  ;;  %v477_v26 = vld [vmem:[%s4949_s19 + $0x1d8] sm:$0xff] }
 0x130   : > { %v1268_v56 = vmul.f32 %v5195_v19, %v1040_v51  ;;  %v1269_v57 = vmul.f32 %v5198_v20, %v1040_v51  ;;  %v596_v58 = vpop.permute.xlu1 %595  ;;  %1167 = vperm.xlu0 %4621, %v472_v41   ;;  %v1660_v1 = vmax.f32 %v1532_v46, 0.0  ;;  %v2464_v46 = vld [vmem:[%s6435_s5 + $0x1f8] sm:$0xff]  ;;  %v2463_v51 = vld [vmem:[%s6435_s5 + $0x1f0] sm:$0xff] }
 0x131   : > { %v866_v59 = vmul.f32 %v5186_v16, %v596_v58  ;;  %v867_v60 = vmul.f32 %v5189_v17, %v596_v58  ;;  %755 = vperm.xlu1 %4624, %v472_v41   ;;  %2003 = vmatmul.mubr.f32.gmra.mrb[38].mxu0 %v1658_v45  ;;  %v1535_v62 = vadd.f32 %v5205_v23, %v1395_v50  ;;  %v2462_v45 = vld [vmem:[%s6435_s5 + $0x1e8] sm:$0xff]  ;;  %v2461_v50 = vld [vmem:[%s6435_s5 + $0x1e0] sm:$0xff] }
 0x132   : > { %2008 = vmatprep.mubr.f32.mxu0 %v1661_v52  ;;  %v1534_v2 = vadd.f32 %v5202_v22, %v1394_v49  ;;  %4430 = vmatpush1.bf16.msra.mxu1 %v4429_v30  ;;  %v4433_v49 = vpack.c.bf16 %v2459_v37, %v2457_v36  ;;  %v3062_v58 = vld [vmem:[#allocation2 + $0x40] sm:$0xff] }
 0x133   : > { %v1396_v5 = vadd.f32 %v1268_v56, %v866_v59  ;;  %v1397_v7 = vadd.f32 %v1269_v57, %v867_v60  ;;  %v1044_v8 = vpop.permute.xlu0 %1043  ;;  %v1663_v9 = vmax.f32 %v1535_v62, 0.0  ;;  %4432 = vmatprep.subr.bf16.mxu1 %v4431_v35  ;;  %v3063_v56 = vld [vmem:[#allocation2 + $0x48] sm:$0xff]  ;;  %v3065_v57 = vld [vmem:[#allocation2 + $0x58] sm:$0xff]  ;;  %v4435_v59 = vpack.c.bf16 %v2464_v46, %v2462_v45 }
 0x134   : > { %v1270_v13 = vmul.f32 %v5195_v19, %v1044_v8  ;;  %v1271_v14 = vmul.f32 %v5198_v20, %v1044_v8  ;;  %v601_v15 = vpop.permute.xlu1 %600  ;;  %1171 = vperm.xlu0 %4621, %v473_v61   ;;  %v1662_v28 = vmax.f32 %v1534_v2, 0.0  ;;  %v4447_v63 = vpack.c.bf16 %v3065_v57, %v3063_v56 }
 0x135   : > { %v868_v18 = vmul.f32 %v5186_v16, %v601_v15  ;;  %v869_v21 = vmul.f32 %v5189_v17, %v601_v15  ;;  %760 = vperm.xlu1 %4624, %v473_v61   ;;  %2009 = vmatmul.mubr.f32.gmra.mrb[40].mxu0 %v1660_v1  ;;  %v1537_v25 = vadd.f32 %v5205_v23, %v1397_v7 }
 0x136   : > { %2014 = vmatprep.mubr.f32.mxu0 %v1663_v9  ;;  %v1536_v29 = vadd.f32 %v5202_v22, %v1396_v5  ;;  %4434 = vmatpush1.bf16.msra.mxu1 %v4433_v49  ;;  %v4449_v8 = vpack.c.bf16 %v3064_v0, %v3062_v58  ;;  %v4437_v9 = vpack.c.bf16 %v2463_v51, %v2461_v50 }
 0x137   : > { %v1398_v31 = vadd.f32 %v1270_v13, %v868_v18  ;;  %v1399_v32 = vadd.f32 %v1271_v14, %v869_v21  ;;  %v1048_v33 = vpop.permute.xlu0 %1047  ;;  %v1665_v34 = vmax.f32 %v1537_v25, 0.0  ;;  %4448 = vmatprep.subr.bf16.mxu0 %v4447_v63  ;;  %4436 = vmatprep.subr.bf16.mxu1 %v4435_v59 }
 0x138   : > { %v1272_v38 = vmul.f32 %v5195_v19, %v1048_v33  ;;  %v1273_v39 = vmul.f32 %v5198_v20, %v1048_v33  ;;  %v606_v40 = vpop.permute.xlu1 %605  ;;  %1175 = vperm.xlu0 %4621, %v474_v24   ;;  %v1664_v47 = vmax.f32 %v1536_v29, 0.0  ;;  %4450 = vmatpush1.bf16.msra.mxu0 %v4449_v8  ;;  %v480_v8 = vld [vmem:[%s4949_s19 + $0x1f0] sm:$0xff] }
 0x139   : > { %v870_v41 = vmul.f32 %v5186_v16, %v606_v40  ;;  %v871_v42 = vmul.f32 %v5189_v17, %v606_v40  ;;  %765 = vperm.xlu1 %4624, %v474_v24   ;;  %2015 = vmatmul.mubr.f32.gmra.mrb[42].mxu0 %v1662_v28  ;;  %v1539_v44 = vadd.f32 %v5205_v23, %v1399_v32 }
 0x13a   : > { %2020 = vmatprep.mubr.f32.mxu0 %v1665_v34  ;;  %v1538_v48 = vadd.f32 %v5202_v22, %v1398_v31  ;;  %4438 = vmatpush1.bf16.msra.mxu1 %v4437_v9 }
 0x13b   : > { %v1400_v52 = vadd.f32 %v1272_v38, %v870_v41  ;;  %v1401_v53 = vadd.f32 %v1273_v39, %v871_v42  ;;  %v1052_v54 = vpop.permute.xlu0 %1051  ;;  %v1667_v55 = vmax.f32 %v1539_v44, 0.0  ;;  %v478_v39 = vld [vmem:[%s4949_s19 + $0x1e0] sm:$0xff] }
 0x13c   : > { %v1274_v60 = vmul.f32 %v5195_v19, %v1052_v54  ;;  %v1275_v61 = vmul.f32 %v5198_v20, %v1052_v54  ;;  %v611_v62 = vpop.permute.xlu1 %610  ;;  %1179 = vperm.xlu0 %4621, %v475_v43   ;;  %v1666_v7 = vmax.f32 %v1538_v48, 0.0 }
 0x13d   : > { %v872_v1 = vmul.f32 %v5186_v16, %v611_v62  ;;  %v873_v2 = vmul.f32 %v5189_v17, %v611_v62  ;;  %770 = vperm.xlu1 %4624, %v475_v43   ;;  %2021 = vmatmul.mubr.f32.gmra.mrb[44].mxu0 %v1664_v47  ;;  %v1541_v5 = vadd.f32 %v5205_v23, %v1401_v53 }
 0x13e   : > { %2026 = vmatprep.mubr.f32.mxu0 %v1667_v55  ;;  %v1540_v14 = vadd.f32 %v5202_v22, %v1400_v52  ;;  %v479_v52 = vld [vmem:[%s4949_s19 + $0x1e8] sm:$0xff] }
 0x13f   : > { %v1402_v10 = vadd.f32 %v1274_v60, %v872_v1  ;;  %v1403_v11 = vadd.f32 %v1275_v61, %v873_v2  ;;  %v1056_v12 = vpop.permute.xlu0 %1055  ;;  %v1669_v13 = vmax.f32 %v1541_v5, 0.0  ;;  %v3067_v60 = vld [vmem:[#allocation2 + $0x68] sm:$0xff]  ;;  %v3069_v61 = vld [vmem:[#allocation2 + $0x78] sm:$0xff]  ;;  %v3066_v2 = vld [vmem:[#allocation2 + $0x60] sm:$0xff] }
 0x140   : > { %v1276_v15 = vmul.f32 %v5195_v19, %v1056_v12  ;;  %v1277_v18 = vmul.f32 %v5198_v20, %v1056_v12  ;;  %v616_v21 = vpop.permute.xlu1 %615  ;;  %1183 = vperm.xlu0 %4621, %v476_v4   ;;  %v1668_v32 = vmax.f32 %v1540_v14, 0.0  ;;  %v4451_v1 = vpack.c.bf16 %v3069_v61, %v3067_v60  ;;  %v3071_v60 = vld [vmem:[#allocation2 + $0x88] sm:$0xff]  ;;  %v3073_v61 = vld [vmem:[#allocation2 + $0x98] sm:$0xff] }
 0x141   : > { %v874_v24 = vmul.f32 %v5186_v16, %v616_v21  ;;  %v875_v25 = vmul.f32 %v5189_v17, %v616_v21  ;;  %775 = vperm.xlu1 %4624, %v476_v4   ;;  %2027 = vmatmul.mubr.f32.gmra.mrb[46].mxu0 %v1666_v7  ;;  %v1543_v27 = vadd.f32 %v5205_v23, %v1403_v11  ;;  %v3068_v4 = vld [vmem:[#allocation2 + $0x70] sm:$0xff] }
 0x142   : > { %2032 = vmatprep.mubr.f32.mxu0 %v1669_v13  ;;  %v1542_v28 = vadd.f32 %v5202_v22, %v1402_v10  ;;  %4452 = vmatprep.subr.bf16.mxu0 %v4451_v1  ;;  %v4453_v11 = vpack.c.bf16 %v3068_v4, %v3066_v2  ;;  %v4455_v1 = vpack.c.bf16 %v3073_v61, %v3071_v60  ;;  %v3070_v2 = vld [vmem:[#allocation2 + $0x80] sm:$0xff]  ;;  %v3072_v4 = vld [vmem:[#allocation2 + $0x90] sm:$0xff] }
 0x143   : > { %v1404_v29 = vadd.f32 %v1276_v15, %v874_v24  ;;  %v1405_v30 = vadd.f32 %v1277_v18, %v875_v25  ;;  %v1060_v31 = vpop.permute.xlu0 %1059  ;;  %v1671_v33 = vmax.f32 %v1543_v27, 0.0 }
 0x144   : > { %v1278_v34 = vmul.f32 %v5195_v19, %v1060_v31  ;;  %v1279_v35 = vmul.f32 %v5198_v20, %v1060_v31  ;;  %v621_v36 = vpop.permute.xlu1 %620  ;;  %1187 = vperm.xlu0 %4621, %v477_v26   ;;  %v1670_v41 = vmax.f32 %v1542_v28, 0.0  ;;  %4454 = vmatpush1.bf16.msra.mxu0 %v4453_v11  ;;  %v481_v28 = vld [vmem:[%s4949_s19 + $0x1f8] sm:$0xff]  ;;  %s6381_s19 = scalar_lea.hbm %s6441_s11, %s4310_s14 }
 0x145   : > { %v876_v37 = vmul.f32 %v5186_v16, %v621_v36  ;;  %v877_v38 = vmul.f32 %v5189_v17, %v621_v36  ;;  %780 = vperm.xlu1 %4624, %v477_v26   ;;  %2033 = vmatmul.mubr.f32.gmra.mrb[48].mxu0 %v1668_v32  ;;  %v1545_v40 = vadd.f32 %v5205_v23, %v1405_v30 }
 0x146   : > { %2038 = vmatprep.mubr.f32.mxu0 %v1671_v33  ;;  %v1544_v46 = vadd.f32 %v5202_v22, %v1404_v29  ;;  %4456 = vmatprep.subr.bf16.mxu0 %v4455_v1  ;;  %v3076_v1 = vld [vmem:[#allocation2 + $0xb0] sm:$0xff] }
 0x147   : > { %v1406_v42 = vadd.f32 %v1278_v34, %v876_v37  ;;  %v1407_v43 = vadd.f32 %v1279_v35, %v877_v38  ;;  %v1064_v44 = vpop.permute.xlu0 %1063  ;;  %v1673_v45 = vmax.f32 %v1545_v40, 0.0 }
 0x148   : > { %v1280_v47 = vmul.f32 %v5195_v19, %v1064_v44  ;;  %v1281_v48 = vmul.f32 %v5198_v20, %v1064_v44  ;;  %v626_v49 = vpop.permute.xlu1 %625  ;;  %1191 = vperm.xlu0 %4621, %v478_v39   ;;  %v1672_v58 = vmax.f32 %v1544_v46, 0.0 }
 0x149   : > { %v878_v50 = vmul.f32 %v5186_v16, %v626_v49  ;;  %v879_v51 = vmul.f32 %v5189_v17, %v626_v49  ;;  %785 = vperm.xlu1 %4624, %v478_v39   ;;  %2039 = vmatmul.mubr.f32.gmra.mrb[50].mxu0 %v1670_v41  ;;  %v1547_v53 = vadd.f32 %v5205_v23, %v1407_v43 }
 0x14a   : > { %2044 = vmatprep.mubr.f32.mxu0 %v1673_v45  ;;  %v1546_v54 = vadd.f32 %v5202_v22, %v1406_v42 }
 0x14b   : > { %v1408_v55 = vadd.f32 %v1280_v47, %v878_v50  ;;  %v1409_v56 = vadd.f32 %v1281_v48, %v879_v51  ;;  %v1068_v57 = vpop.permute.xlu0 %1067  ;;  %v1675_v59 = vmax.f32 %v1547_v53, 0.0 }
 0x14c   : > { %v1282_v62 = vmul.f32 %v5195_v19, %v1068_v57  ;;  %v1283_v63 = vmul.f32 %v5198_v20, %v1068_v57  ;;  %v631_v0 = vpop.permute.xlu1 %630  ;;  %1195 = vperm.xlu0 %4621, %v479_v52   ;;  %v1674_v10 = vmax.f32 %v1546_v54, 0.0 }
 0x14d   : > { %v880_v5 = vmul.f32 %v5186_v16, %v631_v0  ;;  %v881_v7 = vmul.f32 %v5189_v17, %v631_v0  ;;  %790 = vperm.xlu1 %4624, %v479_v52   ;;  %2045 = vmatmul.mubr.f32.gmra.mrb[52].mxu0 %v1672_v58  ;;  %v1549_v9 = vadd.f32 %v5205_v23, %v1409_v56 }
 0x14e   : > { %2050 = vmatprep.mubr.f32.mxu0 %v1675_v59  ;;  %v1548_v18 = vadd.f32 %v5202_v22, %v1408_v55 }
 0x14f   : > { %v1410_v12 = vadd.f32 %v1282_v62, %v880_v5  ;;  %v1411_v13 = vadd.f32 %v1283_v63, %v881_v7  ;;  %v1072_v14 = vpop.permute.xlu0 %1071  ;;  %v1677_v15 = vmax.f32 %v1549_v9, 0.0 }
 0x150   : > { %v1284_v21 = vmul.f32 %v5195_v19, %v1072_v14  ;;  %v1285_v24 = vmul.f32 %v5198_v20, %v1072_v14  ;;  %v636_v25 = vpop.permute.xlu1 %635  ;;  %1199 = vperm.xlu0 %4621, %v480_v8   ;;  %v1676_v34 = vmax.f32 %v1548_v18, 0.0 }
 0x151   : > { %v882_v26 = vmul.f32 %v5186_v16, %v636_v25  ;;  %v883_v27 = vmul.f32 %v5189_v17, %v636_v25  ;;  %795 = vperm.xlu1 %4624, %v480_v8   ;;  %2051 = vmatmul.mubr.f32.gmra.mrb[54].mxu0 %v1674_v10  ;;  %v1551_v29 = vadd.f32 %v5205_v23, %v1411_v13 }
 0x152   : > { %2056 = vmatprep.mubr.f32.mxu0 %v1677_v15  ;;  %v1550_v30 = vadd.f32 %v5202_v22, %v1410_v12  ;;  %v4457_v10 = vpack.c.bf16 %v3072_v4, %v3070_v2 }
 0x153   : > { %v1412_v31 = vadd.f32 %v1284_v21, %v882_v26  ;;  %v1413_v32 = vadd.f32 %v1285_v24, %v883_v27  ;;  %v1076_v33 = vpop.permute.xlu0 %1075  ;;  %v1679_v35 = vmax.f32 %v1551_v29, 0.0 }
 0x154   : > { %v1286_v36 = vmul.f32 %v5195_v19, %v1076_v33  ;;  %v1287_v37 = vmul.f32 %v5198_v20, %v1076_v33  ;;  %v641_v38 = vpop.permute.xlu1 %640  ;;  %1203 = vperm.xlu0 %4621, %v481_v28   ;;  %v1678_v42 = vmax.f32 %v1550_v30, 0.0  ;;  %4458 = vmatpush1.bf16.msra.mxu0 %v4457_v10 }
 0x155   : > { %v884_v39 = vmul.f32 %v5186_v16, %v641_v38  ;;  %v885_v40 = vmul.f32 %v5189_v17, %v641_v38  ;;  %800 = vperm.xlu1 %4624, %v481_v28   ;;  %2057 = vmatmul.mubr.f32.gmra.mrb[56].mxu0 %v1676_v34  ;;  %v1553_v41 = vadd.f32 %v5205_v23, %v1413_v32 }
 0x156   : > { %2062 = vmatprep.mubr.f32.mxu0 %v1679_v35  ;;  %v1552_v47 = vadd.f32 %v5202_v22, %v1412_v31 }
 0x157   : > { %v1414_v43 = vadd.f32 %v1286_v36, %v884_v39  ;;  %v1415_v44 = vadd.f32 %v1287_v37, %v885_v40  ;;  %v1080_v45 = vpop.permute.xlu0 %1079  ;;  %v1681_v46 = vmax.f32 %v1553_v41, 0.0 }
 0x158   : > { %v1288_v48 = vmul.f32 %v5195_v19, %v1080_v45  ;;  %v1289_v49 = vmul.f32 %v5198_v20, %v1080_v45  ;;  %v646_v50 = vpop.permute.xlu1 %645  ;;  %v1680_v58 = vmax.f32 %v1552_v47, 0.0 }
 0x159   : > { %v886_v51 = vmul.f32 %v5186_v16, %v646_v50  ;;  %v887_v52 = vmul.f32 %v5189_v17, %v646_v50  ;;  %2063 = vmatmul.mubr.f32.gmra.mrb[58].mxu0 %v1678_v42  ;;  %v1555_v53 = vadd.f32 %v5205_v23, %v1415_v44  ;;  %v1554_v54 = vadd.f32 %v5202_v22, %v1414_v43 }
 0x15a   : > { %2068 = vmatprep.mubr.f32.mxu0 %v1681_v46 }
 0x15b   : > { %v1416_v55 = vadd.f32 %v1288_v48, %v886_v51  ;;  %v1417_v56 = vadd.f32 %v1289_v49, %v887_v52  ;;  %v1084_v57 = vpop.permute.xlu0 %1083  ;;  %v1683_v59 = vmax.f32 %v1555_v53, 0.0  ;;  %v1682_v9 = vmax.f32 %v1554_v54, 0.0 }
 0x15c   : > { %v1290_v62 = vmul.f32 %v5195_v19, %v1084_v57  ;;  %v1291_v63 = vmul.f32 %v5198_v20, %v1084_v57  ;;  %v651_v0 = vpop.permute.xlu1 %650 }
 0x15d   : > { %v888_v5 = vmul.f32 %v5186_v16, %v651_v0  ;;  %v889_v7 = vmul.f32 %v5189_v17, %v651_v0  ;;  %2069 = vmatmul.mubr.f32.gmra.mrb[60].mxu0 %v1680_v58  ;;  %v1557_v8 = vadd.f32 %v5205_v23, %v1417_v56  ;;  %v1556_v15 = vadd.f32 %v5202_v22, %v1416_v55  ;;  %v3075_v58 = vld [vmem:[#allocation2 + $0xa8] sm:$0xff]  ;;  %v3074_v0 = vld [vmem:[#allocation2 + $0xa0] sm:$0xff] }
 0x15e   : > { %2074 = vmatprep.mubr.f32.mxu0 %v1683_v59  ;;  %v3077_v59 = vld [vmem:[#allocation2 + $0xb8] sm:$0xff] }
 0x15f   : > { %v1418_v11 = vadd.f32 %v1290_v62, %v888_v5  ;;  %v1419_v12 = vadd.f32 %v1291_v63, %v889_v7  ;;  %v1088_v13 = vpop.permute.xlu0 %1087  ;;  %v1685_v14 = vmax.f32 %v1557_v8, 0.0  ;;  %v1684_v32 = vmax.f32 %v1556_v15, 0.0 }
 0x160   : > { %v1292_v18 = vmul.f32 %v5195_v19, %v1088_v13  ;;  %v1293_v21 = vmul.f32 %v5198_v20, %v1088_v13  ;;  %v656_v24 = vpop.permute.xlu1 %655  ;;  %v4459_v63 = vpack.c.bf16 %v3077_v59, %v3075_v58  ;;  %v4461_v8 = vpack.c.bf16 %v3076_v1, %v3074_v0 }
 0x161   : > { %v890_v25 = vmul.f32 %v5186_v16, %v656_v24  ;;  %v891_v26 = vmul.f32 %v5189_v17, %v656_v24  ;;  %2075 = vmatmul.mubr.f32.gmra.mrb[62].mxu0 %v1682_v9  ;;  %v1559_v27 = vadd.f32 %v5205_v23, %v1419_v12  ;;  %v1558_v28 = vadd.f32 %v5202_v22, %v1418_v11 }
 0x162   : > { %2080 = vmatprep.mubr.f32.mxu0 %v1685_v14  ;;  %4460 = vmatprep.subr.bf16.mxu0 %v4459_v63  ;;  %v3080_v63 = vld [vmem:[#allocation2 + $0xd0] sm:$0xff] }
 0x163   : > { %v1420_v29 = vadd.f32 %v1292_v18, %v890_v25  ;;  %v1421_v30 = vadd.f32 %v1293_v21, %v891_v26  ;;  %v1092_v31 = vpop.permute.xlu0 %1091  ;;  %v1687_v33 = vmax.f32 %v1559_v27, 0.0  ;;  %v1686_v40 = vmax.f32 %v1558_v28, 0.0  ;;  %4462 = vmatpush1.bf16.msra.mxu0 %v4461_v8 }
 0x164   : > { %v1294_v34 = vmul.f32 %v5195_v19, %v1092_v31  ;;  %v1295_v35 = vmul.f32 %v5198_v20, %v1092_v31  ;;  %v661_v36 = vpop.permute.xlu1 %660 }
 0x165   : > { %v892_v37 = vmul.f32 %v5186_v16, %v661_v36  ;;  %v893_v38 = vmul.f32 %v5189_v17, %v661_v36  ;;  %2081 = vmatmul.mubr.f32.gmra.mrb[64].mxu0 %v1684_v32  ;;  %v1561_v39 = vadd.f32 %v5205_v23, %v1421_v30  ;;  %v1560_v45 = vadd.f32 %v5202_v22, %v1420_v29 }
 0x166   : > { %2086 = vmatprep.mubr.f32.mxu0 %v1687_v33 }
 0x167   : > { %v1422_v41 = vadd.f32 %v1294_v34, %v892_v37  ;;  %v1423_v42 = vadd.f32 %v1295_v35, %v893_v38  ;;  %v1096_v43 = vpop.permute.xlu0 %1095  ;;  %v1689_v44 = vmax.f32 %v1561_v39, 0.0  ;;  %v1688_v56 = vmax.f32 %v1560_v45, 0.0 }
 0x168   : > { %v1296_v46 = vmul.f32 %v5195_v19, %v1096_v43  ;;  %v1297_v47 = vmul.f32 %v5198_v20, %v1096_v43  ;;  %v666_v48 = vpop.permute.xlu1 %665 }
 0x169   : > { %v894_v49 = vmul.f32 %v5186_v16, %v666_v48  ;;  %v895_v50 = vmul.f32 %v5189_v17, %v666_v48  ;;  %2087 = vmatmul.mubr.f32.gmra.mrb[66].mxu0 %v1686_v40  ;;  %v1563_v51 = vadd.f32 %v5205_v23, %v1423_v42  ;;  %v1562_v52 = vadd.f32 %v5202_v22, %v1422_v41 }
 0x16a   : > { %2092 = vmatprep.mubr.f32.mxu0 %v1689_v44 }
 0x16b   : > { %v1424_v53 = vadd.f32 %v1296_v46, %v894_v49  ;;  %v1425_v54 = vadd.f32 %v1297_v47, %v895_v50  ;;  %v1100_v55 = vpop.permute.xlu0 %1099  ;;  %v1691_v57 = vmax.f32 %v1563_v51, 0.0  ;;  %v1690_v7 = vmax.f32 %v1562_v52, 0.0 }
 0x16c   : > { %v1298_v60 = vmul.f32 %v5195_v19, %v1100_v55  ;;  %v1299_v61 = vmul.f32 %v5198_v20, %v1100_v55  ;;  %v671_v62 = vpop.permute.xlu1 %670 }
 0x16d   : > { %v896_v2 = vmul.f32 %v5186_v16, %v671_v62  ;;  %v897_v4 = vmul.f32 %v5189_v17, %v671_v62  ;;  %2093 = vmatmul.mubr.f32.gmra.mrb[68].mxu0 %v1688_v56  ;;  %v1565_v5 = vadd.f32 %v5205_v23, %v1425_v54  ;;  %v1564_v13 = vadd.f32 %v5202_v22, %v1424_v53  ;;  %v3079_v56 = vld [vmem:[#allocation2 + $0xc8] sm:$0xff]  ;;  %v3078_v62 = vld [vmem:[#allocation2 + $0xc0] sm:$0xff] }
 0x16e   : > { %2098 = vmatprep.mubr.f32.mxu0 %v1691_v57  ;;  %v3081_v57 = vld [vmem:[#allocation2 + $0xd8] sm:$0xff] }
 0x16f   : > { %v1426_v9 = vadd.f32 %v1298_v60, %v896_v2  ;;  %v1427_v10 = vadd.f32 %v1299_v61, %v897_v4  ;;  %v1104_v11 = vpop.permute.xlu0 %1103  ;;  %v1693_v12 = vmax.f32 %v1565_v5, 0.0  ;;  %v1692_v30 = vmax.f32 %v1564_v13, 0.0 }
 0x170   : > { %v1300_v14 = vmul.f32 %v5195_v19, %v1104_v11  ;;  %v1301_v15 = vmul.f32 %v5198_v20, %v1104_v11  ;;  %v676_v18 = vpop.permute.xlu1 %675  ;;  %v4463_v61 = vpack.c.bf16 %v3081_v57, %v3079_v56  ;;  %v4465_v5 = vpack.c.bf16 %v3080_v63, %v3078_v62 }
 0x171   : > { %v898_v21 = vmul.f32 %v5186_v16, %v676_v18  ;;  %v899_v24 = vmul.f32 %v5189_v17, %v676_v18  ;;  %2099 = vmatmul.mubr.f32.gmra.mrb[70].mxu0 %v1690_v7  ;;  %v1567_v25 = vadd.f32 %v5205_v23, %v1427_v10  ;;  %v1566_v26 = vadd.f32 %v5202_v22, %v1426_v9 }
 0x172   : > { %2104 = vmatprep.mubr.f32.mxu0 %v1693_v12  ;;  %4464 = vmatprep.subr.bf16.mxu0 %v4463_v61  ;;  %v3084_v61 = vld [vmem:[#allocation2 + $0xf0] sm:$0xff] }
 0x173   : > { %v1428_v27 = vadd.f32 %v1300_v14, %v898_v21  ;;  %v1429_v28 = vadd.f32 %v1301_v15, %v899_v24  ;;  %v1108_v29 = vpop.permute.xlu0 %1107  ;;  %v1695_v31 = vmax.f32 %v1567_v25, 0.0  ;;  %v1694_v38 = vmax.f32 %v1566_v26, 0.0  ;;  %4466 = vmatpush1.bf16.msra.mxu0 %v4465_v5 }
 0x174   : > { %v1302_v32 = vmul.f32 %v5195_v19, %v1108_v29  ;;  %v1303_v33 = vmul.f32 %v5198_v20, %v1108_v29  ;;  %v681_v34 = vpop.permute.xlu1 %680 }
 0x175   : > { %v900_v35 = vmul.f32 %v5186_v16, %v681_v34  ;;  %v901_v36 = vmul.f32 %v5189_v17, %v681_v34  ;;  %2105 = vmatmul.mubr.f32.gmra.mrb[72].mxu0 %v1692_v30  ;;  %v1569_v37 = vadd.f32 %v5205_v23, %v1429_v28  ;;  %v1568_v43 = vadd.f32 %v5202_v22, %v1428_v27 }
 0x176   : > { %2110 = vmatprep.mubr.f32.mxu0 %v1695_v31 }
 0x177   : > { %v1430_v39 = vadd.f32 %v1302_v32, %v900_v35  ;;  %v1431_v40 = vadd.f32 %v1303_v33, %v901_v36  ;;  %v1112_v41 = vpop.permute.xlu0 %1111  ;;  %v1697_v42 = vmax.f32 %v1569_v37, 0.0  ;;  %v1696_v54 = vmax.f32 %v1568_v43, 0.0 }
 0x178   : > { %v1304_v44 = vmul.f32 %v5195_v19, %v1112_v41  ;;  %v1305_v45 = vmul.f32 %v5198_v20, %v1112_v41  ;;  %v686_v46 = vpop.permute.xlu1 %685 }
 0x179   : > { %v902_v47 = vmul.f32 %v5186_v16, %v686_v46  ;;  %v903_v48 = vmul.f32 %v5189_v17, %v686_v46  ;;  %2111 = vmatmul.mubr.f32.gmra.mrb[74].mxu0 %v1694_v38  ;;  %v1571_v49 = vadd.f32 %v5205_v23, %v1431_v40  ;;  %v1570_v50 = vadd.f32 %v5202_v22, %v1430_v39 }
 0x17a   : > { %2116 = vmatprep.mubr.f32.mxu0 %v1697_v42 }
 0x17b   : > { %v1432_v51 = vadd.f32 %v1304_v44, %v902_v47  ;;  %v1433_v52 = vadd.f32 %v1305_v45, %v903_v48  ;;  %v1116_v53 = vpop.permute.xlu0 %1115  ;;  %v1699_v55 = vmax.f32 %v1571_v49, 0.0  ;;  %v1698_v4 = vmax.f32 %v1570_v50, 0.0 }
 0x17c   : > { %v1306_v58 = vmul.f32 %v5195_v19, %v1116_v53  ;;  %v1307_v59 = vmul.f32 %v5198_v20, %v1116_v53  ;;  %v691_v60 = vpop.permute.xlu1 %690 }
 0x17d   : > { %v904_v0 = vmul.f32 %v5186_v16, %v691_v60  ;;  %v905_v1 = vmul.f32 %v5189_v17, %v691_v60  ;;  %2117 = vmatmul.mubr.f32.gmra.mrb[76].mxu0 %v1696_v54  ;;  %v1573_v2 = vadd.f32 %v5205_v23, %v1433_v52  ;;  %v1572_v11 = vadd.f32 %v5202_v22, %v1432_v51  ;;  %v3083_v54 = vld [vmem:[#allocation2 + $0xe8] sm:$0xff]  ;;  %v3082_v60 = vld [vmem:[#allocation2 + $0xe0] sm:$0xff] }
 0x17e   : > { %2122 = vmatprep.mubr.f32.mxu0 %v1699_v55  ;;  %v3085_v55 = vld [vmem:[#allocation2 + $0xf8] sm:$0xff] }
 0x17f   : > { %v1434_v7 = vadd.f32 %v1306_v58, %v904_v0  ;;  %v1435_v8 = vadd.f32 %v1307_v59, %v905_v1  ;;  %v1120_v9 = vpop.permute.xlu0 %1119  ;;  %v1701_v10 = vmax.f32 %v1573_v2, 0.0  ;;  %v1700_v28 = vmax.f32 %v1572_v11, 0.0 }
 0x180   : > { %v1308_v12 = vmul.f32 %v5195_v19, %v1120_v9  ;;  %v1309_v13 = vmul.f32 %v5198_v20, %v1120_v9  ;;  %v696_v14 = vpop.permute.xlu1 %695  ;;  %v4467_v59 = vpack.c.bf16 %v3085_v55, %v3083_v54  ;;  %v4469_v2 = vpack.c.bf16 %v3084_v61, %v3082_v60 }
 0x181   : > { %v906_v15 = vmul.f32 %v5186_v16, %v696_v14  ;;  %v907_v18 = vmul.f32 %v5189_v17, %v696_v14  ;;  %2123 = vmatmul.mubr.f32.gmra.mrb[78].mxu0 %v1698_v4  ;;  %v1575_v21 = vadd.f32 %v5205_v23, %v1435_v8  ;;  %v1574_v24 = vadd.f32 %v5202_v22, %v1434_v7 }
 0x182   : > { %2128 = vmatprep.mubr.f32.mxu0 %v1701_v10  ;;  %4468 = vmatprep.subr.bf16.mxu0 %v4467_v59  ;;  %v3088_v59 = vld [vmem:[#allocation2 + $0x110] sm:$0xff] }
 0x183   : > { %v1436_v25 = vadd.f32 %v1308_v12, %v906_v15  ;;  %v1437_v26 = vadd.f32 %v1309_v13, %v907_v18  ;;  %v1124_v27 = vpop.permute.xlu0 %1123  ;;  %v1703_v29 = vmax.f32 %v1575_v21, 0.0  ;;  %v1702_v36 = vmax.f32 %v1574_v24, 0.0  ;;  %4470 = vmatpush1.bf16.msra.mxu0 %v4469_v2 }
 0x184   : > { %v1310_v30 = vmul.f32 %v5195_v19, %v1124_v27  ;;  %v1311_v31 = vmul.f32 %v5198_v20, %v1124_v27  ;;  %v701_v32 = vpop.permute.xlu1 %700 }
 0x185   : > { %v908_v33 = vmul.f32 %v5186_v16, %v701_v32  ;;  %v909_v34 = vmul.f32 %v5189_v17, %v701_v32  ;;  %2129 = vmatmul.mubr.f32.gmra.mrb[80].mxu0 %v1700_v28  ;;  %v1577_v35 = vadd.f32 %v5205_v23, %v1437_v26  ;;  %v1576_v41 = vadd.f32 %v5202_v22, %v1436_v25 }
 0x186   : > { %2134 = vmatprep.mubr.f32.mxu0 %v1703_v29 }
 0x187   : > { %v1438_v37 = vadd.f32 %v1310_v30, %v908_v33  ;;  %v1439_v38 = vadd.f32 %v1311_v31, %v909_v34  ;;  %v1128_v39 = vpop.permute.xlu0 %1127  ;;  %v1705_v40 = vmax.f32 %v1577_v35, 0.0  ;;  %v1704_v52 = vmax.f32 %v1576_v41, 0.0 }
 0x188   : > { %v1312_v42 = vmul.f32 %v5195_v19, %v1128_v39  ;;  %v1313_v43 = vmul.f32 %v5198_v20, %v1128_v39  ;;  %v706_v44 = vpop.permute.xlu1 %705 }
 0x189   : > { %v910_v45 = vmul.f32 %v5186_v16, %v706_v44  ;;  %v911_v46 = vmul.f32 %v5189_v17, %v706_v44  ;;  %2135 = vmatmul.mubr.f32.gmra.mrb[82].mxu0 %v1702_v36  ;;  %v1579_v47 = vadd.f32 %v5205_v23, %v1439_v38  ;;  %v1578_v48 = vadd.f32 %v5202_v22, %v1438_v37 }
 0x18a   : > { %2140 = vmatprep.mubr.f32.mxu0 %v1705_v40 }
 0x18b   : > { %v1440_v49 = vadd.f32 %v1312_v42, %v910_v45  ;;  %v1441_v50 = vadd.f32 %v1313_v43, %v911_v46  ;;  %v1132_v51 = vpop.permute.xlu0 %1131  ;;  %v1707_v53 = vmax.f32 %v1579_v47, 0.0  ;;  %v1706_v1 = vmax.f32 %v1578_v48, 0.0 }
 0x18c   : > { %v1314_v56 = vmul.f32 %v5195_v19, %v1132_v51  ;;  %v1315_v57 = vmul.f32 %v5198_v20, %v1132_v51  ;;  %v711_v58 = vpop.permute.xlu1 %710 }
 0x18d   : > { %v912_v62 = vmul.f32 %v5186_v16, %v711_v58  ;;  %v913_v63 = vmul.f32 %v5189_v17, %v711_v58  ;;  %2141 = vmatmul.mubr.f32.gmra.mrb[84].mxu0 %v1704_v52  ;;  %v1581_v0 = vadd.f32 %v5205_v23, %v1441_v50  ;;  %v1580_v9 = vadd.f32 %v5202_v22, %v1440_v49  ;;  %v3087_v52 = vld [vmem:[#allocation2 + $0x108] sm:$0xff]  ;;  %v3086_v58 = vld [vmem:[#allocation2 + $0x100] sm:$0xff] }
 0x18e   : > { %2146 = vmatprep.mubr.f32.mxu0 %v1707_v53  ;;  %v3089_v53 = vld [vmem:[#allocation2 + $0x118] sm:$0xff] }
 0x18f   : > { %v1442_v4 = vadd.f32 %v1314_v56, %v912_v62  ;;  %v1443_v5 = vadd.f32 %v1315_v57, %v913_v63  ;;  %v1136_v7 = vpop.permute.xlu0 %1135  ;;  %v1709_v8 = vmax.f32 %v1581_v0, 0.0  ;;  %v1708_v26 = vmax.f32 %v1580_v9, 0.0 }
 0x190   : > { %v1316_v10 = vmul.f32 %v5195_v19, %v1136_v7  ;;  %v1317_v11 = vmul.f32 %v5198_v20, %v1136_v7  ;;  %v716_v12 = vpop.permute.xlu1 %715  ;;  %v4471_v57 = vpack.c.bf16 %v3089_v53, %v3087_v52  ;;  %v4473_v0 = vpack.c.bf16 %v3088_v59, %v3086_v58 }
 0x191   : > { %v914_v13 = vmul.f32 %v5186_v16, %v716_v12  ;;  %v915_v14 = vmul.f32 %v5189_v17, %v716_v12  ;;  %2147 = vmatmul.mubr.f32.gmra.mrb[86].mxu0 %v1706_v1  ;;  %v1583_v15 = vadd.f32 %v5205_v23, %v1443_v5  ;;  %v1582_v18 = vadd.f32 %v5202_v22, %v1442_v4 }
 0x192   : > { %2152 = vmatprep.mubr.f32.mxu0 %v1709_v8  ;;  %4472 = vmatprep.subr.bf16.mxu0 %v4471_v57  ;;  %v3092_v57 = vld [vmem:[#allocation2 + $0x130] sm:$0xff] }
 0x193   : > { %v1444_v21 = vadd.f32 %v1316_v10, %v914_v13  ;;  %v1445_v24 = vadd.f32 %v1317_v11, %v915_v14  ;;  %v1140_v25 = vpop.permute.xlu0 %1139  ;;  %v1711_v27 = vmax.f32 %v1583_v15, 0.0  ;;  %v1710_v34 = vmax.f32 %v1582_v18, 0.0  ;;  %4474 = vmatpush1.bf16.msra.mxu0 %v4473_v0 }
 0x194   : > { %v1318_v28 = vmul.f32 %v5195_v19, %v1140_v25  ;;  %v1319_v29 = vmul.f32 %v5198_v20, %v1140_v25  ;;  %v721_v30 = vpop.permute.xlu1 %720 }
 0x195   : > { %v916_v31 = vmul.f32 %v5186_v16, %v721_v30  ;;  %v917_v32 = vmul.f32 %v5189_v17, %v721_v30  ;;  %2153 = vmatmul.mubr.f32.gmra.mrb[88].mxu0 %v1708_v26  ;;  %v1585_v33 = vadd.f32 %v5205_v23, %v1445_v24  ;;  %v1584_v39 = vadd.f32 %v5202_v22, %v1444_v21 }
 0x196   : > { %2158 = vmatprep.mubr.f32.mxu0 %v1711_v27 }
 0x197   : > { %v1446_v35 = vadd.f32 %v1318_v28, %v916_v31  ;;  %v1447_v36 = vadd.f32 %v1319_v29, %v917_v32  ;;  %v1144_v37 = vpop.permute.xlu0 %1143  ;;  %v1713_v38 = vmax.f32 %v1585_v33, 0.0  ;;  %v1712_v50 = vmax.f32 %v1584_v39, 0.0 }
 0x198   : > { %v1320_v40 = vmul.f32 %v5195_v19, %v1144_v37  ;;  %v1321_v41 = vmul.f32 %v5198_v20, %v1144_v37  ;;  %v726_v42 = vpop.permute.xlu1 %725 }
 0x199   : > { %v918_v43 = vmul.f32 %v5186_v16, %v726_v42  ;;  %v919_v44 = vmul.f32 %v5189_v17, %v726_v42  ;;  %2159 = vmatmul.mubr.f32.gmra.mrb[90].mxu0 %v1710_v34  ;;  %v1587_v45 = vadd.f32 %v5205_v23, %v1447_v36  ;;  %v1586_v46 = vadd.f32 %v5202_v22, %v1446_v35 }
 0x19a   : > { %2164 = vmatprep.mubr.f32.mxu0 %v1713_v38 }
 0x19b   : > { %v1448_v47 = vadd.f32 %v1320_v40, %v918_v43  ;;  %v1449_v48 = vadd.f32 %v1321_v41, %v919_v44  ;;  %v1148_v49 = vpop.permute.xlu0 %1147  ;;  %v1715_v51 = vmax.f32 %v1587_v45, 0.0  ;;  %v1714_v63 = vmax.f32 %v1586_v46, 0.0 }
 0x19c   : > { %v1322_v54 = vmul.f32 %v5195_v19, %v1148_v49  ;;  %v1323_v55 = vmul.f32 %v5198_v20, %v1148_v49  ;;  %v731_v56 = vpop.permute.xlu1 %730 }
 0x19d   : > { %v920_v60 = vmul.f32 %v5186_v16, %v731_v56  ;;  %v921_v61 = vmul.f32 %v5189_v17, %v731_v56  ;;  %2165 = vmatmul.mubr.f32.gmra.mrb[92].mxu0 %v1712_v50  ;;  %v1589_v62 = vadd.f32 %v5205_v23, %v1449_v48  ;;  %v1588_v7 = vadd.f32 %v5202_v22, %v1448_v47  ;;  %v3091_v50 = vld [vmem:[#allocation2 + $0x128] sm:$0xff]  ;;  %v3090_v56 = vld [vmem:[#allocation2 + $0x120] sm:$0xff] }
 0x19e   : > { %2170 = vmatprep.mubr.f32.mxu0 %v1715_v51  ;;  %v3093_v51 = vld [vmem:[#allocation2 + $0x138] sm:$0xff] }
 0x19f   : > { %v1450_v1 = vadd.f32 %v1322_v54, %v920_v60  ;;  %v1451_v2 = vadd.f32 %v1323_v55, %v921_v61  ;;  %v1152_v4 = vpop.permute.xlu0 %1151  ;;  %v1717_v5 = vmax.f32 %v1589_v62, 0.0  ;;  %v1716_v24 = vmax.f32 %v1588_v7, 0.0 }
 0x1a0   : > { %v1324_v8 = vmul.f32 %v5195_v19, %v1152_v4  ;;  %v1325_v9 = vmul.f32 %v5198_v20, %v1152_v4  ;;  %v736_v10 = vpop.permute.xlu1 %735  ;;  %v4475_v55 = vpack.c.bf16 %v3093_v51, %v3091_v50  ;;  %v4477_v62 = vpack.c.bf16 %v3092_v57, %v3090_v56  ;;  %v3097_v56 = vld [vmem:[#allocation2 + $0x158] sm:$0xff] }
 0x1a1   : > { %v922_v11 = vmul.f32 %v5186_v16, %v736_v10  ;;  %v923_v12 = vmul.f32 %v5189_v17, %v736_v10  ;;  %2171 = vmatmul.mubr.f32.gmra.mrb[94].mxu0 %v1714_v63  ;;  %v1591_v13 = vadd.f32 %v5205_v23, %v1451_v2  ;;  %v1590_v14 = vadd.f32 %v5202_v22, %v1450_v1 }
 0x1a2   : > { %2176 = vmatprep.mubr.f32.mxu0 %v1717_v5  ;;  %4476 = vmatprep.subr.bf16.mxu0 %v4475_v55  ;;  %v3095_v55 = vld [vmem:[#allocation2 + $0x148] sm:$0xff] }
 0x1a3   : > { %v1452_v15 = vadd.f32 %v1324_v8, %v922_v11  ;;  %v1453_v18 = vadd.f32 %v1325_v9, %v923_v12  ;;  %v1156_v21 = vpop.permute.xlu0 %1155  ;;  %v1719_v25 = vmax.f32 %v1591_v13, 0.0  ;;  %v1718_v32 = vmax.f32 %v1590_v14, 0.0  ;;  %4478 = vmatpush1.bf16.msra.mxu0 %v4477_v62  ;;  %v1812_v12 = vld [vmem:[%s6434_s4] sm:$0x3] }
 0x1a4   : > { %v1326_v26 = vmul.f32 %v5195_v19, %v1156_v21  ;;  %v1327_v27 = vmul.f32 %v5198_v20, %v1156_v21  ;;  %v741_v28 = vpop.permute.xlu1 %740 }
 0x1a5   : > { %v924_v29 = vmul.f32 %v5186_v16, %v741_v28  ;;  %v925_v30 = vmul.f32 %v5189_v17, %v741_v28  ;;  %2177 = vmatmul.mubr.f32.gmra.mrb[96].mxu0 %v1716_v24  ;;  %v1593_v31 = vadd.f32 %v5205_v23, %v1453_v18  ;;  %v1592_v37 = vadd.f32 %v5202_v22, %v1452_v15 }
 0x1a6   : > { %2182 = vmatprep.mubr.f32.mxu0 %v1719_v25 }
 0x1a7   : > { %v1454_v33 = vadd.f32 %v1326_v26, %v924_v29  ;;  %v1455_v34 = vadd.f32 %v1327_v27, %v925_v30  ;;  %v1160_v35 = vpop.permute.xlu0 %1159  ;;  %v1721_v36 = vmax.f32 %v1593_v31, 0.0  ;;  %v1720_v48 = vmax.f32 %v1592_v37, 0.0 }
 0x1a8   : > { %v1328_v38 = vmul.f32 %v5195_v19, %v1160_v35  ;;  %v1329_v39 = vmul.f32 %v5198_v20, %v1160_v35  ;;  %v746_v40 = vpop.permute.xlu1 %745  ;;  %v5765_v30 = vrot.slane %v1812_v12, %v5174_v3 }
 0x1a9   : > { %v926_v41 = vmul.f32 %v5186_v16, %v746_v40  ;;  %v927_v42 = vmul.f32 %v5189_v17, %v746_v40  ;;  %2183 = vmatmul.mubr.f32.gmra.mrb[98].mxu0 %v1718_v32  ;;  %v1595_v43 = vadd.f32 %v5205_v23, %v1455_v34  ;;  %v1594_v44 = vadd.f32 %v5202_v22, %v1454_v33 }
 0x1aa   : > { %2188 = vmatprep.mubr.f32.mxu0 %v1721_v36  ;;  %v5769_v33 = vrot.slane %v1812_v12, %v5179_v6 }
 0x1ab   : > { %v1456_v45 = vadd.f32 %v1328_v38, %v926_v41  ;;  %v1457_v46 = vadd.f32 %v1329_v39, %v927_v42  ;;  %v1164_v47 = vpop.permute.xlu0 %1163  ;;  %v1723_v49 = vmax.f32 %v1595_v43, 0.0  ;;  %v1722_v61 = vmax.f32 %v1594_v44, 0.0 }
 0x1ac   : > { %v1330_v52 = vmul.f32 %v5195_v19, %v1164_v47  ;;  %v1331_v53 = vmul.f32 %v5198_v20, %v1164_v47  ;;  %v751_v54 = vpop.permute.xlu1 %750 }
 0x1ad   : > { %v928_v58 = vmul.f32 %v5186_v16, %v751_v54  ;;  %v929_v59 = vmul.f32 %v5189_v17, %v751_v54  ;;  %2189 = vmatmul.mubr.f32.gmra.mrb[100].mxu0 %v1720_v48  ;;  %v1597_v60 = vadd.f32 %v5205_v23, %v1457_v46  ;;  %v1596_v4 = vadd.f32 %v5202_v22, %v1456_v45 }
 0x1ae   : > { %2194 = vmatprep.mubr.f32.mxu0 %v1723_v49 }
 0x1af   : > { %v1458_v63 = vadd.f32 %v1330_v52, %v928_v58  ;;  %v1459_v0 = vadd.f32 %v1331_v53, %v929_v59  ;;  %v1168_v1 = vpop.permute.xlu0 %1167  ;;  %v1725_v2 = vmax.f32 %v1597_v60, 0.0  ;;  %v1724_v21 = vmax.f32 %v1596_v4, 0.0 }
 0x1b0   : > { %v1332_v5 = vmul.f32 %v5195_v19, %v1168_v1  ;;  %v1333_v7 = vmul.f32 %v5198_v20, %v1168_v1  ;;  %v756_v8 = vpop.permute.xlu1 %755 }
 0x1b1   : > { %v930_v9 = vmul.f32 %v5186_v16, %v756_v8  ;;  %v931_v10 = vmul.f32 %v5189_v17, %v756_v8  ;;  %2195 = vmatmul.mubr.f32.gmra.mrb[102].mxu0 %v1722_v61  ;;  %v1599_v11 = vadd.f32 %v5205_v23, %v1459_v0  ;;  %v1598_v13 = vadd.f32 %v5202_v22, %v1458_v63 }
 0x1b2   : > { %2200 = vmatprep.mubr.f32.mxu0 %v1725_v2  ;;  %v4479_v8 = vpack.c.bf16 %v3097_v56, %v3095_v55 }
 0x1b3   : > { %v1460_v14 = vadd.f32 %v1332_v5, %v930_v9  ;;  %v1461_v15 = vadd.f32 %v1333_v7, %v931_v10  ;;  %v1172_v18 = vpop.permute.xlu0 %1171  ;;  %v1727_v24 = vmax.f32 %v1599_v11, 0.0  ;;  %v1726_v32 = vmax.f32 %v1598_v13, 0.0 }
 0x1b4   : > { %v1334_v25 = vmul.f32 %v5195_v19, %v1172_v18  ;;  %v1335_v26 = vmul.f32 %v5198_v20, %v1172_v18  ;;  %v761_v27 = vpop.permute.xlu1 %760  ;;  %4480 = vmatprep.subr.bf16.mxu0 %v4479_v8 }
 0x1b5   : > { %v932_v28 = vmul.f32 %v5186_v16, %v761_v27  ;;  %v933_v29 = vmul.f32 %v5189_v17, %v761_v27  ;;  %2201 = vmatmul.mubr.f32.gmra.mrb[104].mxu0 %v1724_v21  ;;  %v1601_v31 = vadd.f32 %v5205_v23, %v1461_v15  ;;  %v1600_v38 = vadd.f32 %v5202_v22, %v1460_v14  ;;  %v3094_v14 = vld [vmem:[#allocation2 + $0x140] sm:$0xff]  ;;  %v3096_v15 = vld [vmem:[#allocation2 + $0x150] sm:$0xff] }
 0x1b6   : > { %2206 = vmatprep.mubr.f32.mxu0 %v1727_v24 }
 0x1b7   : > { %v1462_v34 = vadd.f32 %v1334_v25, %v932_v28  ;;  %v1463_v35 = vadd.f32 %v1335_v26, %v933_v29  ;;  %v1176_v36 = vpop.permute.xlu0 %1175  ;;  %v1729_v37 = vmax.f32 %v1601_v31, 0.0  ;;  %v1728_v53 = vmax.f32 %v1600_v38, 0.0 }
 0x1b8   : > { %v1336_v39 = vmul.f32 %v5195_v19, %v1176_v36  ;;  %v1337_v40 = vmul.f32 %v5198_v20, %v1176_v36  ;;  %v766_v41 = vpop.permute.xlu1 %765  ;;  %v1890_v42 = vpop.f32.mrb[0].mxu0 }
 0x1b9   : > { %v934_v43 = vmul.f32 %v5186_v16, %v766_v41  ;;  %v935_v44 = vmul.f32 %v5189_v17, %v766_v41  ;;  %v1891_v45 = vadd.f32 %v1890_v42, %v5765_v30  ;;  %v1892_v46 = vpop.f32.mrb[1].mxu0  ;;  %2207 = vmatmul.mubr.f32.gmra.mrb[106].mxu0 %v1726_v32  ;;  %v1603_v47 = vadd.f32 %v5205_v23, %v1463_v35 }
 0x1ba   : > { %2212 = vmatprep.mubr.f32.mxu0 %v1729_v37  ;;  %v1893_v48 = vadd.f32 %v1892_v46, %v5769_v33  ;;  %v1602_v49 = vadd.f32 %v5202_v22, %v1462_v34  ;;  %v4481_v37 = vpack.c.bf16 %v3096_v15, %v3094_v14 }
 0x1bb   : > { %v1464_v50 = vadd.f32 %v1336_v39, %v934_v43  ;;  %v1465_v51 = vadd.f32 %v1337_v40, %v935_v44  ;;  %v1180_v52 = vpop.permute.xlu0 %1179  ;;  %v1731_v54 = vmax.f32 %v1603_v47, 0.0  ;;  %v2273_v57 = vmax.f32 %v1891_v45, 0.0 }
 0x1bc   : > { %v1338_v58 = vmul.f32 %v5195_v19, %v1180_v52  ;;  %v1339_v59 = vmul.f32 %v5198_v20, %v1180_v52  ;;  %v771_v60 = vpop.permute.xlu1 %770  ;;  %v1896_v61 = vpop.f32.mrb[2].mxu0  ;;  %v2274_v62 = vmax.f32 %v1893_v48, 0.0  ;;  %v1730_v7 = vmax.f32 %v1602_v49, 0.0  ;;  %4482 = vmatpush1.bf16.msra.mxu0 %v4481_v37 }
 0x1bd   : > { %v936_v63 = vmul.f32 %v5186_v16, %v771_v60  ;;  %v937_v0 = vmul.f32 %v5189_v17, %v771_v60  ;;  %v1897_v1 = vadd.f32 %v1896_v61, %v5765_v30  ;;  %v1898_v2 = vpop.f32.mrb[3].mxu0  ;;  %2213 = vmatmul.mubr.f32.gmra.mrb[108].mxu0 %v1728_v53  ;;  %v1605_v4 = vadd.f32 %v5205_v23, %v1465_v51 }
 0x1be   : > { %v1899_v5 = vadd.f32 %v1898_v2, %v5769_v33  ;;  %2218 = vmatprep.mubr.f32.mxu0 %v1731_v54  ;;  %2541 = vmatprep.mubr.f32.mxu1 %v2274_v62  ;;  %v1604_v13 = vadd.f32 %v5202_v22, %v1464_v50 }
 0x1bf   : > { %v1466_v9 = vadd.f32 %v1338_v58, %v936_v63  ;;  %v1467_v10 = vadd.f32 %v1339_v59, %v937_v0  ;;  %2542 = vmatmul.mubr.f32.vlgmr.msra.gmra.mrb[0].mxu1 %v2273_v57  ;;  %v1184_v11 = vpop.permute.xlu0 %1183  ;;  %v1733_v12 = vmax.f32 %v1605_v4, 0.0  ;;  %v2275_v18 = vmax.f32 %v1897_v1, 0.0 }
 0x1c0   : > { %v2276_v21 = vmax.f32 %v1899_v5, 0.0  ;;  %v1340_v24 = vmul.f32 %v5195_v19, %v1184_v11  ;;  %v1341_v25 = vmul.f32 %v5198_v20, %v1184_v11  ;;  %v776_v26 = vpop.permute.xlu1 %775  ;;  %v1902_v27 = vpop.f32.mrb[4].mxu0  ;;  %v1732_v41 = vmax.f32 %v1604_v13, 0.0 }
 0x1c1   : > { %v938_v28 = vmul.f32 %v5186_v16, %v776_v26  ;;  %v939_v29 = vmul.f32 %v5189_v17, %v776_v26  ;;  %v1903_v31 = vadd.f32 %v1902_v27, %v5765_v30  ;;  %v1904_v32 = vpop.f32.mrb[5].mxu0  ;;  %2219 = vmatmul.mubr.f32.gmra.mrb[110].mxu0 %v1730_v7  ;;  %v1607_v34 = vadd.f32 %v5205_v23, %v1467_v10 }
 0x1c2   : > { %v1905_v35 = vadd.f32 %v1904_v32, %v5769_v33  ;;  %2224 = vmatprep.mubr.f32.mxu0 %v1733_v12  ;;  %2547 = vmatprep.mubr.f32.mxu1 %v2276_v21  ;;  %v1606_v36 = vadd.f32 %v5202_v22, %v1466_v9  ;;  %v3099_v21 = vld [vmem:[#allocation2 + $0x168] sm:$0xff] }
 0x1c3   : > { %v1468_v38 = vadd.f32 %v1340_v24, %v938_v28  ;;  %v1469_v39 = vadd.f32 %v1341_v25, %v939_v29  ;;  %2548 = vmatmul.mubr.f32.gmra.mrb[2].mxu1 %v2275_v18  ;;  %v1188_v40 = vpop.permute.xlu0 %1187  ;;  %v1735_v42 = vmax.f32 %v1607_v34, 0.0  ;;  %v2277_v43 = vmax.f32 %v1903_v31, 0.0  ;;  %v3101_v24 = vld [vmem:[#allocation2 + $0x178] sm:$0xff] }
 0x1c4   : > { %v2278_v44 = vmax.f32 %v1905_v35, 0.0  ;;  %v1342_v45 = vmul.f32 %v5195_v19, %v1188_v40  ;;  %v1343_v46 = vmul.f32 %v5198_v20, %v1188_v40  ;;  %v781_v47 = vpop.permute.xlu1 %780  ;;  %v1908_v48 = vpop.f32.mrb[6].mxu0  ;;  %v1734_v55 = vmax.f32 %v1606_v36, 0.0 }
 0x1c5   : > { %v940_v49 = vmul.f32 %v5186_v16, %v781_v47  ;;  %v941_v50 = vmul.f32 %v5189_v17, %v781_v47  ;;  %v1909_v51 = vadd.f32 %v1908_v48, %v5765_v30  ;;  %v1910_v52 = vpop.f32.mrb[7].mxu0  ;;  %2225 = vmatmul.mubr.f32.gmra.mrb[112].mxu0 %v1732_v41  ;;  %v1609_v53 = vadd.f32 %v5205_v23, %v1469_v39  ;;  %v3100_v47 = vld [vmem:[#allocation2 + $0x170] sm:$0xff] }
 0x1c6   : > { %v1911_v54 = vadd.f32 %v1910_v52, %v5769_v33  ;;  %2230 = vmatprep.mubr.f32.mxu0 %v1735_v42  ;;  %2553 = vmatprep.mubr.f32.mxu1 %v2278_v44  ;;  %v1608_v60 = vadd.f32 %v5202_v22, %v1468_v38  ;;  %v4483_v40 = vpack.c.bf16 %v3101_v24, %v3099_v21 }
 0x1c7   : > { %v1470_v56 = vadd.f32 %v1342_v45, %v940_v49  ;;  %v1471_v57 = vadd.f32 %v1343_v46, %v941_v50  ;;  %2554 = vmatmul.mubr.f32.gmra.mrb[4].mxu1 %v2277_v43  ;;  %v1192_v58 = vpop.permute.xlu0 %1191  ;;  %v1737_v59 = vmax.f32 %v1609_v53, 0.0  ;;  %v2279_v61 = vmax.f32 %v1909_v51, 0.0  ;;  %v3098_v46 = vld [vmem:[#allocation2 + $0x160] sm:$0xff] }
 0x1c8   : > { %v2280_v62 = vmax.f32 %v1911_v54, 0.0  ;;  %v1344_v63 = vmul.f32 %v5195_v19, %v1192_v58  ;;  %v1345_v0 = vmul.f32 %v5198_v20, %v1192_v58  ;;  %v786_v1 = vpop.permute.xlu1 %785  ;;  %v1914_v2 = vpop.f32.mrb[8].mxu0  ;;  %v1736_v15 = vmax.f32 %v1608_v60, 0.0  ;;  %4484 = vmatprep.subr.bf16.mxu0 %v4483_v40 }
 0x1c9   : > { %v942_v4 = vmul.f32 %v5186_v16, %v786_v1  ;;  %v943_v5 = vmul.f32 %v5189_v17, %v786_v1  ;;  %v1915_v7 = vadd.f32 %v1914_v2, %v5765_v30  ;;  %v1916_v8 = vpop.f32.mrb[9].mxu0  ;;  %2231 = vmatmul.mubr.f32.gmra.mrb[114].mxu0 %v1734_v55  ;;  %v1611_v9 = vadd.f32 %v5205_v23, %v1471_v57 }
 0x1ca   : > { %v1917_v10 = vadd.f32 %v1916_v8, %v5769_v33  ;;  %2236 = vmatprep.mubr.f32.mxu0 %v1737_v59  ;;  %2559 = vmatprep.mubr.f32.mxu1 %v2280_v62  ;;  %v1610_v11 = vadd.f32 %v5202_v22, %v1470_v56 }
 0x1cb   : > { %v1472_v12 = vadd.f32 %v1344_v63, %v942_v4  ;;  %v1473_v13 = vadd.f32 %v1345_v0, %v943_v5  ;;  %2560 = vmatmul.mubr.f32.gmra.mrb[6].mxu1 %v2279_v61  ;;  %v1196_v14 = vpop.permute.xlu0 %1195  ;;  %v1739_v18 = vmax.f32 %v1611_v9, 0.0  ;;  %v2281_v25 = vmax.f32 %v1915_v7, 0.0 }
 0x1cc   : > { %v2282_v26 = vmax.f32 %v1917_v10, 0.0  ;;  %v1346_v27 = vmul.f32 %v5195_v19, %v1196_v14  ;;  %v1347_v28 = vmul.f32 %v5198_v20, %v1196_v14  ;;  %v791_v29 = vpop.permute.xlu1 %790  ;;  %v1920_v31 = vpop.f32.mrb[10].mxu0  ;;  %v1738_v39 = vmax.f32 %v1610_v11, 0.0 }
 0x1cd   : > { %v944_v32 = vmul.f32 %v5186_v16, %v791_v29  ;;  %v945_v34 = vmul.f32 %v5189_v17, %v791_v29  ;;  %v1921_v35 = vadd.f32 %v1920_v31, %v5765_v30  ;;  %v1922_v36 = vpop.f32.mrb[11].mxu0  ;;  %2237 = vmatmul.mubr.f32.gmra.mrb[116].mxu0 %v1736_v15  ;;  %v1613_v37 = vadd.f32 %v5205_v23, %v1473_v13 }
 0x1ce   : > { %v1923_v38 = vadd.f32 %v1922_v36, %v5769_v33  ;;  %2242 = vmatprep.mubr.f32.mxu0 %v1739_v18  ;;  %2565 = vmatprep.mubr.f32.mxu1 %v2282_v26  ;;  %v1612_v45 = vadd.f32 %v5202_v22, %v1472_v12  ;;  %v4485_v61 = vpack.c.bf16 %v3100_v47, %v3098_v46  ;;  %v3103_v36 = vld [vmem:[#allocation2 + $0x188] sm:$0xff] }
 0x1cf   : > { %v1474_v41 = vadd.f32 %v1346_v27, %v944_v32  ;;  %v1475_v42 = vadd.f32 %v1347_v28, %v945_v34  ;;  %2566 = vmatmul.mubr.f32.gmra.mrb[8].mxu1 %v2281_v25  ;;  %v1200_v43 = vpop.permute.xlu0 %1199  ;;  %v1741_v44 = vmax.f32 %v1613_v37, 0.0  ;;  %v2283_v48 = vmax.f32 %v1921_v35, 0.0  ;;  %v3105_v37 = vld [vmem:[#allocation2 + $0x198] sm:$0xff] }
 0x1d0   : > { %v2284_v49 = vmax.f32 %v1923_v38, 0.0  ;;  %v1348_v50 = vmul.f32 %v5195_v19, %v1200_v43  ;;  %v1349_v51 = vmul.f32 %v5198_v20, %v1200_v43  ;;  %v796_v52 = vpop.permute.xlu1 %795  ;;  %v1926_v53 = vpop.f32.mrb[12].mxu0  ;;  %v1740_v1 = vmax.f32 %v1612_v45, 0.0  ;;  %4486 = vmatpush1.bf16.msra.mxu0 %v4485_v61 }
 0x1d1   : > { %v946_v54 = vmul.f32 %v5186_v16, %v796_v52  ;;  %v947_v55 = vmul.f32 %v5189_v17, %v796_v52  ;;  %v1927_v56 = vadd.f32 %v1926_v53, %v5765_v30  ;;  %v1928_v57 = vpop.f32.mrb[13].mxu0  ;;  %2243 = vmatmul.mubr.f32.gmra.mrb[118].mxu0 %v1738_v39  ;;  %v1615_v58 = vadd.f32 %v5205_v23, %v1475_v42  ;;  %v3104_v42 = vld [vmem:[#allocation2 + $0x190] sm:$0xff] }
 0x1d2   : > { %v1929_v59 = vadd.f32 %v1928_v57, %v5769_v33  ;;  %2248 = vmatprep.mubr.f32.mxu0 %v1741_v44  ;;  %2571 = vmatprep.mubr.f32.mxu1 %v2284_v49  ;;  %v1614_v60 = vadd.f32 %v5202_v22, %v1474_v41  ;;  %v4487_v40 = vpack.c.bf16 %v3105_v37, %v3103_v36  ;;  %v3102_v41 = vld [vmem:[#allocation2 + $0x180] sm:$0xff] }
 0x1d3   : > { %v1476_v62 = vadd.f32 %v1348_v50, %v946_v54  ;;  %v1477_v63 = vadd.f32 %v1349_v51, %v947_v55  ;;  %2572 = vmatmul.mubr.f32.gmra.mrb[10].mxu1 %v2283_v48  ;;  %v1204_v0 = vpop.permute.xlu0 %1203  ;;  %v1743_v2 = vmax.f32 %v1615_v58, 0.0  ;;  %v2285_v4 = vmax.f32 %v1927_v56, 0.0 }
 0x1d4   : > { %v2286_v5 = vmax.f32 %v1929_v59, 0.0  ;;  %v1350_v7 = vmul.f32 %v5195_v19, %v1204_v0  ;;  %v1351_v8 = vmul.f32 %v5198_v20, %v1204_v0  ;;  %v801_v9 = vpop.permute.xlu1 %800  ;;  %v1932_v10 = vpop.f32.mrb[14].mxu0  ;;  %v1742_v19 = vmax.f32 %v1614_v60, 0.0  ;;  %4488 = vmatprep.subr.bf16.mxu0 %v4487_v40 }
 0x1d5   : > { %v948_v11 = vmul.f32 %v5186_v16, %v801_v9  ;;  %v949_v12 = vmul.f32 %v5189_v17, %v801_v9  ;;  %v1933_v13 = vadd.f32 %v1932_v10, %v5765_v30  ;;  %v1934_v14 = vpop.f32.mrb[15].mxu0  ;;  %2249 = vmatmul.mubr.f32.gmra.mrb[120].mxu0 %v1740_v1  ;;  %v1617_v15 = vadd.f32 %v5205_v23, %v1477_v63  ;;  %v3107_v1 = vld [vmem:[#allocation2 + $0x1a8] sm:$0xff]  ;;  %v3108_v9 = vld [vmem:[#allocation2 + $0x1b0] sm:$0xff] }
 0x1d6   : > { %v1935_v18 = vadd.f32 %v1934_v14, %v5769_v33  ;;  %2254 = vmatprep.mubr.f32.mxu0 %v1743_v2  ;;  %2577 = vmatprep.mubr.f32.mxu1 %v2286_v5  ;;  %v1616_v25 = vadd.f32 %v5202_v22, %v1476_v62  ;;  %v4489_v45 = vpack.c.bf16 %v3104_v42, %v3102_v41  ;;  %v3109_v2 = vld [vmem:[#allocation2 + $0x1b8] sm:$0xff]  ;;  %v3111_v41 = vld [vmem:[#allocation2 + $0x1c8] sm:$0xff] }
 0x1d7   : > { %v1478_v21 = vadd.f32 %v1350_v7, %v948_v11  ;;  %v1479_v20 = vadd.f32 %v1351_v8, %v949_v12  ;;  %2578 = vmatmul.mubr.f32.gmra.mrb[12].mxu1 %v2285_v4  ;;  %v1745_v24 = vmax.f32 %v1617_v15, 0.0  ;;  %v2287_v17 = vmax.f32 %v1933_v13, 0.0  ;;  %v3106_v8 = vld [vmem:[#allocation2 + $0x1a0] sm:$0xff]  ;;  %v3113_v42 = vld [vmem:[#allocation2 + $0x1d8] sm:$0xff] }
 0x1d8   : > { %v2288_v16 = vmax.f32 %v1935_v18, 0.0  ;;  %v1938_v26 = vpop.f32.mrb[16].mxu0  ;;  %v1744_v32 = vmax.f32 %v1616_v25, 0.0  ;;  %4490 = vmatpush1.bf16.msra.mxu0 %v4489_v45  ;;  %v4491_v7 = vpack.c.bf16 %v3109_v2, %v3107_v1  ;;  %v4493_v13 = vpack.c.bf16 %v3108_v9, %v3106_v8  ;;  %v3110_v45 = vld [vmem:[#allocation2 + $0x1c0] sm:$0xff] }
 0x1d9   : > { %v1939_v27 = vadd.f32 %v1938_v26, %v5765_v30  ;;  %v1940_v28 = vpop.f32.mrb[17].mxu0  ;;  %2255 = vmatmul.mubr.f32.gmra.mrb[122].mxu0 %v1742_v19  ;;  %v1619_v29 = vadd.f32 %v5205_v23, %v1479_v20  ;;  %v1618_v35 = vadd.f32 %v5202_v22, %v1478_v21  ;;  %v3707_v26 = vld [vmem:[#allocation5] sm:$0xff] }
 0x1da   : > { %v1941_v31 = vadd.f32 %v1940_v28, %v5769_v33  ;;  %2260 = vmatprep.mubr.f32.mxu0 %v1745_v24  ;;  %2583 = vmatprep.mubr.f32.mxu1 %v2288_v16 }
 0x1db   : > { %2584 = vmatmul.mubr.f32.gmra.mrb[14].mxu1 %v2287_v17  ;;  %v1747_v34 = vmax.f32 %v1619_v29, 0.0  ;;  %v2289_v43 = vmax.f32 %v1939_v27, 0.0  ;;  %v1746_v47 = vmax.f32 %v1618_v35, 0.0  ;;  %4492 = vmatprep.subr.bf16.mxu0 %v4491_v7  ;;  %v3708_v17 = vld [vmem:[#allocation5 + $0x8] sm:$0xff] }
 0x1dc   : > { %v2290_v38 = vmax.f32 %v1941_v31, 0.0  ;;  %v1944_v39 = vpop.f32.mrb[18].mxu0  ;;  %4494 = vmatpush1.bf16.msra.mxu0 %v4493_v13  ;;  %v4761_v31 = vmov 0.0|0.0  }
 0x1dd   : > { %v1945_v44 = vadd.f32 %v1944_v39, %v5765_v30  ;;  %v1946_v23 = vpop.f32.mrb[19].mxu0  ;;  %2261 = vmatmul.mubr.f32.gmra.mrb[124].mxu0 %v1744_v32  ;;  %4503 = vmatprep.subr.bf16.mxu1 %v4761_v31  ;;  %v4504_v32 = vpack.c.bf16 %v3708_v17, %v3707_v26 }
 0x1de   : > { %v1947_v46 = vadd.f32 %v1946_v23, %v5769_v33  ;;  %2266 = vmatprep.mubr.f32.mxu0 %v1747_v34  ;;  %2589 = vmatprep.mubr.f32.mxu1 %v2290_v38  ;;  %v4495_v23 = vpack.c.bf16 %v3113_v42, %v3111_v41 }
 0x1df   : > { %2590 = vmatmul.mubr.f32.gmra.mrb[16].mxu1 %v2289_v43  ;;  %v2291_v49 = vmax.f32 %v1945_v44, 0.0 }
 0x1e0   : > { %v2292_v22 = vmax.f32 %v1947_v46, 0.0  ;;  %v1950_v48 = vpop.f32.mrb[20].mxu0  ;;  %4505 = vmatpush1.bf16.msra.mxu1 %v4504_v32  ;;  %v3112_v46 = vld [vmem:[#allocation2 + $0x1d0] sm:$0xff]  ;;  %4496 = vmatprep.subr.bf16.mxu0 %v4495_v23 }
 0x1e1   : > { %v1951_v50 = vadd.f32 %v1950_v48, %v5765_v30  ;;  %v1952_v51 = vpop.f32.mrb[21].mxu0  ;;  %2267 = vmatmul.mubr.f32.gmra.mrb[126].mxu0 %v1746_v47  ;;  %4506 = vmatprep.subr.bf16.mxu1 %v4761_v31 }
 0x1e2   : > { %v1953_v52 = vadd.f32 %v1952_v51, %v5769_v33  ;;  %2595 = vmatprep.mubr.f32.mxu1 %v2292_v22 }
 0x1e3   : > { %2596 = vmatmul.mubr.f32.gmra.mrb[18].mxu1 %v2291_v49  ;;  %v2293_v55 = vmax.f32 %v1951_v50, 0.0  ;;  %v4497_v49 = vpack.c.bf16 %v3112_v46, %v3110_v45 }
 0x1e4   : > { %v2294_v53 = vmax.f32 %v1953_v52, 0.0  ;;  %v1956_v54 = vpop.f32.mrb[22].mxu0 }
 0x1e5   : > { %v1957_v56 = vadd.f32 %v1956_v54, %v5765_v30  ;;  %v1958_v57 = vpop.f32.mrb[23].mxu0  ;;  %4498 = vmatpush1.bf16.msra.mxu0 %v4497_v49 }
 0x1e6   : > { %v1959_v58 = vadd.f32 %v1958_v57, %v5769_v33  ;;  %2601 = vmatprep.mubr.f32.mxu1 %v2294_v53 }
 0x1e7   : > { %2602 = vmatmul.mubr.f32.gmra.mrb[20].mxu1 %v2293_v55  ;;  %v2295_v61 = vmax.f32 %v1957_v56, 0.0 }
 0x1e8   : > { %v2296_v59 = vmax.f32 %v1959_v58, 0.0  ;;  %v1962_v60 = vpop.f32.mrb[24].mxu0 }
 0x1e9   : > { %v1963_v62 = vadd.f32 %v1962_v60, %v5765_v30  ;;  %v1964_v63 = vpop.f32.mrb[25].mxu0  ;;  %v3710_v60 = vld [vmem:[#allocation5 + $0x18] sm:$0xff] }
 0x1ea   : > { %v1965_v0 = vadd.f32 %v1964_v63, %v5769_v33  ;;  %2607 = vmatprep.mubr.f32.mxu1 %v2296_v59  ;;  %v3709_v59 = vld [vmem:[#allocation5 + $0x10] sm:$0xff] }
 0x1eb   : > { %2608 = vmatmul.mubr.f32.gmra.mrb[22].mxu1 %v2295_v61  ;;  %v2297_v10 = vmax.f32 %v1963_v62, 0.0 }
 0x1ec   : > { %v2298_v4 = vmax.f32 %v1965_v0, 0.0  ;;  %v1968_v5 = vpop.f32.mrb[26].mxu0  ;;  %v4507_v0 = vpack.c.bf16 %v3710_v60, %v3709_v59 }
 0x1ed   : > { %v1969_v11 = vadd.f32 %v1968_v5, %v5765_v30  ;;  %v1970_v12 = vpop.f32.mrb[27].mxu0 }
 0x1ee   : > { %v1971_v14 = vadd.f32 %v1970_v12, %v5769_v33  ;;  %2613 = vmatprep.mubr.f32.mxu1 %v2298_v4  ;;  %4508 = vmatpush1.bf16.msra.mxu1 %v4507_v0  ;;  %v3713_v0 = vld [vmem:[#allocation5 + $0x30] sm:$0xff] }
 0x1ef   : > { %2614 = vmatmul.mubr.f32.gmra.mrb[24].mxu1 %v2297_v10  ;;  %v2299_v19 = vmax.f32 %v1969_v11, 0.0  ;;  %4509 = vmatprep.subr.bf16.mxu1 %v4761_v31  ;;  %v3115_v10 = vld [vmem:[#allocation2 + $0x1e8] sm:$0xff]  ;;  %v3117_v11 = vld [vmem:[#allocation2 + $0x1f8] sm:$0xff] }
 0x1f0   : > { %v2300_v15 = vmax.f32 %v1971_v14, 0.0  ;;  %v1974_v18 = vpop.f32.mrb[28].mxu0  ;;  %v4499_v14 = vpack.c.bf16 %v3117_v11, %v3115_v10 }
 0x1f1   : > { %v1975_v21 = vadd.f32 %v1974_v18, %v5765_v30  ;;  %v1976_v20 = vpop.f32.mrb[29].mxu0  ;;  %v3116_v18 = vld [vmem:[#allocation2 + $0x1f0] sm:$0xff] }
 0x1f2   : > { %v1977_v24 = vadd.f32 %v1976_v20, %v5769_v33  ;;  %2619 = vmatprep.mubr.f32.mxu1 %v2300_v15  ;;  %v3114_v15 = vld [vmem:[#allocation2 + $0x1e0] sm:$0xff]  ;;  %4500 = vmatprep.subr.bf16.mxu0 %v4499_v14 }
 0x1f3   : > { %2620 = vmatmul.mubr.f32.gmra.mrb[26].mxu1 %v2299_v19  ;;  %v2301_v27 = vmax.f32 %v1975_v21, 0.0 }
 0x1f4   : > { %v2302_v25 = vmax.f32 %v1977_v24, 0.0  ;;  %v1980_v16 = vpop.f32.mrb[30].mxu0  ;;  %v4501_v24 = vpack.c.bf16 %v3116_v18, %v3114_v15 }
 0x1f5   : > { %v1981_v28 = vadd.f32 %v1980_v16, %v5765_v30  ;;  %v1982_v29 = vpop.f32.mrb[31].mxu0 }
 0x1f6   : > { %v1983_v34 = vadd.f32 %v1982_v29, %v5769_v33  ;;  %2625 = vmatprep.mubr.f32.mxu1 %v2302_v25  ;;  %4502 = vmatpush1.bf16.msra.mxu0 %v4501_v24 }
 0x1f7   : > { %2626 = vmatmul.mubr.f32.gmra.mrb[28].mxu1 %v2301_v27  ;;  %v2303_v37 = vmax.f32 %v1981_v28, 0.0 }
 0x1f8   : > { %v2304_v35 = vmax.f32 %v1983_v34, 0.0  ;;  %v1986_v36 = vpop.f32.mrb[32].mxu0 }
 0x1f9   : > { %v1987_v38 = vadd.f32 %v1986_v36, %v5765_v30  ;;  %v1988_v39 = vpop.f32.mrb[33].mxu0 }
 0x1fa   : > { %v1989_v40 = vadd.f32 %v1988_v39, %v5769_v33  ;;  %2631 = vmatprep.mubr.f32.mxu1 %v2304_v35  ;;  %v3711_v39 = vld [vmem:[#allocation5 + $0x20] sm:$0xff] }
 0x1fb   : > { %2632 = vmatmul.mubr.f32.gmra.mrb[30].mxu1 %v2303_v37  ;;  %v2305_v47 = vmax.f32 %v1987_v38, 0.0 }
 0x1fc   : > { %v2306_v43 = vmax.f32 %v1989_v40, 0.0  ;;  %v1992_v44 = vpop.f32.mrb[34].mxu0  ;;  %v3712_v40 = vld [vmem:[#allocation5 + $0x28] sm:$0xff] }
 0x1fd   : > { %v1993_v22 = vadd.f32 %v1992_v44, %v5765_v30  ;;  %v1994_v48 = vpop.f32.mrb[35].mxu0  ;;  %v4510_v41 = vpack.c.bf16 %v3712_v40, %v3711_v39 }
 0x1fe   : > { %v1995_v50 = vadd.f32 %v1994_v48, %v5769_v33  ;;  %2637 = vmatprep.mubr.f32.mxu1 %v2306_v43 }
 0x1ff   : > { %2638 = vmatmul.mubr.f32.gmra.mrb[32].mxu1 %v2305_v47  ;;  %v2307_v53 = vmax.f32 %v1993_v22, 0.0 }
 0x200   : > { %v2308_v51 = vmax.f32 %v1995_v50, 0.0  ;;  %v1998_v52 = vpop.f32.mrb[36].mxu0  ;;  %4511 = vmatpush1.bf16.msra.mxu1 %v4510_v41 }
 0x201   : > { %v1999_v54 = vadd.f32 %v1998_v52, %v5765_v30  ;;  %v2000_v55 = vpop.f32.mrb[37].mxu0  ;;  %4512 = vmatprep.subr.bf16.mxu1 %v4761_v31 }
 0x202   : > { %v2001_v56 = vadd.f32 %v2000_v55, %v5769_v33  ;;  %2643 = vmatprep.mubr.f32.mxu1 %v2308_v51 }
 0x203   : > { %2644 = vmatmul.mubr.f32.gmra.mrb[34].mxu1 %v2307_v53  ;;  %v2309_v61 = vmax.f32 %v1999_v54, 0.0 }
 0x204   : > { %v2310_v57 = vmax.f32 %v2001_v56, 0.0  ;;  %v2004_v58 = vpop.f32.mrb[38].mxu0 }
 0x205   : > { %v2005_v62 = vadd.f32 %v2004_v58, %v5765_v30  ;;  %v2006_v63 = vpop.f32.mrb[39].mxu0 }
 0x206   : > { %v2007_v1 = vadd.f32 %v2006_v63, %v5769_v33  ;;  %2649 = vmatprep.mubr.f32.mxu1 %v2310_v57 }
 0x207   : > { %2650 = vmatmul.mubr.f32.gmra.mrb[36].mxu1 %v2309_v61  ;;  %v2311_v5 = vmax.f32 %v2005_v62, 0.0 }
 0x208   : > { %v2312_v2 = vmax.f32 %v2007_v1, 0.0  ;;  %v2010_v4 = vpop.f32.mrb[40].mxu0  ;;  %v3714_v1 = vld [vmem:[#allocation5 + $0x38] sm:$0xff] }
 0x209   : > { %v2011_v7 = vadd.f32 %v2010_v4, %v5765_v30  ;;  %v2012_v8 = vpop.f32.mrb[41].mxu0 }
 0x20a   : > { %v2013_v9 = vadd.f32 %v2012_v8, %v5769_v33  ;;  %2655 = vmatprep.mubr.f32.mxu1 %v2312_v2  ;;  %v4513_v2 = vpack.c.bf16 %v3714_v1, %v3713_v0 }
 0x20b   : > { %2656 = vmatmul.mubr.f32.gmra.mrb[38].mxu1 %v2311_v5  ;;  %v2313_v19 = vmax.f32 %v2011_v7, 0.0 }
 0x20c   : > { %v2314_v12 = vmax.f32 %v2013_v9, 0.0  ;;  %v2016_v13 = vpop.f32.mrb[42].mxu0  ;;  %4514 = vmatpush1.bf16.msra.mxu1 %v4513_v2 }
 0x20d   : > { %v2017_v21 = vadd.f32 %v2016_v13, %v5765_v30  ;;  %v2018_v20 = vpop.f32.mrb[43].mxu0  ;;  %4515 = vmatprep.subr.bf16.mxu1 %v4761_v31 }
 0x20e   : > { %v2019_v25 = vadd.f32 %v2018_v20, %v5769_v33  ;;  %2661 = vmatprep.mubr.f32.mxu1 %v2314_v12 }
 0x20f   : > { %2662 = vmatmul.mubr.f32.gmra.mrb[40].mxu1 %v2313_v19  ;;  %v2315_v17 = vmax.f32 %v2017_v21, 0.0 }
 0x210   : > { %v2316_v16 = vmax.f32 %v2019_v25, 0.0  ;;  %v2022_v26 = vpop.f32.mrb[44].mxu0 }
 0x211   : > { %v2023_v27 = vadd.f32 %v2022_v26, %v5765_v30  ;;  %v2024_v28 = vpop.f32.mrb[45].mxu0 }
 0x212   : > { %v2025_v29 = vadd.f32 %v2024_v28, %v5769_v33  ;;  %2667 = vmatprep.mubr.f32.mxu1 %v2316_v16 }
 0x213   : > { %2668 = vmatmul.mubr.f32.gmra.mrb[42].mxu1 %v2315_v17  ;;  %v2317_v35 = vmax.f32 %v2023_v27, 0.0 }
 0x214   : > { %v2318_v32 = vmax.f32 %v2025_v29, 0.0  ;;  %v2028_v34 = vpop.f32.mrb[46].mxu0 }
 0x215   : > { %v2029_v36 = vadd.f32 %v2028_v34, %v5765_v30  ;;  %v2030_v37 = vpop.f32.mrb[47].mxu0  ;;  %v3715_v34 = vld [vmem:[#allocation5 + $0x40] sm:$0xff] }
 0x216   : > { %v2031_v38 = vadd.f32 %v2030_v37, %v5769_v33  ;;  %2673 = vmatprep.mubr.f32.mxu1 %v2318_v32 }
 0x217   : > { %2674 = vmatmul.mubr.f32.gmra.mrb[44].mxu1 %v2317_v35  ;;  %v2319_v44 = vmax.f32 %v2029_v36, 0.0  ;;  %v3716_v35 = vld [vmem:[#allocation5 + $0x48] sm:$0xff] }
 0x218   : > { %v2320_v42 = vmax.f32 %v2031_v38, 0.0  ;;  %v2034_v43 = vpop.f32.mrb[48].mxu0  ;;  %v4516_v36 = vpack.c.bf16 %v3716_v35, %v3715_v34 }
 0x219   : > { %v2035_v23 = vadd.f32 %v2034_v43, %v5765_v30  ;;  %v2036_v45 = vpop.f32.mrb[49].mxu0 }
 0x21a   : > { %v2037_v46 = vadd.f32 %v2036_v45, %v5769_v33  ;;  %2679 = vmatprep.mubr.f32.mxu1 %v2320_v42  ;;  %4517 = vmatpush1.bf16.msra.mxu1 %v4516_v36 }
 0x21b   : > { %2680 = vmatmul.mubr.f32.gmra.mrb[46].mxu1 %v2319_v44  ;;  %v2321_v48 = vmax.f32 %v2035_v23, 0.0  ;;  %4518 = vmatprep.subr.bf16.mxu1 %v4761_v31 }
 0x21c   : > { %v2322_v47 = vmax.f32 %v2037_v46, 0.0  ;;  %v2040_v22 = vpop.f32.mrb[50].mxu0 }
 0x21d   : > { %v2041_v49 = vadd.f32 %v2040_v22, %v5765_v30  ;;  %v2042_v50 = vpop.f32.mrb[51].mxu0 }
 0x21e   : > { %v2043_v51 = vadd.f32 %v2042_v50, %v5769_v33  ;;  %2685 = vmatprep.mubr.f32.mxu1 %v2322_v47 }
 0x21f   : > { %2686 = vmatmul.mubr.f32.gmra.mrb[48].mxu1 %v2321_v48  ;;  %v2323_v54 = vmax.f32 %v2041_v49, 0.0 }
 0x220   : > { %v2324_v52 = vmax.f32 %v2043_v51, 0.0  ;;  %v2046_v53 = vpop.f32.mrb[52].mxu0 }
 0x221   : > { %v2047_v55 = vadd.f32 %v2046_v53, %v5765_v30  ;;  %v2048_v56 = vpop.f32.mrb[53].mxu0 }
 0x222   : > { %v2049_v57 = vadd.f32 %v2048_v56, %v5769_v33  ;;  %2691 = vmatprep.mubr.f32.mxu1 %v2324_v52 }
 0x223   : > { %2692 = vmatmul.mubr.f32.gmra.mrb[50].mxu1 %v2323_v54  ;;  %v2325_v60 = vmax.f32 %v2047_v55, 0.0 }
 0x224   : > { %v2326_v58 = vmax.f32 %v2049_v57, 0.0  ;;  %v2052_v59 = vpop.f32.mrb[54].mxu0 }
 0x225   : > { %v2053_v61 = vadd.f32 %v2052_v59, %v5765_v30  ;;  %v2054_v62 = vpop.f32.mrb[55].mxu0  ;;  %v3717_v59 = vld [vmem:[#allocation5 + $0x50] sm:$0xff] }
 0x226   : > { %v2055_v63 = vadd.f32 %v2054_v62, %v5769_v33  ;;  %2697 = vmatprep.mubr.f32.mxu1 %v2326_v58 }
 0x227   : > { %2698 = vmatmul.mubr.f32.gmra.mrb[52].mxu1 %v2325_v60  ;;  %v2327_v7 = vmax.f32 %v2053_v61, 0.0  ;;  %v3718_v60 = vld [vmem:[#allocation5 + $0x58] sm:$0xff] }
 0x228   : > { %v2328_v4 = vmax.f32 %v2055_v63, 0.0  ;;  %v2058_v5 = vpop.f32.mrb[56].mxu0  ;;  %v4519_v61 = vpack.c.bf16 %v3718_v60, %v3717_v59 }
 0x229   : > { %v2059_v8 = vadd.f32 %v2058_v5, %v5765_v30  ;;  %v2060_v9 = vpop.f32.mrb[57].mxu0 }
 0x22a   : > { %v2061_v10 = vadd.f32 %v2060_v9, %v5769_v33  ;;  %2703 = vmatprep.mubr.f32.mxu1 %v2328_v4  ;;  %4520 = vmatpush1.bf16.msra.mxu1 %v4519_v61 }
 0x22b   : > { %2704 = vmatmul.mubr.f32.gmra.mrb[54].mxu1 %v2327_v7  ;;  %v2329_v13 = vmax.f32 %v2059_v8, 0.0  ;;  %4521 = vmatprep.subr.bf16.mxu1 %v4761_v31 }
 0x22c   : > { %v2330_v11 = vmax.f32 %v2061_v10, 0.0  ;;  %v2064_v12 = vpop.f32.mrb[58].mxu0 }
 0x22d   : > { %v2065_v14 = vadd.f32 %v2064_v12, %v5765_v30  ;;  %v2066_v15 = vpop.f32.mrb[59].mxu0 }
 0x22e   : > { %v2067_v18 = vadd.f32 %v2066_v15, %v5769_v33  ;;  %2709 = vmatprep.mubr.f32.mxu1 %v2330_v11 }
 0x22f   : > { %2710 = vmatmul.mubr.f32.gmra.mrb[56].mxu1 %v2329_v13  ;;  %v2331_v20 = vmax.f32 %v2065_v14, 0.0 }
 0x230   : > { %v2332_v19 = vmax.f32 %v2067_v18, 0.0  ;;  %v2070_v21 = vpop.f32.mrb[60].mxu0 }
 0x231   : > { %v2071_v24 = vadd.f32 %v2070_v21, %v5765_v30  ;;  %v2072_v25 = vpop.f32.mrb[61].mxu0 }
 0x232   : > { %v2073_v16 = vadd.f32 %v2072_v25, %v5769_v33  ;;  %2715 = vmatprep.mubr.f32.mxu1 %v2332_v19 }
 0x233   : > { %2716 = vmatmul.mubr.f32.gmra.mrb[58].mxu1 %v2331_v20  ;;  %v2333_v27 = vmax.f32 %v2071_v24, 0.0 }
 0x234   : > { %v2334_v26 = vmax.f32 %v2073_v16, 0.0  ;;  %v2076_v17 = vpop.f32.mrb[62].mxu0 }
 0x235   : > { %v2077_v28 = vadd.f32 %v2076_v17, %v5765_v30  ;;  %v2078_v29 = vpop.f32.mrb[63].mxu0  ;;  %v3719_v17 = vld [vmem:[#allocation5 + $0x60] sm:$0xff] }
 0x236   : > { %v2079_v32 = vadd.f32 %v2078_v29, %v5769_v33  ;;  %2721 = vmatprep.mubr.f32.mxu1 %v2334_v26 }
 0x237   : > { %2722 = vmatmul.mubr.f32.gmra.mrb[60].mxu1 %v2333_v27  ;;  %v2335_v39 = vmax.f32 %v2077_v28, 0.0  ;;  %v3720_v27 = vld [vmem:[#allocation5 + $0x68] sm:$0xff] }
 0x238   : > { %v2336_v37 = vmax.f32 %v2079_v32, 0.0  ;;  %v2082_v38 = vpop.f32.mrb[64].mxu0  ;;  %v4522_v28 = vpack.c.bf16 %v3720_v27, %v3719_v17 }
 0x239   : > { %v2083_v40 = vadd.f32 %v2082_v38, %v5765_v30  ;;  %v2084_v41 = vpop.f32.mrb[65].mxu0 }
 0x23a   : > { %v2085_v42 = vadd.f32 %v2084_v41, %v5769_v33  ;;  %2727 = vmatprep.mubr.f32.mxu1 %v2336_v37  ;;  %4523 = vmatpush1.bf16.msra.mxu1 %v4522_v28 }
 0x23b   : > { %2728 = vmatmul.mubr.f32.gmra.mrb[62].mxu1 %v2335_v39  ;;  %v2337_v23 = vmax.f32 %v2083_v40, 0.0  ;;  %4524 = vmatprep.subr.bf16.mxu1 %v4761_v31 }
 0x23c   : > { %v2338_v43 = vmax.f32 %v2085_v42, 0.0  ;;  %v2088_v44 = vpop.f32.mrb[66].mxu0 }
 0x23d   : > { %v2089_v45 = vadd.f32 %v2088_v44, %v5765_v30  ;;  %v2090_v46 = vpop.f32.mrb[67].mxu0 }
 0x23e   : > { %v2091_v47 = vadd.f32 %v2090_v46, %v5769_v33  ;;  %2733 = vmatprep.mubr.f32.mxu1 %v2338_v43 }
 0x23f   : > { %2734 = vmatmul.mubr.f32.gmra.mrb[64].mxu1 %v2337_v23  ;;  %v2339_v49 = vmax.f32 %v2089_v45, 0.0 }
 0x240   : > { %v2340_v22 = vmax.f32 %v2091_v47, 0.0  ;;  %v2094_v48 = vpop.f32.mrb[68].mxu0 }
 0x241   : > { %v2095_v50 = vadd.f32 %v2094_v48, %v5765_v30  ;;  %v2096_v51 = vpop.f32.mrb[69].mxu0 }
 0x242   : > { %v2097_v52 = vadd.f32 %v2096_v51, %v5769_v33  ;;  %2739 = vmatprep.mubr.f32.mxu1 %v2340_v22 }
 0x243   : > { %2740 = vmatmul.mubr.f32.gmra.mrb[66].mxu1 %v2339_v49  ;;  %v2341_v55 = vmax.f32 %v2095_v50, 0.0 }
 0x244   : > { %v2342_v53 = vmax.f32 %v2097_v52, 0.0  ;;  %v2100_v54 = vpop.f32.mrb[70].mxu0 }
 0x245   : > { %v2101_v56 = vadd.f32 %v2100_v54, %v5765_v30  ;;  %v2102_v57 = vpop.f32.mrb[71].mxu0  ;;  %v3721_v54 = vld [vmem:[#allocation5 + $0x70] sm:$0xff] }
 0x246   : > { %v2103_v58 = vadd.f32 %v2102_v57, %v5769_v33  ;;  %2745 = vmatprep.mubr.f32.mxu1 %v2342_v53 }
 0x247   : > { %2746 = vmatmul.mubr.f32.gmra.mrb[68].mxu1 %v2341_v55  ;;  %v2343_v0 = vmax.f32 %v2101_v56, 0.0  ;;  %v3722_v55 = vld [vmem:[#allocation5 + $0x78] sm:$0xff] }
 0x248   : > { %v2344_v62 = vmax.f32 %v2103_v58, 0.0  ;;  %v2106_v63 = vpop.f32.mrb[72].mxu0  ;;  %v4525_v56 = vpack.c.bf16 %v3722_v55, %v3721_v54 }
 0x249   : > { %v2107_v1 = vadd.f32 %v2106_v63, %v5765_v30  ;;  %v2108_v2 = vpop.f32.mrb[73].mxu0 }
 0x24a   : > { %v2109_v4 = vadd.f32 %v2108_v2, %v5769_v33  ;;  %2751 = vmatprep.mubr.f32.mxu1 %v2344_v62  ;;  %4526 = vmatpush1.bf16.msra.mxu1 %v4525_v56 }
 0x24b   : > { %2752 = vmatmul.mubr.f32.gmra.mrb[70].mxu1 %v2343_v0  ;;  %v2345_v8 = vmax.f32 %v2107_v1, 0.0  ;;  %4527 = vmatprep.subr.bf16.mxu1 %v4761_v31 }
 0x24c   : > { %v2346_v5 = vmax.f32 %v2109_v4, 0.0  ;;  %v2112_v7 = vpop.f32.mrb[74].mxu0 }
 0x24d   : > { %v2113_v9 = vadd.f32 %v2112_v7, %v5765_v30  ;;  %v2114_v10 = vpop.f32.mrb[75].mxu0 }
 0x24e   : > { %v2115_v11 = vadd.f32 %v2114_v10, %v5769_v33  ;;  %2757 = vmatprep.mubr.f32.mxu1 %v2346_v5 }
 0x24f   : > { %2758 = vmatmul.mubr.f32.gmra.mrb[72].mxu1 %v2345_v8  ;;  %v2347_v14 = vmax.f32 %v2113_v9, 0.0 }
 0x250   : > { %v2348_v12 = vmax.f32 %v2115_v11, 0.0  ;;  %v2118_v13 = vpop.f32.mrb[76].mxu0 }
 0x251   : > { %v2119_v15 = vadd.f32 %v2118_v13, %v5765_v30  ;;  %v2120_v18 = vpop.f32.mrb[77].mxu0 }
 0x252   : > { %v2121_v19 = vadd.f32 %v2120_v18, %v5769_v33  ;;  %2763 = vmatprep.mubr.f32.mxu1 %v2348_v12 }
 0x253   : > { %2764 = vmatmul.mubr.f32.gmra.mrb[74].mxu1 %v2347_v14  ;;  %v2349_v24 = vmax.f32 %v2119_v15, 0.0 }
 0x254   : > { %v2350_v21 = vmax.f32 %v2121_v19, 0.0  ;;  %v2124_v20 = vpop.f32.mrb[78].mxu0 }
 0x255   : > { %v2125_v25 = vadd.f32 %v2124_v20, %v5765_v30  ;;  %v2126_v16 = vpop.f32.mrb[79].mxu0  ;;  %v3723_v20 = vld [vmem:[#allocation5 + $0x80] sm:$0xff] }
 0x256   : > { %v2127_v26 = vadd.f32 %v2126_v16, %v5769_v33  ;;  %2769 = vmatprep.mubr.f32.mxu1 %v2350_v21 }
 0x257   : > { %2770 = vmatmul.mubr.f32.gmra.mrb[76].mxu1 %v2349_v24  ;;  %v2351_v34 = vmax.f32 %v2125_v25, 0.0  ;;  %v3724_v24 = vld [vmem:[#allocation5 + $0x88] sm:$0xff] }
 0x258   : > { %v2352_v29 = vmax.f32 %v2127_v26, 0.0  ;;  %v2130_v32 = vpop.f32.mrb[80].mxu0  ;;  %v4528_v25 = vpack.c.bf16 %v3724_v24, %v3723_v20 }
 0x259   : > { %v2131_v35 = vadd.f32 %v2130_v32, %v5765_v30  ;;  %v2132_v36 = vpop.f32.mrb[81].mxu0 }
 0x25a   : > { %v2133_v37 = vadd.f32 %v2132_v36, %v5769_v33  ;;  %2775 = vmatprep.mubr.f32.mxu1 %v2352_v29  ;;  %4529 = vmatpush1.bf16.msra.mxu1 %v4528_v25 }
 0x25b   : > { %2776 = vmatmul.mubr.f32.gmra.mrb[78].mxu1 %v2351_v34  ;;  %v2353_v40 = vmax.f32 %v2131_v35, 0.0  ;;  %4530 = vmatprep.subr.bf16.mxu1 %v4761_v31 }
 0x25c   : > { %v2354_v38 = vmax.f32 %v2133_v37, 0.0  ;;  %v2136_v39 = vpop.f32.mrb[82].mxu0 }
 0x25d   : > { %v2137_v41 = vadd.f32 %v2136_v39, %v5765_v30  ;;  %v2138_v42 = vpop.f32.mrb[83].mxu0 }
 0x25e   : > { %v2139_v43 = vadd.f32 %v2138_v42, %v5769_v33  ;;  %2781 = vmatprep.mubr.f32.mxu1 %v2354_v38 }
 0x25f   : > { %2782 = vmatmul.mubr.f32.gmra.mrb[80].mxu1 %v2353_v40  ;;  %v2355_v45 = vmax.f32 %v2137_v41, 0.0 }
 0x260   : > { %v2356_v44 = vmax.f32 %v2139_v43, 0.0  ;;  %v2142_v23 = vpop.f32.mrb[84].mxu0 }
 0x261   : > { %v2143_v46 = vadd.f32 %v2142_v23, %v5765_v30  ;;  %v2144_v47 = vpop.f32.mrb[85].mxu0 }
 0x262   : > { %v2145_v22 = vadd.f32 %v2144_v47, %v5769_v33  ;;  %2787 = vmatprep.mubr.f32.mxu1 %v2356_v44 }
 0x263   : > { %2788 = vmatmul.mubr.f32.gmra.mrb[82].mxu1 %v2355_v45  ;;  %v2357_v50 = vmax.f32 %v2143_v46, 0.0 }
 0x264   : > { %v2358_v48 = vmax.f32 %v2145_v22, 0.0  ;;  %v2148_v49 = vpop.f32.mrb[86].mxu0 }
 0x265   : > { %v2149_v51 = vadd.f32 %v2148_v49, %v5765_v30  ;;  %v2150_v52 = vpop.f32.mrb[87].mxu0  ;;  %v3725_v49 = vld [vmem:[#allocation5 + $0x90] sm:$0xff] }
 0x266   : > { %v2151_v53 = vadd.f32 %v2150_v52, %v5769_v33  ;;  %2793 = vmatprep.mubr.f32.mxu1 %v2358_v48 }
 0x267   : > { %2794 = vmatmul.mubr.f32.gmra.mrb[84].mxu1 %v2357_v50  ;;  %v2359_v59 = vmax.f32 %v2149_v51, 0.0  ;;  %v3726_v50 = vld [vmem:[#allocation5 + $0x98] sm:$0xff] }
 0x268   : > { %v2360_v57 = vmax.f32 %v2151_v53, 0.0  ;;  %v2154_v58 = vpop.f32.mrb[88].mxu0  ;;  %v4531_v51 = vpack.c.bf16 %v3726_v50, %v3725_v49 }
 0x269   : > { %v2155_v60 = vadd.f32 %v2154_v58, %v5765_v30  ;;  %v2156_v61 = vpop.f32.mrb[89].mxu0 }
 0x26a   : > { %v2157_v62 = vadd.f32 %v2156_v61, %v5769_v33  ;;  %2799 = vmatprep.mubr.f32.mxu1 %v2360_v57  ;;  %4532 = vmatpush1.bf16.msra.mxu1 %v4531_v51 }
 0x26b   : > { %2800 = vmatmul.mubr.f32.gmra.mrb[86].mxu1 %v2359_v59  ;;  %v2361_v1 = vmax.f32 %v2155_v60, 0.0  ;;  %4533 = vmatprep.subr.bf16.mxu1 %v4761_v31  ;;  %v2465_v60 = vld [vmem:[%s6436_s6] sm:$0x3] }
 0x26c   : > { %v2362_v63 = vmax.f32 %v2157_v62, 0.0  ;;  %v2160_v0 = vpop.f32.mrb[90].mxu0 }
 0x26d   : > { %v2161_v2 = vadd.f32 %v2160_v0, %v5765_v30  ;;  %v2162_v4 = vpop.f32.mrb[91].mxu0 }
 0x26e   : > { %v2163_v5 = vadd.f32 %v2162_v4, %v5769_v33  ;;  %2805 = vmatprep.mubr.f32.mxu1 %v2362_v63 }
 0x26f   : > { %2806 = vmatmul.mubr.f32.gmra.mrb[88].mxu1 %v2361_v1  ;;  %v2363_v9 = vmax.f32 %v2161_v2, 0.0  ;;  %v5945_v1 = vrot.slane %v2465_v60, %v5174_v3 }
 0x270   : > { %v2364_v7 = vmax.f32 %v2163_v5, 0.0  ;;  %v2166_v8 = vpop.f32.mrb[92].mxu0  ;;  %v5948_v5 = vrot.slane %v2465_v60, %v5179_v6 }
 0x271   : > { %v2167_v10 = vadd.f32 %v2166_v8, %v5765_v30  ;;  %v2168_v11 = vpop.f32.mrb[93].mxu0 }
 0x272   : > { %v2169_v12 = vadd.f32 %v2168_v11, %v5769_v33  ;;  %2811 = vmatprep.mubr.f32.mxu1 %v2364_v7 }
 0x273   : > { %2812 = vmatmul.mubr.f32.gmra.mrb[90].mxu1 %v2363_v9  ;;  %v2365_v15 = vmax.f32 %v2167_v10, 0.0 }
 0x274   : > { %v2366_v13 = vmax.f32 %v2169_v12, 0.0  ;;  %v2172_v14 = vpop.f32.mrb[94].mxu0 }
 0x275   : > { %v2173_v18 = vadd.f32 %v2172_v14, %v5765_v30  ;;  %v2174_v19 = vpop.f32.mrb[95].mxu0 }
 0x276   : > { %v2175_v21 = vadd.f32 %v2174_v19, %v5769_v33  ;;  %2817 = vmatprep.mubr.f32.mxu1 %v2366_v13 }
 0x277   : > { %2818 = vmatmul.mubr.f32.gmra.mrb[92].mxu1 %v2365_v15  ;;  %v2367_v17 = vmax.f32 %v2173_v18, 0.0 }
 0x278   : > { %v2368_v16 = vmax.f32 %v2175_v21, 0.0  ;;  %v2178_v26 = vpop.f32.mrb[96].mxu0 }
 0x279   : > { %v2179_v27 = vadd.f32 %v2178_v26, %v5765_v30  ;;  %v2180_v28 = vpop.f32.mrb[97].mxu0  ;;  %v3727_v26 = vld [vmem:[#allocation5 + $0xa0] sm:$0xff] }
 0x27a   : > { %v2181_v29 = vadd.f32 %v2180_v28, %v5769_v33  ;;  %2823 = vmatprep.mubr.f32.mxu1 %v2368_v16 }
 0x27b   : > { %2824 = vmatmul.mubr.f32.gmra.mrb[94].mxu1 %v2367_v17  ;;  %v2369_v35 = vmax.f32 %v2179_v27, 0.0  ;;  %v3728_v17 = vld [vmem:[#allocation5 + $0xa8] sm:$0xff] }
 0x27c   : > { %v2370_v32 = vmax.f32 %v2181_v29, 0.0  ;;  %v2184_v34 = vpop.f32.mrb[98].mxu0 }
 0x27d   : > { %v2185_v36 = vadd.f32 %v2184_v34, %v5765_v30  ;;  %v2186_v37 = vpop.f32.mrb[99].mxu0 }
 0x27e   : > { %v2187_v38 = vadd.f32 %v2186_v37, %v5769_v33  ;;  %2829 = vmatprep.mubr.f32.mxu1 %v2370_v32  ;;  %v4534_v32 = vpack.c.bf16 %v3728_v17, %v3727_v26 }
 0x27f   : > { %2830 = vmatmul.mubr.f32.gmra.mrb[96].mxu1 %v2369_v35  ;;  %v2371_v41 = vmax.f32 %v2185_v36, 0.0 }
 0x280   : > { %v2372_v39 = vmax.f32 %v2187_v38, 0.0  ;;  %v2190_v40 = vpop.f32.mrb[100].mxu0  ;;  %4535 = vmatpush1.bf16.msra.mxu1 %v4534_v32 }
 0x281   : > { %v2191_v42 = vadd.f32 %v2190_v40, %v5765_v30  ;;  %v2192_v43 = vpop.f32.mrb[101].mxu0  ;;  %4536 = vmatprep.subr.bf16.mxu1 %v4761_v31 }
 0x282   : > { %v2193_v44 = vadd.f32 %v2192_v43, %v5769_v33  ;;  %2835 = vmatprep.mubr.f32.mxu1 %v2372_v39 }
 0x283   : > { %2836 = vmatmul.mubr.f32.gmra.mrb[98].mxu1 %v2371_v41  ;;  %v2373_v46 = vmax.f32 %v2191_v42, 0.0 }
 0x284   : > { %v2374_v23 = vmax.f32 %v2193_v44, 0.0  ;;  %v2196_v45 = vpop.f32.mrb[102].mxu0 }
 0x285   : > { %v2197_v47 = vadd.f32 %v2196_v45, %v5765_v30  ;;  %v2198_v22 = vpop.f32.mrb[103].mxu0 }
 0x286   : > { %v2199_v48 = vadd.f32 %v2198_v22, %v5769_v33  ;;  %2841 = vmatprep.mubr.f32.mxu1 %v2374_v23 }
 0x287   : > { %2842 = vmatmul.mubr.f32.gmra.mrb[100].mxu1 %v2373_v46  ;;  %v2375_v54 = vmax.f32 %v2197_v47, 0.0 }
 0x288   : > { %v2376_v52 = vmax.f32 %v2199_v48, 0.0  ;;  %v2202_v53 = vpop.f32.mrb[104].mxu0 }
 0x289   : > { %v2203_v55 = vadd.f32 %v2202_v53, %v5765_v30  ;;  %v2204_v56 = vpop.f32.mrb[105].mxu0 }
 0x28a   : > { %v2205_v57 = vadd.f32 %v2204_v56, %v5769_v33  ;;  %2847 = vmatprep.mubr.f32.mxu1 %v2376_v52 }
 0x28b   : > { %2848 = vmatmul.mubr.f32.gmra.mrb[102].mxu1 %v2375_v54  ;;  %v2377_v61 = vmax.f32 %v2203_v55, 0.0 }
 0x28c   : > { %v2378_v58 = vmax.f32 %v2205_v57, 0.0  ;;  %v2208_v59 = vpop.f32.mrb[106].mxu0 }
 0x28d   : > { %v2209_v62 = vadd.f32 %v2208_v59, %v5765_v30  ;;  %v2210_v63 = vpop.f32.mrb[107].mxu0 }
 0x28e   : > { %v2211_v0 = vadd.f32 %v2210_v63, %v5769_v33  ;;  %2853 = vmatprep.mubr.f32.mxu1 %v2378_v58 }
 0x28f   : > { %2854 = vmatmul.mubr.f32.gmra.mrb[104].mxu1 %v2377_v61  ;;  %v2379_v7 = vmax.f32 %v2209_v62, 0.0 }
 0x290   : > { %v2380_v2 = vmax.f32 %v2211_v0, 0.0  ;;  %v2214_v4 = vpop.f32.mrb[108].mxu0 }
 0x291   : > { %v2215_v8 = vadd.f32 %v2214_v4, %v5765_v30  ;;  %v2216_v9 = vpop.f32.mrb[109].mxu0 }
 0x292   : > { %v2217_v10 = vadd.f32 %v2216_v9, %v5769_v33  ;;  %v2543_v11 = vpop.f32.mrb[0].mxu1  ;;  %2859 = vmatprep.mubr.f32.mxu1 %v2380_v2 }
 0x293   : > { %v2544_v12 = vadd.f32 %v2543_v11, %v5945_v1  ;;  %v2545_v13 = vpop.f32.mrb[1].mxu1  ;;  %2860 = vmatmul.mubr.f32.gmra.mrb[106].mxu1 %v2379_v7  ;;  %v2381_v19 = vmax.f32 %v2215_v8, 0.0 }
 0x294   : > { %v2382_v14 = vmax.f32 %v2217_v10, 0.0  ;;  %v2546_v15 = vadd.f32 %v2545_v13, %v5948_v5  ;;  %v2220_v18 = vpop.f32.mrb[110].mxu0 }
 0x295   : > { %v2221_v21 = vadd.f32 %v2220_v18, %v5765_v30  ;;  %v2222_v20 = vpop.f32.mrb[111].mxu0  ;;  %v2926_v27 = vmax.f32 %v2544_v12, 0.0 }
 0x296   : > { %v2927_v24 = vmax.f32 %v2546_v15, 0.0  ;;  %v2223_v25 = vadd.f32 %v2222_v20, %v5769_v33  ;;  %v2549_v16 = vpop.f32.mrb[2].mxu1  ;;  %2865 = vmatprep.mubr.f32.mxu1 %v2382_v14 }
 0x297   : > { %v2550_v28 = vadd.f32 %v2549_v16, %v5945_v1  ;;  %v2551_v29 = vpop.f32.mrb[3].mxu1  ;;  %2866 = vmatmul.mubr.f32.gmra.mrb[108].mxu1 %v2381_v19  ;;  %v2383_v37 = vmax.f32 %v2221_v21, 0.0  ;;  %v3729_v19 = vld [vmem:[#allocation5 + $0xb0] sm:$0xff]  ;;  %v3730_v21 = vld [vmem:[#allocation5 + $0xb8] sm:$0xff] }
 0x298   : > { %v2384_v34 = vmax.f32 %v2223_v25, 0.0  ;;  %v2552_v35 = vadd.f32 %v2551_v29, %v5948_v5  ;;  %v2226_v36 = vpop.f32.mrb[112].mxu0  ;;  %3194 = vmatprep.mubr.f32.mxu0 %v2927_v24  ;;  %v4537_v16 = vpack.c.bf16 %v3730_v21, %v3729_v19 }
 0x299   : > { %v2227_v38 = vadd.f32 %v2226_v36, %v5765_v30  ;;  %v2228_v39 = vpop.f32.mrb[113].mxu0  ;;  %3195 = vmatmul.mubr.f32.vlgmr.msra.gmra.mrb[128].mxu0 %v2926_v27  ;;  %v2928_v43 = vmax.f32 %v2550_v28, 0.0 }
 0x29a   : > { %v2929_v40 = vmax.f32 %v2552_v35, 0.0  ;;  %v2229_v41 = vadd.f32 %v2228_v39, %v5769_v33  ;;  %v2555_v42 = vpop.f32.mrb[4].mxu1  ;;  %2871 = vmatprep.mubr.f32.mxu1 %v2384_v34  ;;  %4538 = vmatpush1.bf16.msra.mxu1 %v4537_v16 }
 0x29b   : > { %v2556_v44 = vadd.f32 %v2555_v42, %v5945_v1  ;;  %v2557_v23 = vpop.f32.mrb[5].mxu1  ;;  %2872 = vmatmul.mubr.f32.gmra.mrb[110].mxu1 %v2383_v37  ;;  %v2385_v22 = vmax.f32 %v2227_v38, 0.0  ;;  %4539 = vmatprep.subr.bf16.mxu1 %v4761_v31 }
 0x29c   : > { %v2386_v45 = vmax.f32 %v2229_v41, 0.0  ;;  %v2558_v46 = vadd.f32 %v2557_v23, %v5948_v5  ;;  %v2232_v47 = vpop.f32.mrb[114].mxu0  ;;  %3200 = vmatprep.mubr.f32.mxu0 %v2929_v40 }
 0x29d   : > { %v2233_v48 = vadd.f32 %v2232_v47, %v5765_v30  ;;  %v2234_v49 = vpop.f32.mrb[115].mxu0  ;;  %3201 = vmatmul.mubr.f32.gmra.mrb[130].mxu0 %v2928_v43  ;;  %v2930_v53 = vmax.f32 %v2556_v44, 0.0 }
 0x29e   : > { %v2931_v50 = vmax.f32 %v2558_v46, 0.0  ;;  %v2235_v51 = vadd.f32 %v2234_v49, %v5769_v33  ;;  %v2561_v52 = vpop.f32.mrb[6].mxu1  ;;  %2877 = vmatprep.mubr.f32.mxu1 %v2386_v45 }
 0x29f   : > { %v2562_v54 = vadd.f32 %v2561_v52, %v5945_v1  ;;  %v2563_v55 = vpop.f32.mrb[7].mxu1  ;;  %2878 = vmatmul.mubr.f32.gmra.mrb[112].mxu1 %v2385_v22  ;;  %v2387_v59 = vmax.f32 %v2233_v48, 0.0 }
 0x2a0   : > { %v2388_v56 = vmax.f32 %v2235_v51, 0.0  ;;  %v2564_v57 = vadd.f32 %v2563_v55, %v5948_v5  ;;  %v2238_v58 = vpop.f32.mrb[116].mxu0  ;;  %3206 = vmatprep.mubr.f32.mxu0 %v2931_v50 }
 0x2a1   : > { %v2239_v60 = vadd.f32 %v2238_v58, %v5765_v30  ;;  %v2240_v61 = vpop.f32.mrb[117].mxu0  ;;  %3207 = vmatmul.mubr.f32.gmra.mrb[132].mxu0 %v2930_v53  ;;  %v2932_v2 = vmax.f32 %v2562_v54, 0.0 }
 0x2a2   : > { %v2933_v62 = vmax.f32 %v2564_v57, 0.0  ;;  %v2241_v63 = vadd.f32 %v2240_v61, %v5769_v33  ;;  %v2567_v0 = vpop.f32.mrb[8].mxu1  ;;  %2883 = vmatprep.mubr.f32.mxu1 %v2388_v56 }
 0x2a3   : > { %v2568_v4 = vadd.f32 %v2567_v0, %v5945_v1  ;;  %v2569_v7 = vpop.f32.mrb[9].mxu1  ;;  %2884 = vmatmul.mubr.f32.gmra.mrb[114].mxu1 %v2387_v59  ;;  %v2389_v11 = vmax.f32 %v2239_v60, 0.0 }
 0x2a4   : > { %v2390_v8 = vmax.f32 %v2241_v63, 0.0  ;;  %v2570_v9 = vadd.f32 %v2569_v7, %v5948_v5  ;;  %v2244_v10 = vpop.f32.mrb[118].mxu0  ;;  %3212 = vmatprep.mubr.f32.mxu0 %v2933_v62 }
 0x2a5   : > { %v2245_v12 = vadd.f32 %v2244_v10, %v5765_v30  ;;  %v2246_v13 = vpop.f32.mrb[119].mxu0  ;;  %3213 = vmatmul.mubr.f32.gmra.mrb[134].mxu0 %v2932_v2  ;;  %v2934_v20 = vmax.f32 %v2568_v4, 0.0 }
 0x2a6   : > { %v2935_v14 = vmax.f32 %v2570_v9, 0.0  ;;  %v2247_v15 = vadd.f32 %v2246_v13, %v5769_v33  ;;  %v2573_v18 = vpop.f32.mrb[10].mxu1  ;;  %2889 = vmatprep.mubr.f32.mxu1 %v2390_v8 }
 0x2a7   : > { %v2574_v24 = vadd.f32 %v2573_v18, %v5945_v1  ;;  %v2575_v25 = vpop.f32.mrb[11].mxu1  ;;  %2890 = vmatmul.mubr.f32.gmra.mrb[116].mxu1 %v2389_v11  ;;  %v2391_v28 = vmax.f32 %v2245_v12, 0.0  ;;  %v3731_v11 = vld [vmem:[#allocation5 + $0xc0] sm:$0xff]  ;;  %v3732_v12 = vld [vmem:[#allocation5 + $0xc8] sm:$0xff] }
 0x2a8   : > { %v2392_v26 = vmax.f32 %v2247_v15, 0.0  ;;  %v2576_v17 = vadd.f32 %v2575_v25, %v5948_v5  ;;  %v2250_v27 = vpop.f32.mrb[120].mxu0  ;;  %3218 = vmatprep.mubr.f32.mxu0 %v2935_v14  ;;  %v4540_v18 = vpack.c.bf16 %v3732_v12, %v3731_v11 }
 0x2a9   : > { %v2251_v29 = vadd.f32 %v2250_v27, %v5765_v30  ;;  %v2252_v32 = vpop.f32.mrb[121].mxu0  ;;  %3219 = vmatmul.mubr.f32.gmra.mrb[136].mxu0 %v2934_v20  ;;  %v2936_v37 = vmax.f32 %v2574_v24, 0.0 }
 0x2aa   : > { %v2937_v34 = vmax.f32 %v2576_v17, 0.0  ;;  %v2253_v35 = vadd.f32 %v2252_v32, %v5769_v33  ;;  %v2579_v36 = vpop.f32.mrb[12].mxu1  ;;  %2895 = vmatprep.mubr.f32.mxu1 %v2392_v26  ;;  %4541 = vmatpush1.bf16.msra.mxu1 %v4540_v18 }
 0x2ab   : > { %v2580_v38 = vadd.f32 %v2579_v36, %v5945_v1  ;;  %v2581_v39 = vpop.f32.mrb[13].mxu1  ;;  %2896 = vmatmul.mubr.f32.gmra.mrb[118].mxu1 %v2391_v28  ;;  %v2393_v43 = vmax.f32 %v2251_v29, 0.0  ;;  %4542 = vmatprep.subr.bf16.mxu1 %v4761_v31 }
 0x2ac   : > { %v2394_v40 = vmax.f32 %v2253_v35, 0.0  ;;  %v2582_v41 = vadd.f32 %v2581_v39, %v5948_v5  ;;  %v2256_v42 = vpop.f32.mrb[122].mxu0  ;;  %3224 = vmatprep.mubr.f32.mxu0 %v2937_v34 }
 0x2ad   : > { %v2257_v44 = vadd.f32 %v2256_v42, %v5765_v30  ;;  %v2258_v23 = vpop.f32.mrb[123].mxu0  ;;  %3225 = vmatmul.mubr.f32.gmra.mrb[138].mxu0 %v2936_v37  ;;  %v2938_v22 = vmax.f32 %v2580_v38, 0.0 }
 0x2ae   : > { %v2939_v45 = vmax.f32 %v2582_v41, 0.0  ;;  %v2259_v46 = vadd.f32 %v2258_v23, %v5769_v33  ;;  %v2585_v47 = vpop.f32.mrb[14].mxu1  ;;  %2901 = vmatprep.mubr.f32.mxu1 %v2394_v40 }
 0x2af   : > { %v2586_v48 = vadd.f32 %v2585_v47, %v5945_v1  ;;  %v2587_v49 = vpop.f32.mrb[15].mxu1  ;;  %2902 = vmatmul.mubr.f32.gmra.mrb[120].mxu1 %v2393_v43  ;;  %v2395_v53 = vmax.f32 %v2257_v44, 0.0  ;;  %v3733_v43 = vld [vmem:[#allocation5 + $0xd0] sm:$0xff]  ;;  %v3734_v44 = vld [vmem:[#allocation5 + $0xd8] sm:$0xff] }
 0x2b0   : > { %v2396_v50 = vmax.f32 %v2259_v46, 0.0  ;;  %v2588_v51 = vadd.f32 %v2587_v49, %v5948_v5  ;;  %v2262_v52 = vpop.f32.mrb[124].mxu0  ;;  %3230 = vmatprep.mubr.f32.mxu0 %v2939_v45  ;;  %v4543_v47 = vpack.c.bf16 %v3734_v44, %v3733_v43 }
 0x2b1   : > { %v2263_v54 = vadd.f32 %v2262_v52, %v5765_v30  ;;  %v2264_v55 = vpop.f32.mrb[125].mxu0  ;;  %3231 = vmatmul.mubr.f32.gmra.mrb[140].mxu0 %v2938_v22  ;;  %v2940_v59 = vmax.f32 %v2586_v48, 0.0 }
 0x2b2   : > { %v2941_v56 = vmax.f32 %v2588_v51, 0.0  ;;  %v2265_v57 = vadd.f32 %v2264_v55, %v5769_v33  ;;  %v2591_v58 = vpop.f32.mrb[16].mxu1  ;;  %2907 = vmatprep.mubr.f32.mxu1 %v2396_v50  ;;  %4544 = vmatpush1.bf16.msra.mxu1 %v4543_v47 }
 0x2b3   : > { %v2592_v60 = vadd.f32 %v2591_v58, %v5945_v1  ;;  %v2593_v61 = vpop.f32.mrb[17].mxu1  ;;  %2908 = vmatmul.mubr.f32.gmra.mrb[122].mxu1 %v2395_v53  ;;  %v2397_v2 = vmax.f32 %v2263_v54, 0.0  ;;  %4545 = vmatprep.subr.bf16.mxu1 %v4761_v31 }
 0x2b4   : > { %v2398_v62 = vmax.f32 %v2265_v57, 0.0  ;;  %v2594_v63 = vadd.f32 %v2593_v61, %v5948_v5  ;;  %v2268_v0 = vpop.f32.mrb[126].mxu0  ;;  %3236 = vmatprep.mubr.f32.mxu0 %v2941_v56 }
 0x2b5   : > { %v2269_v4 = vadd.f32 %v2268_v0, %v5765_v30  ;;  %v2270_v7 = vpop.f32.mrb[127].mxu0  ;;  %3237 = vmatmul.mubr.f32.gmra.mrb[142].mxu0 %v2940_v59  ;;  %v2942_v13 = vmax.f32 %v2592_v60, 0.0 }
 0x2b6   : > { %v2943_v8 = vmax.f32 %v2594_v63, 0.0  ;;  %v2271_v9 = vadd.f32 %v2270_v7, %v5769_v33  ;;  %v2597_v10 = vpop.f32.mrb[18].mxu1  ;;  %2913 = vmatprep.mubr.f32.mxu1 %v2398_v62 }
 0x2b7   : > { %v2598_v14 = vadd.f32 %v2597_v10, %v5945_v1  ;;  %v2599_v15 = vpop.f32.mrb[19].mxu1  ;;  %2914 = vmatmul.mubr.f32.gmra.mrb[124].mxu1 %v2397_v2  ;;  %v2399_v30 = vmax.f32 %v2269_v4, 0.0 }
 0x2b8   : > { %v2400_v19 = vmax.f32 %v2271_v9, 0.0  ;;  %v2600_v21 = vadd.f32 %v2599_v15, %v5948_v5  ;;  %3242 = vmatprep.mubr.f32.mxu0 %v2943_v8  ;;  %v3735_v8 = vld [vmem:[#allocation5 + $0xe0] sm:$0xff]  ;;  %v3736_v9 = vld [vmem:[#allocation5 + $0xe8] sm:$0xff] }
 0x2b9   : > { %3243 = vmatmul.mubr.f32.gmra.mrb[144].mxu0 %v2942_v13  ;;  %v2944_v33 = vmax.f32 %v2598_v14, 0.0  ;;  %v4546_v13 = vpack.c.bf16 %v3736_v9, %v3735_v8 }
 0x2ba   : > { %v2945_v20 = vmax.f32 %v2600_v21, 0.0  ;;  %v2603_v24 = vpop.f32.mrb[20].mxu1  ;;  %2919 = vmatprep.mubr.f32.mxu1 %v2400_v19 }
 0x2bb   : > { %v2604_v25 = vadd.f32 %v2603_v24, %v5945_v1  ;;  %v2605_v16 = vpop.f32.mrb[21].mxu1  ;;  %2920 = vmatmul.mubr.f32.gmra.mrb[126].mxu1 %v2399_v30 }
 0x2bc   : > { %v2606_v26 = vadd.f32 %v2605_v16, %v5948_v5  ;;  %3248 = vmatprep.mubr.f32.mxu0 %v2945_v20  ;;  %4547 = vmatpush1.bf16.msra.mxu1 %v4546_v13 }
 0x2bd   : > { %3249 = vmatmul.mubr.f32.gmra.mrb[146].mxu0 %v2944_v33  ;;  %v2946_v28 = vmax.f32 %v2604_v25, 0.0  ;;  %4548 = vmatprep.subr.bf16.mxu1 %v4761_v31 }
 0x2be   : > { %v2947_v17 = vmax.f32 %v2606_v26, 0.0  ;;  %v2609_v27 = vpop.f32.mrb[22].mxu1 }
 0x2bf   : > { %v2610_v29 = vadd.f32 %v2609_v27, %v5945_v1  ;;  %v2611_v32 = vpop.f32.mrb[23].mxu1 }
 0x2c0   : > { %v2612_v34 = vadd.f32 %v2611_v32, %v5948_v5  ;;  %3254 = vmatprep.mubr.f32.mxu0 %v2947_v17 }
 0x2c1   : > { %3255 = vmatmul.mubr.f32.gmra.mrb[148].mxu0 %v2946_v28  ;;  %v2948_v37 = vmax.f32 %v2610_v29, 0.0 }
 0x2c2   : > { %v2949_v35 = vmax.f32 %v2612_v34, 0.0  ;;  %v2615_v36 = vpop.f32.mrb[24].mxu1 }
 0x2c3   : > { %v2616_v38 = vadd.f32 %v2615_v36, %v5945_v1  ;;  %v2617_v39 = vpop.f32.mrb[25].mxu1 }
 0x2c4   : > { %v2618_v40 = vadd.f32 %v2617_v39, %v5948_v5  ;;  %3260 = vmatprep.mubr.f32.mxu0 %v2949_v35 }
 0x2c5   : > { %3261 = vmatmul.mubr.f32.gmra.mrb[150].mxu0 %v2948_v37  ;;  %v2950_v23 = vmax.f32 %v2616_v38, 0.0  ;;  %v3737_v37 = vld [vmem:[#allocation5 + $0xf0] sm:$0xff]  ;;  %v3738_v38 = vld [vmem:[#allocation5 + $0xf8] sm:$0xff] }
 0x2c6   : > { %v2951_v41 = vmax.f32 %v2618_v40, 0.0  ;;  %v2621_v42 = vpop.f32.mrb[26].mxu1 }
 0x2c7   : > { %v2622_v45 = vadd.f32 %v2621_v42, %v5945_v1  ;;  %v2623_v46 = vpop.f32.mrb[27].mxu1  ;;  %v4549_v42 = vpack.c.bf16 %v3738_v38, %v3737_v37 }
 0x2c8   : > { %v2624_v22 = vadd.f32 %v2623_v46, %v5948_v5  ;;  %3266 = vmatprep.mubr.f32.mxu0 %v2951_v41 }
 0x2c9   : > { %3267 = vmatmul.mubr.f32.gmra.mrb[152].mxu0 %v2950_v23  ;;  %v2952_v50 = vmax.f32 %v2622_v45, 0.0  ;;  %4550 = vmatpush1.bf16.msra.mxu1 %v4549_v42 }
 0x2ca   : > { %v2953_v48 = vmax.f32 %v2624_v22, 0.0  ;;  %v2627_v49 = vpop.f32.mrb[28].mxu1 }
 0x2cb   : > { %v2628_v51 = vadd.f32 %v2627_v49, %v5945_v1  ;;  %v2629_v52 = vpop.f32.mrb[29].mxu1 }
 0x2cc   : > { %v2630_v53 = vadd.f32 %v2629_v52, %v5948_v5  ;;  %3272 = vmatprep.mubr.f32.mxu0 %v2953_v48 }
 0x2cd   : > { %3273 = vmatmul.mubr.f32.gmra.mrb[154].mxu0 %v2952_v50  ;;  %v2954_v56 = vmax.f32 %v2628_v51, 0.0 }
 0x2ce   : > { %v2955_v54 = vmax.f32 %v2630_v53, 0.0  ;;  %v2633_v55 = vpop.f32.mrb[30].mxu1 }
 0x2cf   : > { %v2634_v57 = vadd.f32 %v2633_v55, %v5945_v1  ;;  %v2635_v58 = vpop.f32.mrb[31].mxu1 }
 0x2d0   : > { %v2636_v59 = vadd.f32 %v2635_v58, %v5948_v5  ;;  %3278 = vmatprep.mubr.f32.mxu0 %v2955_v54 }
 0x2d1   : > { %3279 = vmatmul.mubr.f32.gmra.mrb[156].mxu0 %v2954_v56  ;;  %v2956_v62 = vmax.f32 %v2634_v57, 0.0 }
 0x2d2   : > { %v2957_v60 = vmax.f32 %v2636_v59, 0.0  ;;  %v2639_v61 = vpop.f32.mrb[32].mxu1 }
 0x2d3   : > { %v2640_v63 = vadd.f32 %v2639_v61, %v5945_v1  ;;  %v2641_v0 = vpop.f32.mrb[33].mxu1 }
 0x2d4   : > { %v2642_v2 = vadd.f32 %v2641_v0, %v5948_v5  ;;  %3284 = vmatprep.mubr.f32.mxu0 %v2957_v60 }
 0x2d5   : > { %3285 = vmatmul.mubr.f32.gmra.mrb[158].mxu0 %v2956_v62  ;;  %v2958_v10 = vmax.f32 %v2640_v63, 0.0 }
 0x2d6   : > { %v2959_v4 = vmax.f32 %v2642_v2, 0.0  ;;  %v2645_v7 = vpop.f32.mrb[34].mxu1 }
 0x2d7   : > { %v2646_v11 = vadd.f32 %v2645_v7, %v5945_v1  ;;  %v2647_v12 = vpop.f32.mrb[35].mxu1 }
 0x2d8   : > { %v2648_v14 = vadd.f32 %v2647_v12, %v5948_v5  ;;  %3290 = vmatprep.mubr.f32.mxu0 %v2959_v4 }
 0x2d9   : > { %3291 = vmatmul.mubr.f32.gmra.mrb[160].mxu0 %v2958_v10  ;;  %v2960_v19 = vmax.f32 %v2646_v11, 0.0 }
 0x2da   : > { %v2961_v15 = vmax.f32 %v2648_v14, 0.0  ;;  %v2651_v18 = vpop.f32.mrb[36].mxu1 }
 0x2db   : > { %v2652_v21 = vadd.f32 %v2651_v18, %v5945_v1  ;;  %v2653_v30 = vpop.f32.mrb[37].mxu1 }
 0x2dc   : > { %v2654_v20 = vadd.f32 %v2653_v30, %v5948_v5  ;;  %3296 = vmatprep.mubr.f32.mxu0 %v2961_v15 }
 0x2dd   : > { %3297 = vmatmul.mubr.f32.gmra.mrb[162].mxu0 %v2960_v19  ;;  %v2962_v25 = vmax.f32 %v2652_v21, 0.0 }
 0x2de   : > { %v2963_v24 = vmax.f32 %v2654_v20, 0.0  ;;  %v2657_v33 = vpop.f32.mrb[38].mxu1 }
 0x2df   : > { %v2658_v16 = vadd.f32 %v2657_v33, %v5945_v1  ;;  %v2659_v26 = vpop.f32.mrb[39].mxu1 }
 0x2e0   : > { %v2660_v17 = vadd.f32 %v2659_v26, %v5948_v5  ;;  %3302 = vmatprep.mubr.f32.mxu0 %v2963_v24 }
 0x2e1   : > { %3303 = vmatmul.mubr.f32.gmra.mrb[164].mxu0 %v2962_v25  ;;  %v2964_v28 = vmax.f32 %v2658_v16, 0.0 }
 0x2e2   : > { %v2965_v27 = vmax.f32 %v2660_v17, 0.0  ;;  %v2663_v31 = vpop.f32.mrb[40].mxu1 }
 0x2e3   : > { %v2664_v29 = vadd.f32 %v2663_v31, %v5945_v1  ;;  %v2665_v32 = vpop.f32.mrb[41].mxu1 }
 0x2e4   : > { %v2666_v34 = vadd.f32 %v2665_v32, %v5948_v5  ;;  %3308 = vmatprep.mubr.f32.mxu0 %v2965_v27 }
 0x2e5   : > { %3309 = vmatmul.mubr.f32.gmra.mrb[166].mxu0 %v2964_v28  ;;  %v2966_v39 = vmax.f32 %v2664_v29, 0.0 }
 0x2e6   : > { %v2967_v35 = vmax.f32 %v2666_v34, 0.0  ;;  %v2669_v36 = vpop.f32.mrb[42].mxu1 }
 0x2e7   : > { %v2670_v40 = vadd.f32 %v2669_v36, %v5945_v1  ;;  %v2671_v41 = vpop.f32.mrb[43].mxu1 }
 0x2e8   : > { %v2672_v43 = vadd.f32 %v2671_v41, %v5948_v5  ;;  %3314 = vmatprep.mubr.f32.mxu0 %v2967_v35 }
 0x2e9   : > { %3315 = vmatmul.mubr.f32.gmra.mrb[168].mxu0 %v2966_v39  ;;  %v2968_v45 = vmax.f32 %v2670_v40, 0.0 }
 0x2ea   : > { %v2969_v44 = vmax.f32 %v2672_v43, 0.0  ;;  %v2675_v23 = vpop.f32.mrb[44].mxu1 }
 0x2eb   : > { %v2676_v46 = vadd.f32 %v2675_v23, %v5945_v1  ;;  %v2677_v47 = vpop.f32.mrb[45].mxu1 }
 0x2ec   : > { %v2678_v22 = vadd.f32 %v2677_v47, %v5948_v5  ;;  %3320 = vmatprep.mubr.f32.mxu0 %v2969_v44 }
 0x2ed   : > { %3321 = vmatmul.mubr.f32.gmra.mrb[170].mxu0 %v2968_v45  ;;  %v2970_v50 = vmax.f32 %v2676_v46, 0.0 }
 0x2ee   : > { %v2971_v48 = vmax.f32 %v2678_v22, 0.0  ;;  %v2681_v49 = vpop.f32.mrb[46].mxu1 }
 0x2ef   : > { %v2682_v51 = vadd.f32 %v2681_v49, %v5945_v1  ;;  %v2683_v52 = vpop.f32.mrb[47].mxu1 }
 0x2f0   : > { %v2684_v53 = vadd.f32 %v2683_v52, %v5948_v5  ;;  %3326 = vmatprep.mubr.f32.mxu0 %v2971_v48 }
 0x2f1   : > { %3327 = vmatmul.mubr.f32.gmra.mrb[172].mxu0 %v2970_v50  ;;  %v2972_v56 = vmax.f32 %v2682_v51, 0.0 }
 0x2f2   : > { %v2973_v54 = vmax.f32 %v2684_v53, 0.0  ;;  %v2687_v55 = vpop.f32.mrb[48].mxu1 }
 0x2f3   : > { %v2688_v57 = vadd.f32 %v2687_v55, %v5945_v1  ;;  %v2689_v58 = vpop.f32.mrb[49].mxu1 }
 0x2f4   : > { %v2690_v59 = vadd.f32 %v2689_v58, %v5948_v5  ;;  %3332 = vmatprep.mubr.f32.mxu0 %v2973_v54 }
 0x2f5   : > { %3333 = vmatmul.mubr.f32.gmra.mrb[174].mxu0 %v2972_v56  ;;  %v2974_v62 = vmax.f32 %v2688_v57, 0.0 }
 0x2f6   : > { %v2975_v60 = vmax.f32 %v2690_v59, 0.0  ;;  %v2693_v61 = vpop.f32.mrb[50].mxu1 }
 0x2f7   : > { %v2694_v63 = vadd.f32 %v2693_v61, %v5945_v1  ;;  %v2695_v0 = vpop.f32.mrb[51].mxu1 }
 0x2f8   : > { %v2696_v2 = vadd.f32 %v2695_v0, %v5948_v5  ;;  %3338 = vmatprep.mubr.f32.mxu0 %v2975_v60 }
 0x2f9   : > { %3339 = vmatmul.mubr.f32.gmra.mrb[176].mxu0 %v2974_v62  ;;  %v2976_v8 = vmax.f32 %v2694_v63, 0.0 }
 0x2fa   : > { %v2977_v4 = vmax.f32 %v2696_v2, 0.0  ;;  %v2699_v7 = vpop.f32.mrb[52].mxu1 }
 0x2fb   : > { %v2700_v9 = vadd.f32 %v2699_v7, %v5945_v1  ;;  %v2701_v10 = vpop.f32.mrb[53].mxu1 }
 0x2fc   : > { %v2702_v11 = vadd.f32 %v2701_v10, %v5948_v5  ;;  %3344 = vmatprep.mubr.f32.mxu0 %v2977_v4 }
 0x2fd   : > { %3345 = vmatmul.mubr.f32.gmra.mrb[178].mxu0 %v2976_v8  ;;  %v2978_v14 = vmax.f32 %v2700_v9, 0.0 }
 0x2fe   : > { %v2979_v12 = vmax.f32 %v2702_v11, 0.0  ;;  %v2705_v13 = vpop.f32.mrb[54].mxu1 }
 0x2ff   : > { %v2706_v15 = vadd.f32 %v2705_v13, %v5945_v1  ;;  %v2707_v18 = vpop.f32.mrb[55].mxu1 }
 0x300   : > { %v2708_v19 = vadd.f32 %v2707_v18, %v5948_v5  ;;  %3350 = vmatprep.mubr.f32.mxu0 %v2979_v12 }
 0x301   : > { %3351 = vmatmul.mubr.f32.gmra.mrb[180].mxu0 %v2978_v14  ;;  %v2980_v20 = vmax.f32 %v2706_v15, 0.0 }
 0x302   : > { %v2981_v21 = vmax.f32 %v2708_v19, 0.0  ;;  %v2711_v30 = vpop.f32.mrb[56].mxu1 }
 0x303   : > { %v2712_v24 = vadd.f32 %v2711_v30, %v5945_v1  ;;  %v2713_v33 = vpop.f32.mrb[57].mxu1 }
 0x304   : > { %v2714_v25 = vadd.f32 %v2713_v33, %v5948_v5  ;;  %3356 = vmatprep.mubr.f32.mxu0 %v2981_v21 }
 0x305   : > { %3357 = vmatmul.mubr.f32.gmra.mrb[182].mxu0 %v2980_v20  ;;  %v2982_v17 = vmax.f32 %v2712_v24, 0.0 }
 0x306   : > { %v2983_v16 = vmax.f32 %v2714_v25, 0.0  ;;  %v2717_v26 = vpop.f32.mrb[58].mxu1 }
 0x307   : > { %v2718_v27 = vadd.f32 %v2717_v26, %v5945_v1  ;;  %v2719_v31 = vpop.f32.mrb[59].mxu1 }
 0x308   : > { %v2720_v28 = vadd.f32 %v2719_v31, %v5948_v5  ;;  %3362 = vmatprep.mubr.f32.mxu0 %v2983_v16 }
 0x309   : > { %3363 = vmatmul.mubr.f32.gmra.mrb[184].mxu0 %v2982_v17  ;;  %v2984_v34 = vmax.f32 %v2718_v27, 0.0 }
 0x30a   : > { %v2985_v29 = vmax.f32 %v2720_v28, 0.0  ;;  %v2723_v32 = vpop.f32.mrb[60].mxu1 }
 0x30b   : > { %v2724_v35 = vadd.f32 %v2723_v32, %v5945_v1  ;;  %v2725_v36 = vpop.f32.mrb[61].mxu1 }
 0x30c   : > { %v2726_v37 = vadd.f32 %v2725_v36, %v5948_v5  ;;  %3368 = vmatprep.mubr.f32.mxu0 %v2985_v29 }
 0x30d   : > { %3369 = vmatmul.mubr.f32.gmra.mrb[186].mxu0 %v2984_v34  ;;  %v2986_v40 = vmax.f32 %v2724_v35, 0.0 }
 0x30e   : > { %v2987_v38 = vmax.f32 %v2726_v37, 0.0  ;;  %v2729_v39 = vpop.f32.mrb[62].mxu1 }
 0x30f   : > { %v2730_v41 = vadd.f32 %v2729_v39, %v5945_v1  ;;  %v2731_v42 = vpop.f32.mrb[63].mxu1 }
 0x310   : > { %v2732_v43 = vadd.f32 %v2731_v42, %v5948_v5  ;;  %3374 = vmatprep.mubr.f32.mxu0 %v2987_v38 }
 0x311   : > { %3375 = vmatmul.mubr.f32.gmra.mrb[188].mxu0 %v2986_v40  ;;  %v2988_v45 = vmax.f32 %v2730_v41, 0.0 }
 0x312   : > { %v2989_v44 = vmax.f32 %v2732_v43, 0.0  ;;  %v2735_v23 = vpop.f32.mrb[64].mxu1 }
 0x313   : > { %v2736_v46 = vadd.f32 %v2735_v23, %v5945_v1  ;;  %v2737_v47 = vpop.f32.mrb[65].mxu1 }
 0x314   : > { %v2738_v22 = vadd.f32 %v2737_v47, %v5948_v5  ;;  %3380 = vmatprep.mubr.f32.mxu0 %v2989_v44 }
 0x315   : > { %3381 = vmatmul.mubr.f32.gmra.mrb[190].mxu0 %v2988_v45  ;;  %v2990_v50 = vmax.f32 %v2736_v46, 0.0 }
 0x316   : > { %v2991_v48 = vmax.f32 %v2738_v22, 0.0  ;;  %v2741_v49 = vpop.f32.mrb[66].mxu1 }
 0x317   : > { %v2742_v51 = vadd.f32 %v2741_v49, %v5945_v1  ;;  %v2743_v52 = vpop.f32.mrb[67].mxu1 }
 0x318   : > { %v2744_v53 = vadd.f32 %v2743_v52, %v5948_v5  ;;  %3386 = vmatprep.mubr.f32.mxu0 %v2991_v48 }
 0x319   : > { %3387 = vmatmul.mubr.f32.gmra.mrb[192].mxu0 %v2990_v50  ;;  %v2992_v56 = vmax.f32 %v2742_v51, 0.0 }
 0x31a   : > { %v2993_v54 = vmax.f32 %v2744_v53, 0.0  ;;  %v2747_v55 = vpop.f32.mrb[68].mxu1 }
 0x31b   : > { %v2748_v57 = vadd.f32 %v2747_v55, %v5945_v1  ;;  %v2749_v58 = vpop.f32.mrb[69].mxu1 }
 0x31c   : > { %v2750_v59 = vadd.f32 %v2749_v58, %v5948_v5  ;;  %3392 = vmatprep.mubr.f32.mxu0 %v2993_v54 }
 0x31d   : > { %3393 = vmatmul.mubr.f32.gmra.mrb[194].mxu0 %v2992_v56  ;;  %v2994_v62 = vmax.f32 %v2748_v57, 0.0 }
 0x31e   : > { %v2995_v60 = vmax.f32 %v2750_v59, 0.0  ;;  %v2753_v61 = vpop.f32.mrb[70].mxu1 }
 0x31f   : > { %v2754_v63 = vadd.f32 %v2753_v61, %v5945_v1  ;;  %v2755_v0 = vpop.f32.mrb[71].mxu1 }
 0x320   : > { %v2756_v2 = vadd.f32 %v2755_v0, %v5948_v5  ;;  %3398 = vmatprep.mubr.f32.mxu0 %v2995_v60 }
 0x321   : > { %3399 = vmatmul.mubr.f32.gmra.mrb[196].mxu0 %v2994_v62  ;;  %v2996_v8 = vmax.f32 %v2754_v63, 0.0 }
 0x322   : > { %v2997_v4 = vmax.f32 %v2756_v2, 0.0  ;;  %v2759_v7 = vpop.f32.mrb[72].mxu1 }
 0x323   : > { %v2760_v9 = vadd.f32 %v2759_v7, %v5945_v1  ;;  %v2761_v10 = vpop.f32.mrb[73].mxu1 }
 0x324   : > { %v2762_v11 = vadd.f32 %v2761_v10, %v5948_v5  ;;  %3404 = vmatprep.mubr.f32.mxu0 %v2997_v4 }
 0x325   : > { %3405 = vmatmul.mubr.f32.gmra.mrb[198].mxu0 %v2996_v8  ;;  %v2998_v14 = vmax.f32 %v2760_v9, 0.0 }
 0x326   : > { %v2999_v12 = vmax.f32 %v2762_v11, 0.0  ;;  %v2765_v13 = vpop.f32.mrb[74].mxu1 }
 0x327   : > { %v2766_v15 = vadd.f32 %v2765_v13, %v5945_v1  ;;  %v2767_v18 = vpop.f32.mrb[75].mxu1 }
 0x328   : > { %v2768_v19 = vadd.f32 %v2767_v18, %v5948_v5  ;;  %3410 = vmatprep.mubr.f32.mxu0 %v2999_v12 }
 0x329   : > { %3411 = vmatmul.mubr.f32.gmra.mrb[200].mxu0 %v2998_v14  ;;  %v3000_v20 = vmax.f32 %v2766_v15, 0.0 }
 0x32a   : > { %v3001_v21 = vmax.f32 %v2768_v19, 0.0  ;;  %v2771_v30 = vpop.f32.mrb[76].mxu1 }
 0x32b   : > { %v2772_v24 = vadd.f32 %v2771_v30, %v5945_v1  ;;  %v2773_v33 = vpop.f32.mrb[77].mxu1 }
 0x32c   : > { %v2774_v25 = vadd.f32 %v2773_v33, %v5948_v5  ;;  %3416 = vmatprep.mubr.f32.mxu0 %v3001_v21 }
 0x32d   : > { %3417 = vmatmul.mubr.f32.gmra.mrb[202].mxu0 %v3000_v20  ;;  %v3002_v17 = vmax.f32 %v2772_v24, 0.0 }
 0x32e   : > { %v3003_v16 = vmax.f32 %v2774_v25, 0.0  ;;  %v2777_v26 = vpop.f32.mrb[78].mxu1 }
 0x32f   : > { %v2778_v27 = vadd.f32 %v2777_v26, %v5945_v1  ;;  %v2779_v31 = vpop.f32.mrb[79].mxu1 }
 0x330   : > { %v2780_v28 = vadd.f32 %v2779_v31, %v5948_v5  ;;  %3422 = vmatprep.mubr.f32.mxu0 %v3003_v16 }
 0x331   : > { %3423 = vmatmul.mubr.f32.gmra.mrb[204].mxu0 %v3002_v17  ;;  %v3004_v34 = vmax.f32 %v2778_v27, 0.0 }
 0x332   : > { %v3005_v29 = vmax.f32 %v2780_v28, 0.0  ;;  %v2783_v32 = vpop.f32.mrb[80].mxu1 }
 0x333   : > { %v2784_v35 = vadd.f32 %v2783_v32, %v5945_v1  ;;  %v2785_v36 = vpop.f32.mrb[81].mxu1 }
 0x334   : > { %v2786_v37 = vadd.f32 %v2785_v36, %v5948_v5  ;;  %3428 = vmatprep.mubr.f32.mxu0 %v3005_v29 }
 0x335   : > { %3429 = vmatmul.mubr.f32.gmra.mrb[206].mxu0 %v3004_v34  ;;  %v3006_v40 = vmax.f32 %v2784_v35, 0.0 }
 0x336   : > { %v3007_v38 = vmax.f32 %v2786_v37, 0.0  ;;  %v2789_v39 = vpop.f32.mrb[82].mxu1 }
 0x337   : > { %v2790_v41 = vadd.f32 %v2789_v39, %v5945_v1  ;;  %v2791_v42 = vpop.f32.mrb[83].mxu1 }
 0x338   : > { %v2792_v43 = vadd.f32 %v2791_v42, %v5948_v5  ;;  %3434 = vmatprep.mubr.f32.mxu0 %v3007_v38 }
 0x339   : > { %3435 = vmatmul.mubr.f32.gmra.mrb[208].mxu0 %v3006_v40  ;;  %v3008_v45 = vmax.f32 %v2790_v41, 0.0 }
 0x33a   : > { %v3009_v44 = vmax.f32 %v2792_v43, 0.0  ;;  %v2795_v23 = vpop.f32.mrb[84].mxu1 }
 0x33b   : > { %v2796_v46 = vadd.f32 %v2795_v23, %v5945_v1  ;;  %v2797_v47 = vpop.f32.mrb[85].mxu1 }
 0x33c   : > { %v2798_v22 = vadd.f32 %v2797_v47, %v5948_v5  ;;  %3440 = vmatprep.mubr.f32.mxu0 %v3009_v44 }
 0x33d   : > { %3441 = vmatmul.mubr.f32.gmra.mrb[210].mxu0 %v3008_v45  ;;  %v3010_v50 = vmax.f32 %v2796_v46, 0.0 }
 0x33e   : > { %v3011_v48 = vmax.f32 %v2798_v22, 0.0  ;;  %v2801_v49 = vpop.f32.mrb[86].mxu1 }
 0x33f   : > { %v2802_v51 = vadd.f32 %v2801_v49, %v5945_v1  ;;  %v2803_v52 = vpop.f32.mrb[87].mxu1 }
 0x340   : > { %v2804_v53 = vadd.f32 %v2803_v52, %v5948_v5  ;;  %3446 = vmatprep.mubr.f32.mxu0 %v3011_v48 }
 0x341   : > { %3447 = vmatmul.mubr.f32.gmra.mrb[212].mxu0 %v3010_v50  ;;  %v3012_v56 = vmax.f32 %v2802_v51, 0.0  ;;  %v3118_v50 = vld [vmem:[%s6438_s8] sm:$0x3] }
 0x342   : > { %v3013_v54 = vmax.f32 %v2804_v53, 0.0  ;;  %v2807_v55 = vpop.f32.mrb[88].mxu1 }
 0x343   : > { %v2808_v57 = vadd.f32 %v2807_v55, %v5945_v1  ;;  %v2809_v58 = vpop.f32.mrb[89].mxu1  ;;  %v6087_v55 = vrot.slane %v3118_v50, %v5174_v3 }
 0x344   : > { %v2810_v59 = vadd.f32 %v2809_v58, %v5948_v5  ;;  %3452 = vmatprep.mubr.f32.mxu0 %v3013_v54  ;;  %v6090_v58 = vrot.slane %v3118_v50, %v5179_v6 }
 0x345   : > { %3453 = vmatmul.mubr.f32.gmra.mrb[214].mxu0 %v3012_v56  ;;  %v3014_v62 = vmax.f32 %v2808_v57, 0.0 }
 0x346   : > { %v3015_v60 = vmax.f32 %v2810_v59, 0.0  ;;  %v2813_v61 = vpop.f32.mrb[90].mxu1 }
 0x347   : > { %v2814_v63 = vadd.f32 %v2813_v61, %v5945_v1  ;;  %v2815_v0 = vpop.f32.mrb[91].mxu1 }
 0x348   : > { %v2816_v2 = vadd.f32 %v2815_v0, %v5948_v5  ;;  %3458 = vmatprep.mubr.f32.mxu0 %v3015_v60 }
 0x349   : > { %3459 = vmatmul.mubr.f32.gmra.mrb[216].mxu0 %v3014_v62  ;;  %v3016_v8 = vmax.f32 %v2814_v63, 0.0 }
 0x34a   : > { %v3017_v4 = vmax.f32 %v2816_v2, 0.0  ;;  %v2819_v7 = vpop.f32.mrb[92].mxu1 }
 0x34b   : > { %v2820_v9 = vadd.f32 %v2819_v7, %v5945_v1  ;;  %v2821_v10 = vpop.f32.mrb[93].mxu1 }
 0x34c   : > { %v2822_v11 = vadd.f32 %v2821_v10, %v5948_v5  ;;  %3464 = vmatprep.mubr.f32.mxu0 %v3017_v4 }
 0x34d   : > { %3465 = vmatmul.mubr.f32.gmra.mrb[218].mxu0 %v3016_v8  ;;  %v3018_v14 = vmax.f32 %v2820_v9, 0.0 }
 0x34e   : > { %v3019_v12 = vmax.f32 %v2822_v11, 0.0  ;;  %v2825_v13 = vpop.f32.mrb[94].mxu1 }
 0x34f   : > { %v2826_v15 = vadd.f32 %v2825_v13, %v5945_v1  ;;  %v2827_v18 = vpop.f32.mrb[95].mxu1 }
 0x350   : > { %v2828_v19 = vadd.f32 %v2827_v18, %v5948_v5  ;;  %3470 = vmatprep.mubr.f32.mxu0 %v3019_v12 }
 0x351   : > { %3471 = vmatmul.mubr.f32.gmra.mrb[220].mxu0 %v3018_v14  ;;  %v3020_v20 = vmax.f32 %v2826_v15, 0.0 }
 0x352   : > { %v3021_v21 = vmax.f32 %v2828_v19, 0.0  ;;  %v2831_v30 = vpop.f32.mrb[96].mxu1 }
 0x353   : > { %v2832_v24 = vadd.f32 %v2831_v30, %v5945_v1  ;;  %v2833_v33 = vpop.f32.mrb[97].mxu1 }
 0x354   : > { %v2834_v25 = vadd.f32 %v2833_v33, %v5948_v5  ;;  %3476 = vmatprep.mubr.f32.mxu0 %v3021_v21 }
 0x355   : > { %3477 = vmatmul.mubr.f32.gmra.mrb[222].mxu0 %v3020_v20  ;;  %v3022_v17 = vmax.f32 %v2832_v24, 0.0 }
 0x356   : > { %v3023_v16 = vmax.f32 %v2834_v25, 0.0  ;;  %v2837_v26 = vpop.f32.mrb[98].mxu1 }
 0x357   : > { %v2838_v27 = vadd.f32 %v2837_v26, %v5945_v1  ;;  %v2839_v31 = vpop.f32.mrb[99].mxu1 }
 0x358   : > { %v2840_v28 = vadd.f32 %v2839_v31, %v5948_v5  ;;  %3482 = vmatprep.mubr.f32.mxu0 %v3023_v16 }
 0x359   : > { %3483 = vmatmul.mubr.f32.gmra.mrb[224].mxu0 %v3022_v17  ;;  %v3024_v34 = vmax.f32 %v2838_v27, 0.0 }
 0x35a   : > { %v3025_v29 = vmax.f32 %v2840_v28, 0.0  ;;  %v2843_v32 = vpop.f32.mrb[100].mxu1 }
 0x35b   : > { %v2844_v35 = vadd.f32 %v2843_v32, %v5945_v1  ;;  %v2845_v36 = vpop.f32.mrb[101].mxu1 }
 0x35c   : > { %v2846_v37 = vadd.f32 %v2845_v36, %v5948_v5  ;;  %3488 = vmatprep.mubr.f32.mxu0 %v3025_v29 }
 0x35d   : > { %3489 = vmatmul.mubr.f32.gmra.mrb[226].mxu0 %v3024_v34  ;;  %v3026_v40 = vmax.f32 %v2844_v35, 0.0 }
 0x35e   : > { %v3027_v38 = vmax.f32 %v2846_v37, 0.0  ;;  %v2849_v39 = vpop.f32.mrb[102].mxu1 }
 0x35f   : > { %v2850_v41 = vadd.f32 %v2849_v39, %v5945_v1  ;;  %v2851_v42 = vpop.f32.mrb[103].mxu1 }
 0x360   : > { %v2852_v43 = vadd.f32 %v2851_v42, %v5948_v5  ;;  %3494 = vmatprep.mubr.f32.mxu0 %v3027_v38 }
 0x361   : > { %3495 = vmatmul.mubr.f32.gmra.mrb[228].mxu0 %v3026_v40  ;;  %v3028_v45 = vmax.f32 %v2850_v41, 0.0 }
 0x362   : > { %v3029_v44 = vmax.f32 %v2852_v43, 0.0  ;;  %v2855_v23 = vpop.f32.mrb[104].mxu1 }
 0x363   : > { %v2856_v46 = vadd.f32 %v2855_v23, %v5945_v1  ;;  %v2857_v47 = vpop.f32.mrb[105].mxu1 }
 0x364   : > { %v2858_v22 = vadd.f32 %v2857_v47, %v5948_v5  ;;  %3500 = vmatprep.mubr.f32.mxu0 %v3029_v44 }
 0x365   : > { %3501 = vmatmul.mubr.f32.gmra.mrb[230].mxu0 %v3028_v45  ;;  %v3030_v51 = vmax.f32 %v2856_v46, 0.0 }
 0x366   : > { %v3031_v48 = vmax.f32 %v2858_v22, 0.0  ;;  %v2861_v49 = vpop.f32.mrb[106].mxu1 }
 0x367   : > { %v2862_v52 = vadd.f32 %v2861_v49, %v5945_v1  ;;  %v2863_v53 = vpop.f32.mrb[107].mxu1 }
 0x368   : > { %v2864_v54 = vadd.f32 %v2863_v53, %v5948_v5  ;;  %3506 = vmatprep.mubr.f32.mxu0 %v3031_v48 }
 0x369   : > { %3507 = vmatmul.mubr.f32.gmra.mrb[232].mxu0 %v3030_v51  ;;  %v3032_v59 = vmax.f32 %v2862_v52, 0.0 }
 0x36a   : > { %v3033_v56 = vmax.f32 %v2864_v54, 0.0  ;;  %v2867_v57 = vpop.f32.mrb[108].mxu1 }
 0x36b   : > { %v2868_v60 = vadd.f32 %v2867_v57, %v5945_v1  ;;  %v2869_v61 = vpop.f32.mrb[109].mxu1 }
 0x36c   : > { %v2870_v62 = vadd.f32 %v2869_v61, %v5948_v5  ;;  %v3196_v63 = vpop.f32.mrb[128].mxu0  ;;  %3512 = vmatprep.mubr.f32.mxu0 %v3033_v56 }
 0x36d   : > { %v3197_v0 = vadd.f32 %v3196_v63, %v6087_v55  ;;  %v3198_v2 = vpop.f32.mrb[129].mxu0  ;;  %3513 = vmatmul.mubr.f32.gmra.mrb[234].mxu0 %v3032_v59  ;;  %v3034_v8 = vmax.f32 %v2868_v60, 0.0 }
 0x36e   : > { %v3035_v4 = vmax.f32 %v2870_v62, 0.0  ;;  %v3199_v3 = vadd.f32 %v3198_v2, %v6090_v58  ;;  %v2873_v7 = vpop.f32.mrb[110].mxu1 }
 0x36f   : > { %v2874_v6 = vadd.f32 %v2873_v7, %v5945_v1  ;;  %v2875_v9 = vpop.f32.mrb[111].mxu1  ;;  %v3579_v13 = vmax.f32 %v3197_v0, 0.0 }
 0x370   : > { %v3580_v10 = vmax.f32 %v3199_v3, 0.0  ;;  %v2876_v11 = vadd.f32 %v2875_v9, %v5948_v5  ;;  %v3202_v12 = vpop.f32.mrb[130].mxu0  ;;  %3518 = vmatprep.mubr.f32.mxu0 %v3035_v4 }
 0x371   : > { %v3203_v14 = vadd.f32 %v3202_v12, %v6087_v55  ;;  %v3204_v15 = vpop.f32.mrb[131].mxu0  ;;  %3519 = vmatmul.mubr.f32.gmra.mrb[236].mxu0 %v3034_v8  ;;  %v3036_v30 = vmax.f32 %v2874_v6, 0.0 }
 0x372   : > { %v3037_v18 = vmax.f32 %v2876_v11, 0.0  ;;  %v3205_v19 = vadd.f32 %v3204_v15, %v6090_v58  ;;  %v2879_v21 = vpop.f32.mrb[112].mxu1  ;;  %3810 = vmatprep.mubr.f32.mxu1 %v3580_v10 }
 0x373   : > { %v2880_v20 = vadd.f32 %v2879_v21, %v5945_v1  ;;  %v2881_v24 = vpop.f32.mrb[113].mxu1  ;;  %3811 = vmatmul.mubr.f32.vlgmr.msra.gmra.mrb[128].mxu1 %v3579_v13  ;;  %v3581_v26 = vmax.f32 %v3203_v14, 0.0 }
 0x374   : > { %v3582_v33 = vmax.f32 %v3205_v19, 0.0  ;;  %v2882_v25 = vadd.f32 %v2881_v24, %v5948_v5  ;;  %v3208_v16 = vpop.f32.mrb[132].mxu0  ;;  %3524 = vmatprep.mubr.f32.mxu0 %v3037_v18 }
 0x375   : > { %v3209_v17 = vadd.f32 %v3208_v16, %v6087_v55  ;;  %v3210_v27 = vpop.f32.mrb[133].mxu0  ;;  %3525 = vmatmul.mubr.f32.gmra.mrb[238].mxu0 %v3036_v30  ;;  %v3038_v32 = vmax.f32 %v2880_v20, 0.0 }
 0x376   : > { %v3039_v31 = vmax.f32 %v2882_v25, 0.0  ;;  %v3211_v28 = vadd.f32 %v3210_v27, %v6090_v58  ;;  %v2885_v29 = vpop.f32.mrb[114].mxu1  ;;  %3815 = vmatprep.mubr.f32.mxu1 %v3582_v33 }
 0x377   : > { %v2886_v34 = vadd.f32 %v2885_v29, %v5945_v1  ;;  %v2887_v35 = vpop.f32.mrb[115].mxu1  ;;  %3816 = vmatmul.mubr.f32.gmra.mrb[130].mxu1 %v3581_v26  ;;  %v3583_v39 = vmax.f32 %v3209_v17, 0.0 }
 0x378   : > { %v3584_v36 = vmax.f32 %v3211_v28, 0.0  ;;  %v2888_v37 = vadd.f32 %v2887_v35, %v5948_v5  ;;  %v3214_v38 = vpop.f32.mrb[134].mxu0  ;;  %3530 = vmatprep.mubr.f32.mxu0 %v3039_v31 }
 0x379   : > { %v3215_v40 = vadd.f32 %v3214_v38, %v6087_v55  ;;  %v3216_v41 = vpop.f32.mrb[135].mxu0  ;;  %3531 = vmatmul.mubr.f32.gmra.mrb[240].mxu0 %v3038_v32  ;;  %v3040_v23 = vmax.f32 %v2886_v34, 0.0 }
 0x37a   : > { %v3041_v42 = vmax.f32 %v2888_v37, 0.0  ;;  %v3217_v43 = vadd.f32 %v3216_v41, %v6090_v58  ;;  %v2891_v44 = vpop.f32.mrb[116].mxu1  ;;  %3820 = vmatprep.mubr.f32.mxu1 %v3584_v36 }
 0x37b   : > { %v2892_v45 = vadd.f32 %v2891_v44, %v5945_v1  ;;  %v2893_v46 = vpop.f32.mrb[117].mxu1  ;;  %3821 = vmatmul.mubr.f32.gmra.mrb[132].mxu1 %v3583_v39  ;;  %v3585_v49 = vmax.f32 %v3215_v40, 0.0 }
 0x37c   : > { %v3586_v47 = vmax.f32 %v3217_v43, 0.0  ;;  %v2894_v22 = vadd.f32 %v2893_v46, %v5948_v5  ;;  %v3220_v48 = vpop.f32.mrb[136].mxu0  ;;  %3536 = vmatprep.mubr.f32.mxu0 %v3041_v42 }
 0x37d   : > { %v3221_v50 = vadd.f32 %v3220_v48, %v6087_v55  ;;  %v3222_v51 = vpop.f32.mrb[137].mxu0  ;;  %3537 = vmatmul.mubr.f32.gmra.mrb[242].mxu0 %v3040_v23  ;;  %v3042_v56 = vmax.f32 %v2892_v45, 0.0 }
 0x37e   : > { %v3043_v52 = vmax.f32 %v2894_v22, 0.0  ;;  %v3223_v53 = vadd.f32 %v3222_v51, %v6090_v58  ;;  %v2897_v54 = vpop.f32.mrb[118].mxu1  ;;  %3825 = vmatprep.mubr.f32.mxu1 %v3586_v47 }
 0x37f   : > { %v2898_v57 = vadd.f32 %v2897_v54, %v5945_v1  ;;  %v2899_v59 = vpop.f32.mrb[119].mxu1  ;;  %3826 = vmatmul.mubr.f32.gmra.mrb[134].mxu1 %v3585_v49  ;;  %v3587_v63 = vmax.f32 %v3221_v50, 0.0 }
 0x380   : > { %v3588_v60 = vmax.f32 %v3223_v53, 0.0  ;;  %v2900_v61 = vadd.f32 %v2899_v59, %v5948_v5  ;;  %v3226_v62 = vpop.f32.mrb[138].mxu0  ;;  %3542 = vmatprep.mubr.f32.mxu0 %v3043_v52 }
 0x381   : > { %v3227_v0 = vadd.f32 %v3226_v62, %v6087_v55  ;;  %v3228_v2 = vpop.f32.mrb[139].mxu0  ;;  %3543 = vmatmul.mubr.f32.gmra.mrb[244].mxu0 %v3042_v56  ;;  %v3044_v8 = vmax.f32 %v2898_v57, 0.0 }
 0x382   : > { %v3045_v4 = vmax.f32 %v2900_v61, 0.0  ;;  %v3229_v3 = vadd.f32 %v3228_v2, %v6090_v58  ;;  %v2903_v7 = vpop.f32.mrb[120].mxu1  ;;  %3830 = vmatprep.mubr.f32.mxu1 %v3588_v60 }
 0x383   : > { %v2904_v6 = vadd.f32 %v2903_v7, %v5945_v1  ;;  %v2905_v9 = vpop.f32.mrb[121].mxu1  ;;  %3831 = vmatmul.mubr.f32.gmra.mrb[136].mxu1 %v3587_v63  ;;  %v3589_v13 = vmax.f32 %v3227_v0, 0.0 }
 0x384   : > { %v3590_v10 = vmax.f32 %v3229_v3, 0.0  ;;  %v2906_v11 = vadd.f32 %v2905_v9, %v5948_v5  ;;  %v3232_v12 = vpop.f32.mrb[140].mxu0  ;;  %3548 = vmatprep.mubr.f32.mxu0 %v3045_v4 }
 0x385   : > { %v3233_v14 = vadd.f32 %v3232_v12, %v6087_v55  ;;  %v3234_v15 = vpop.f32.mrb[141].mxu0  ;;  %3549 = vmatmul.mubr.f32.gmra.mrb[246].mxu0 %v3044_v8  ;;  %v3046_v30 = vmax.f32 %v2904_v6, 0.0 }
 0x386   : > { %v3047_v18 = vmax.f32 %v2906_v11, 0.0  ;;  %v3235_v19 = vadd.f32 %v3234_v15, %v6090_v58  ;;  %v2909_v21 = vpop.f32.mrb[122].mxu1  ;;  %3835 = vmatprep.mubr.f32.mxu1 %v3590_v10 }
 0x387   : > { %v2910_v20 = vadd.f32 %v2909_v21, %v5945_v1  ;;  %v2911_v24 = vpop.f32.mrb[123].mxu1  ;;  %3836 = vmatmul.mubr.f32.gmra.mrb[138].mxu1 %v3589_v13  ;;  %v3591_v26 = vmax.f32 %v3233_v14, 0.0 }
 0x388   : > { %v3592_v33 = vmax.f32 %v3235_v19, 0.0  ;;  %v2912_v25 = vadd.f32 %v2911_v24, %v5948_v5  ;;  %v3238_v16 = vpop.f32.mrb[142].mxu0  ;;  %3554 = vmatprep.mubr.f32.mxu0 %v3047_v18 }
 0x389   : > { %v3239_v17 = vadd.f32 %v3238_v16, %v6087_v55  ;;  %v3240_v27 = vpop.f32.mrb[143].mxu0  ;;  %3555 = vmatmul.mubr.f32.gmra.mrb[248].mxu0 %v3046_v30  ;;  %v3048_v32 = vmax.f32 %v2910_v20, 0.0 }
 0x38a   : > { %v3049_v31 = vmax.f32 %v2912_v25, 0.0  ;;  %v3241_v28 = vadd.f32 %v3240_v27, %v6090_v58  ;;  %v2915_v29 = vpop.f32.mrb[124].mxu1  ;;  %3840 = vmatprep.mubr.f32.mxu1 %v3592_v33 }
 0x38b   : > { %v2916_v34 = vadd.f32 %v2915_v29, %v5945_v1  ;;  %v2917_v35 = vpop.f32.mrb[125].mxu1  ;;  %3841 = vmatmul.mubr.f32.gmra.mrb[140].mxu1 %v3591_v26  ;;  %v3593_v39 = vmax.f32 %v3239_v17, 0.0 }
 0x38c   : > { %v3594_v36 = vmax.f32 %v3241_v28, 0.0  ;;  %v2918_v37 = vadd.f32 %v2917_v35, %v5948_v5  ;;  %v3244_v38 = vpop.f32.mrb[144].mxu0  ;;  %3560 = vmatprep.mubr.f32.mxu0 %v3049_v31 }
 0x38d   : > { %v3245_v40 = vadd.f32 %v3244_v38, %v6087_v55  ;;  %v3246_v41 = vpop.f32.mrb[145].mxu0  ;;  %3561 = vmatmul.mubr.f32.gmra.mrb[250].mxu0 %v3048_v32  ;;  %v3050_v23 = vmax.f32 %v2916_v34, 0.0 }
 0x38e   : > { %v3051_v42 = vmax.f32 %v2918_v37, 0.0  ;;  %v3247_v43 = vadd.f32 %v3246_v41, %v6090_v58  ;;  %v2921_v44 = vpop.f32.mrb[126].mxu1  ;;  %3845 = vmatprep.mubr.f32.mxu1 %v3594_v36 }
 0x38f   : > { %v2922_v45 = vadd.f32 %v2921_v44, %v5945_v1  ;;  %v2923_v46 = vpop.f32.mrb[127].mxu1  ;;  %3846 = vmatmul.mubr.f32.gmra.mrb[142].mxu1 %v3593_v39  ;;  %v3595_v49 = vmax.f32 %v3245_v40, 0.0 }
 0x390   : > { %v3596_v47 = vmax.f32 %v3247_v43, 0.0  ;;  %v2924_v22 = vadd.f32 %v2923_v46, %v5948_v5  ;;  %v3250_v48 = vpop.f32.mrb[146].mxu0  ;;  %3566 = vmatprep.mubr.f32.mxu0 %v3051_v42 }
 0x391   : > { %v3251_v50 = vadd.f32 %v3250_v48, %v6087_v55  ;;  %v3252_v51 = vpop.f32.mrb[147].mxu0  ;;  %3567 = vmatmul.mubr.f32.gmra.mrb[252].mxu0 %v3050_v23  ;;  %v3052_v54 = vmax.f32 %v2922_v45, 0.0 }
 0x392   : > { %v3053_v52 = vmax.f32 %v2924_v22, 0.0  ;;  %v3253_v53 = vadd.f32 %v3252_v51, %v6090_v58  ;;  %3850 = vmatprep.mubr.f32.mxu1 %v3596_v47 }
 0x393   : > { %3851 = vmatmul.mubr.f32.gmra.mrb[144].mxu1 %v3595_v49  ;;  %v3597_v57 = vmax.f32 %v3251_v50, 0.0 }
 0x394   : > { %v3598_v56 = vmax.f32 %v3253_v53, 0.0  ;;  %v3256_v1 = vpop.f32.mrb[148].mxu0  ;;  %3572 = vmatprep.mubr.f32.mxu0 %v3053_v52 }
 0x395   : > { %v3257_v59 = vadd.f32 %v3256_v1, %v6087_v55  ;;  %v3258_v5 = vpop.f32.mrb[149].mxu0  ;;  %3573 = vmatmul.mubr.f32.gmra.mrb[254].mxu0 %v3052_v54 }
 0x396   : > { %v3259_v60 = vadd.f32 %v3258_v5, %v6090_v58  ;;  %3855 = vmatprep.mubr.f32.mxu1 %v3598_v56 }
 0x397   : > { %3856 = vmatmul.mubr.f32.gmra.mrb[146].mxu1 %v3597_v57  ;;  %v3599_v63 = vmax.f32 %v3257_v59, 0.0 }
 0x398   : > { %v3600_v61 = vmax.f32 %v3259_v60, 0.0  ;;  %v3262_v62 = vpop.f32.mrb[150].mxu0 }
 0x399   : > { %v3263_v0 = vadd.f32 %v3262_v62, %v6087_v55  ;;  %v3264_v2 = vpop.f32.mrb[151].mxu0 }
 0x39a   : > { %v3265_v4 = vadd.f32 %v3264_v2, %v6090_v58  ;;  %3860 = vmatprep.mubr.f32.mxu1 %v3600_v61 }
 0x39b   : > { %3861 = vmatmul.mubr.f32.gmra.mrb[148].mxu1 %v3599_v63  ;;  %v3601_v8 = vmax.f32 %v3263_v0, 0.0 }
 0x39c   : > { %v3602_v3 = vmax.f32 %v3265_v4, 0.0  ;;  %v3268_v7 = vpop.f32.mrb[152].mxu0 }
 0x39d   : > { %v3269_v6 = vadd.f32 %v3268_v7, %v6087_v55  ;;  %v3270_v9 = vpop.f32.mrb[153].mxu0 }
 0x39e   : > { %v3271_v10 = vadd.f32 %v3270_v9, %v6090_v58  ;;  %3865 = vmatprep.mubr.f32.mxu1 %v3602_v3 }
 0x39f   : > { %3866 = vmatmul.mubr.f32.gmra.mrb[150].mxu1 %v3601_v8  ;;  %v3603_v13 = vmax.f32 %v3269_v6, 0.0 }
 0x3a0   : > { %v3604_v11 = vmax.f32 %v3271_v10, 0.0  ;;  %v3274_v12 = vpop.f32.mrb[154].mxu0 }
 0x3a1   : > { %v3275_v14 = vadd.f32 %v3274_v12, %v6087_v55  ;;  %v3276_v15 = vpop.f32.mrb[155].mxu0 }
 0x3a2   : > { %v3277_v18 = vadd.f32 %v3276_v15, %v6090_v58  ;;  %3870 = vmatprep.mubr.f32.mxu1 %v3604_v11 }
 0x3a3   : > { %3871 = vmatmul.mubr.f32.gmra.mrb[152].mxu1 %v3603_v13  ;;  %v3605_v30 = vmax.f32 %v3275_v14, 0.0 }
 0x3a4   : > { %v3606_v19 = vmax.f32 %v3277_v18, 0.0  ;;  %v3280_v21 = vpop.f32.mrb[156].mxu0 }
 0x3a5   : > { %v3281_v20 = vadd.f32 %v3280_v21, %v6087_v55  ;;  %v3282_v24 = vpop.f32.mrb[157].mxu0 }
 0x3a6   : > { %v3283_v33 = vadd.f32 %v3282_v24, %v6090_v58  ;;  %3875 = vmatprep.mubr.f32.mxu1 %v3606_v19 }
 0x3a7   : > { %3876 = vmatmul.mubr.f32.gmra.mrb[154].mxu1 %v3605_v30  ;;  %v3607_v26 = vmax.f32 %v3281_v20, 0.0 }
 0x3a8   : > { %v3608_v25 = vmax.f32 %v3283_v33, 0.0  ;;  %v3286_v16 = vpop.f32.mrb[158].mxu0 }
 0x3a9   : > { %v3287_v17 = vadd.f32 %v3286_v16, %v6087_v55  ;;  %v3288_v27 = vpop.f32.mrb[159].mxu0 }
 0x3aa   : > { %v3289_v31 = vadd.f32 %v3288_v27, %v6090_v58  ;;  %3880 = vmatprep.mubr.f32.mxu1 %v3608_v25 }
 0x3ab   : > { %3881 = vmatmul.mubr.f32.gmra.mrb[156].mxu1 %v3607_v26  ;;  %v3609_v32 = vmax.f32 %v3287_v17, 0.0 }
 0x3ac   : > { %v3610_v28 = vmax.f32 %v3289_v31, 0.0  ;;  %v3292_v29 = vpop.f32.mrb[160].mxu0 }
 0x3ad   : > { %v3293_v34 = vadd.f32 %v3292_v29, %v6087_v55  ;;  %v3294_v35 = vpop.f32.mrb[161].mxu0 }
 0x3ae   : > { %v3295_v36 = vadd.f32 %v3294_v35, %v6090_v58  ;;  %3885 = vmatprep.mubr.f32.mxu1 %v3610_v28 }
 0x3af   : > { %3886 = vmatmul.mubr.f32.gmra.mrb[158].mxu1 %v3609_v32  ;;  %v3611_v39 = vmax.f32 %v3293_v34, 0.0 }
 0x3b0   : > { %v3612_v37 = vmax.f32 %v3295_v36, 0.0  ;;  %v3298_v38 = vpop.f32.mrb[162].mxu0 }
 0x3b1   : > { %v3299_v40 = vadd.f32 %v3298_v38, %v6087_v55  ;;  %v3300_v41 = vpop.f32.mrb[163].mxu0 }
 0x3b2   : > { %v3301_v42 = vadd.f32 %v3300_v41, %v6090_v58  ;;  %3890 = vmatprep.mubr.f32.mxu1 %v3612_v37 }
 0x3b3   : > { %3891 = vmatmul.mubr.f32.gmra.mrb[160].mxu1 %v3611_v39  ;;  %v3613_v23 = vmax.f32 %v3299_v40, 0.0 }
 0x3b4   : > { %v3614_v43 = vmax.f32 %v3301_v42, 0.0  ;;  %v3304_v44 = vpop.f32.mrb[164].mxu0 }
 0x3b5   : > { %v3305_v45 = vadd.f32 %v3304_v44, %v6087_v55  ;;  %v3306_v46 = vpop.f32.mrb[165].mxu0 }
 0x3b6   : > { %v3307_v47 = vadd.f32 %v3306_v46, %v6090_v58  ;;  %3895 = vmatprep.mubr.f32.mxu1 %v3614_v43 }
 0x3b7   : > { %3896 = vmatmul.mubr.f32.gmra.mrb[162].mxu1 %v3613_v23  ;;  %v3615_v49 = vmax.f32 %v3305_v45, 0.0 }
 0x3b8   : > { %v3616_v22 = vmax.f32 %v3307_v47, 0.0  ;;  %v3310_v48 = vpop.f32.mrb[166].mxu0 }
 0x3b9   : > { %v3311_v50 = vadd.f32 %v3310_v48, %v6087_v55  ;;  %v3312_v51 = vpop.f32.mrb[167].mxu0 }
 0x3ba   : > { %v3313_v52 = vadd.f32 %v3312_v51, %v6090_v58  ;;  %3900 = vmatprep.mubr.f32.mxu1 %v3616_v22 }
 0x3bb   : > { %3901 = vmatmul.mubr.f32.gmra.mrb[164].mxu1 %v3615_v49  ;;  %v3617_v56 = vmax.f32 %v3311_v50, 0.0 }
 0x3bc   : > { %v3618_v53 = vmax.f32 %v3313_v52, 0.0  ;;  %v3316_v54 = vpop.f32.mrb[168].mxu0 }
 0x3bd   : > { %v3317_v1 = vadd.f32 %v3316_v54, %v6087_v55  ;;  %v3318_v57 = vpop.f32.mrb[169].mxu0 }
 0x3be   : > { %v3319_v59 = vadd.f32 %v3318_v57, %v6090_v58  ;;  %3905 = vmatprep.mubr.f32.mxu1 %v3618_v53 }
 0x3bf   : > { %3906 = vmatmul.mubr.f32.gmra.mrb[166].mxu1 %v3617_v56  ;;  %v3619_v61 = vmax.f32 %v3317_v1, 0.0 }
 0x3c0   : > { %v3620_v5 = vmax.f32 %v3319_v59, 0.0  ;;  %v3322_v60 = vpop.f32.mrb[170].mxu0 }
 0x3c1   : > { %v3323_v62 = vadd.f32 %v3322_v60, %v6087_v55  ;;  %v3324_v63 = vpop.f32.mrb[171].mxu0 }
 0x3c2   : > { %v3325_v0 = vadd.f32 %v3324_v63, %v6090_v58  ;;  %3910 = vmatprep.mubr.f32.mxu1 %v3620_v5 }
 0x3c3   : > { %3911 = vmatmul.mubr.f32.gmra.mrb[168].mxu1 %v3619_v61  ;;  %v3621_v3 = vmax.f32 %v3323_v62, 0.0 }
 0x3c4   : > { %v3622_v2 = vmax.f32 %v3325_v0, 0.0  ;;  %v3328_v4 = vpop.f32.mrb[172].mxu0 }
 0x3c5   : > { %v3329_v7 = vadd.f32 %v3328_v4, %v6087_v55  ;;  %v3330_v8 = vpop.f32.mrb[173].mxu0 }
 0x3c6   : > { %v3331_v6 = vadd.f32 %v3330_v8, %v6090_v58  ;;  %3915 = vmatprep.mubr.f32.mxu1 %v3622_v2 }
 0x3c7   : > { %3916 = vmatmul.mubr.f32.gmra.mrb[170].mxu1 %v3621_v3  ;;  %v3623_v11 = vmax.f32 %v3329_v7, 0.0 }
 0x3c8   : > { %v3624_v9 = vmax.f32 %v3331_v6, 0.0  ;;  %v3334_v10 = vpop.f32.mrb[174].mxu0 }
 0x3c9   : > { %v3335_v12 = vadd.f32 %v3334_v10, %v6087_v55  ;;  %v3336_v13 = vpop.f32.mrb[175].mxu0 }
 0x3ca   : > { %v3337_v14 = vadd.f32 %v3336_v13, %v6090_v58  ;;  %3920 = vmatprep.mubr.f32.mxu1 %v3624_v9 }
 0x3cb   : > { %3921 = vmatmul.mubr.f32.gmra.mrb[172].mxu1 %v3623_v11  ;;  %v3625_v19 = vmax.f32 %v3335_v12, 0.0 }
 0x3cc   : > { %v3626_v15 = vmax.f32 %v3337_v14, 0.0  ;;  %v3340_v18 = vpop.f32.mrb[176].mxu0 }
 0x3cd   : > { %v3341_v21 = vadd.f32 %v3340_v18, %v6087_v55  ;;  %v3342_v30 = vpop.f32.mrb[177].mxu0 }
 0x3ce   : > { %v3343_v20 = vadd.f32 %v3342_v30, %v6090_v58  ;;  %3925 = vmatprep.mubr.f32.mxu1 %v3626_v15 }
 0x3cf   : > { %3926 = vmatmul.mubr.f32.gmra.mrb[174].mxu1 %v3625_v19  ;;  %v3627_v25 = vmax.f32 %v3341_v21, 0.0 }
 0x3d0   : > { %v3628_v24 = vmax.f32 %v3343_v20, 0.0  ;;  %v3346_v33 = vpop.f32.mrb[178].mxu0 }
 0x3d1   : > { %v3347_v16 = vadd.f32 %v3346_v33, %v6087_v55  ;;  %v3348_v26 = vpop.f32.mrb[179].mxu0 }
 0x3d2   : > { %v3349_v17 = vadd.f32 %v3348_v26, %v6090_v58  ;;  %3930 = vmatprep.mubr.f32.mxu1 %v3628_v24 }
 0x3d3   : > { %3931 = vmatmul.mubr.f32.gmra.mrb[176].mxu1 %v3627_v25  ;;  %v3629_v28 = vmax.f32 %v3347_v16, 0.0 }
 0x3d4   : > { %v3630_v27 = vmax.f32 %v3349_v17, 0.0  ;;  %v3352_v31 = vpop.f32.mrb[180].mxu0 }
 0x3d5   : > { %v3353_v29 = vadd.f32 %v3352_v31, %v6087_v55  ;;  %v3354_v32 = vpop.f32.mrb[181].mxu0 }
 0x3d6   : > { %v3355_v34 = vadd.f32 %v3354_v32, %v6090_v58  ;;  %3935 = vmatprep.mubr.f32.mxu1 %v3630_v27 }
 0x3d7   : > { %3936 = vmatmul.mubr.f32.gmra.mrb[178].mxu1 %v3629_v28  ;;  %v3631_v37 = vmax.f32 %v3353_v29, 0.0 }
 0x3d8   : > { %v3632_v35 = vmax.f32 %v3355_v34, 0.0  ;;  %v3358_v36 = vpop.f32.mrb[182].mxu0 }
 0x3d9   : > { %v3359_v38 = vadd.f32 %v3358_v36, %v6087_v55  ;;  %v3360_v39 = vpop.f32.mrb[183].mxu0 }
 0x3da   : > { %v3361_v40 = vadd.f32 %v3360_v39, %v6090_v58  ;;  %3940 = vmatprep.mubr.f32.mxu1 %v3632_v35 }
 0x3db   : > { %3941 = vmatmul.mubr.f32.gmra.mrb[180].mxu1 %v3631_v37  ;;  %v3633_v43 = vmax.f32 %v3359_v38, 0.0 }
 0x3dc   : > { %v3634_v41 = vmax.f32 %v3361_v40, 0.0  ;;  %v3364_v42 = vpop.f32.mrb[184].mxu0 }
 0x3dd   : > { %v3365_v44 = vadd.f32 %v3364_v42, %v6087_v55  ;;  %v3366_v23 = vpop.f32.mrb[185].mxu0 }
 0x3de   : > { %v3367_v45 = vadd.f32 %v3366_v23, %v6090_v58  ;;  %3945 = vmatprep.mubr.f32.mxu1 %v3634_v41 }
 0x3df   : > { %3946 = vmatmul.mubr.f32.gmra.mrb[182].mxu1 %v3633_v43  ;;  %v3635_v22 = vmax.f32 %v3365_v44, 0.0 }
 0x3e0   : > { %v3636_v46 = vmax.f32 %v3367_v45, 0.0  ;;  %v3370_v47 = vpop.f32.mrb[186].mxu0 }
 0x3e1   : > { %v3371_v48 = vadd.f32 %v3370_v47, %v6087_v55  ;;  %v3372_v49 = vpop.f32.mrb[187].mxu0 }
 0x3e2   : > { %v3373_v50 = vadd.f32 %v3372_v49, %v6090_v58  ;;  %3950 = vmatprep.mubr.f32.mxu1 %v3636_v46 }
 0x3e3   : > { %3951 = vmatmul.mubr.f32.gmra.mrb[184].mxu1 %v3635_v22  ;;  %v3637_v53 = vmax.f32 %v3371_v48, 0.0 }
 0x3e4   : > { %v3638_v51 = vmax.f32 %v3373_v50, 0.0  ;;  %v3376_v52 = vpop.f32.mrb[188].mxu0 }
 0x3e5   : > { %v3377_v54 = vadd.f32 %v3376_v52, %v6087_v55  ;;  %v3378_v56 = vpop.f32.mrb[189].mxu0 }
 0x3e6   : > { %v3379_v1 = vadd.f32 %v3378_v56, %v6090_v58  ;;  %3955 = vmatprep.mubr.f32.mxu1 %v3638_v51 }
 0x3e7   : > { %3956 = vmatmul.mubr.f32.gmra.mrb[186].mxu1 %v3637_v53  ;;  %v3639_v5 = vmax.f32 %v3377_v54, 0.0 }
 0x3e8   : > { %v3640_v57 = vmax.f32 %v3379_v1, 0.0  ;;  %v3382_v59 = vpop.f32.mrb[190].mxu0 }
 0x3e9   : > { %v3383_v60 = vadd.f32 %v3382_v59, %v6087_v55  ;;  %v3384_v61 = vpop.f32.mrb[191].mxu0 }
 0x3ea   : > { %v3385_v62 = vadd.f32 %v3384_v61, %v6090_v58  ;;  %3960 = vmatprep.mubr.f32.mxu1 %v3640_v57 }
 0x3eb   : > { %3961 = vmatmul.mubr.f32.gmra.mrb[188].mxu1 %v3639_v5  ;;  %v3641_v2 = vmax.f32 %v3383_v60, 0.0 }
 0x3ec   : > { %v3642_v63 = vmax.f32 %v3385_v62, 0.0  ;;  %v3388_v0 = vpop.f32.mrb[192].mxu0 }
 0x3ed   : > { %v3389_v4 = vadd.f32 %v3388_v0, %v6087_v55  ;;  %v3390_v3 = vpop.f32.mrb[193].mxu0 }
 0x3ee   : > { %v3391_v7 = vadd.f32 %v3390_v3, %v6090_v58  ;;  %3965 = vmatprep.mubr.f32.mxu1 %v3642_v63 }
 0x3ef   : > { %3966 = vmatmul.mubr.f32.gmra.mrb[190].mxu1 %v3641_v2  ;;  %v3643_v9 = vmax.f32 %v3389_v4, 0.0 }
 0x3f0   : > { %v3644_v8 = vmax.f32 %v3391_v7, 0.0  ;;  %v3394_v6 = vpop.f32.mrb[194].mxu0 }
 0x3f1   : > { %v3395_v10 = vadd.f32 %v3394_v6, %v6087_v55  ;;  %v3396_v11 = vpop.f32.mrb[195].mxu0 }
 0x3f2   : > { %v3397_v12 = vadd.f32 %v3396_v11, %v6090_v58  ;;  %3970 = vmatprep.mubr.f32.mxu1 %v3644_v8 }
 0x3f3   : > { %3971 = vmatmul.mubr.f32.gmra.mrb[192].mxu1 %v3643_v9  ;;  %v3645_v15 = vmax.f32 %v3395_v10, 0.0 }
 0x3f4   : > { %v3646_v13 = vmax.f32 %v3397_v12, 0.0  ;;  %v3400_v14 = vpop.f32.mrb[196].mxu0 }
 0x3f5   : > { %v3401_v18 = vadd.f32 %v3400_v14, %v6087_v55  ;;  %v3402_v19 = vpop.f32.mrb[197].mxu0 }
 0x3f6   : > { %v3403_v21 = vadd.f32 %v3402_v19, %v6090_v58  ;;  %3975 = vmatprep.mubr.f32.mxu1 %v3646_v13 }
 0x3f7   : > { %3976 = vmatmul.mubr.f32.gmra.mrb[194].mxu1 %v3645_v15  ;;  %v3647_v24 = vmax.f32 %v3401_v18, 0.0 }
 0x3f8   : > { %v3648_v30 = vmax.f32 %v3403_v21, 0.0  ;;  %v3406_v20 = vpop.f32.mrb[198].mxu0 }
 0x3f9   : > { %v3407_v33 = vadd.f32 %v3406_v20, %v6087_v55  ;;  %v3408_v25 = vpop.f32.mrb[199].mxu0 }
 0x3fa   : > { %v3409_v16 = vadd.f32 %v3408_v25, %v6090_v58  ;;  %3980 = vmatprep.mubr.f32.mxu1 %v3648_v30 }
 0x3fb   : > { %3981 = vmatmul.mubr.f32.gmra.mrb[196].mxu1 %v3647_v24  ;;  %v3649_v27 = vmax.f32 %v3407_v33, 0.0 }
 0x3fc   : > { %v3650_v26 = vmax.f32 %v3409_v16, 0.0  ;;  %v3412_v17 = vpop.f32.mrb[200].mxu0 }
 0x3fd   : > { %v3413_v31 = vadd.f32 %v3412_v17, %v6087_v55  ;;  %v3414_v28 = vpop.f32.mrb[201].mxu0 }
 0x3fe   : > { %v3415_v29 = vadd.f32 %v3414_v28, %v6090_v58  ;;  %3985 = vmatprep.mubr.f32.mxu1 %v3650_v26 }
 0x3ff   : > { %3986 = vmatmul.mubr.f32.gmra.mrb[198].mxu1 %v3649_v27  ;;  %v3651_v35 = vmax.f32 %v3413_v31, 0.0 }
 0x400   : > { %v3652_v32 = vmax.f32 %v3415_v29, 0.0  ;;  %v3418_v34 = vpop.f32.mrb[202].mxu0 }
 0x401   : > { %v3419_v36 = vadd.f32 %v3418_v34, %v6087_v55  ;;  %v3420_v37 = vpop.f32.mrb[203].mxu0 }
 0x402   : > { %v3421_v38 = vadd.f32 %v3420_v37, %v6090_v58  ;;  %3990 = vmatprep.mubr.f32.mxu1 %v3652_v32 }
 0x403   : > { %3991 = vmatmul.mubr.f32.gmra.mrb[200].mxu1 %v3651_v35  ;;  %v3653_v41 = vmax.f32 %v3419_v36, 0.0 }
 0x404   : > { %v3654_v39 = vmax.f32 %v3421_v38, 0.0  ;;  %v3424_v40 = vpop.f32.mrb[204].mxu0 }
 0x405   : > { %v3425_v42 = vadd.f32 %v3424_v40, %v6087_v55  ;;  %v3426_v43 = vpop.f32.mrb[205].mxu0 }
 0x406   : > { %v3427_v44 = vadd.f32 %v3426_v43, %v6090_v58  ;;  %3995 = vmatprep.mubr.f32.mxu1 %v3654_v39 }
 0x407   : > { %3996 = vmatmul.mubr.f32.gmra.mrb[202].mxu1 %v3653_v41  ;;  %v3655_v46 = vmax.f32 %v3425_v42, 0.0 }
 0x408   : > { %v3656_v23 = vmax.f32 %v3427_v44, 0.0  ;;  %v3430_v45 = vpop.f32.mrb[206].mxu0 }
 0x409   : > { %v3431_v47 = vadd.f32 %v3430_v45, %v6087_v55  ;;  %v3432_v22 = vpop.f32.mrb[207].mxu0 }
 0x40a   : > { %v3433_v48 = vadd.f32 %v3432_v22, %v6090_v58  ;;  %4000 = vmatprep.mubr.f32.mxu1 %v3656_v23 }
 0x40b   : > { %4001 = vmatmul.mubr.f32.gmra.mrb[204].mxu1 %v3655_v46  ;;  %v3657_v51 = vmax.f32 %v3431_v47, 0.0 }
 0x40c   : > { %v3658_v49 = vmax.f32 %v3433_v48, 0.0  ;;  %v3436_v50 = vpop.f32.mrb[208].mxu0 }
 0x40d   : > { %v3437_v52 = vadd.f32 %v3436_v50, %v6087_v55  ;;  %v3438_v53 = vpop.f32.mrb[209].mxu0 }
 0x40e   : > { %v3439_v54 = vadd.f32 %v3438_v53, %v6090_v58  ;;  %4005 = vmatprep.mubr.f32.mxu1 %v3658_v49 }
 0x40f   : > { %4006 = vmatmul.mubr.f32.gmra.mrb[206].mxu1 %v3657_v51  ;;  %v3659_v57 = vmax.f32 %v3437_v52, 0.0 }
 0x410   : > { %v3660_v56 = vmax.f32 %v3439_v54, 0.0  ;;  %v3442_v1 = vpop.f32.mrb[210].mxu0 }
 0x411   : > { %v3443_v59 = vadd.f32 %v3442_v1, %v6087_v55  ;;  %v3444_v5 = vpop.f32.mrb[211].mxu0 }
 0x412   : > { %v3445_v60 = vadd.f32 %v3444_v5, %v6090_v58  ;;  %4010 = vmatprep.mubr.f32.mxu1 %v3660_v56 }
 0x413   : > { %4011 = vmatmul.mubr.f32.gmra.mrb[208].mxu1 %v3659_v57  ;;  %v3661_v63 = vmax.f32 %v3443_v59, 0.0 }
 0x414   : > { %v3662_v61 = vmax.f32 %v3445_v60, 0.0  ;;  %v3448_v62 = vpop.f32.mrb[212].mxu0 }
 0x415   : > { %v3449_v0 = vadd.f32 %v3448_v62, %v6087_v55  ;;  %v3450_v2 = vpop.f32.mrb[213].mxu0 }
 0x416   : > { %v3451_v4 = vadd.f32 %v3450_v2, %v6090_v58  ;;  %4015 = vmatprep.mubr.f32.mxu1 %v3662_v61 }
 0x417   : > { %4016 = vmatmul.mubr.f32.gmra.mrb[210].mxu1 %v3661_v63  ;;  %v3663_v8 = vmax.f32 %v3449_v0, 0.0 }
 0x418   : > { %v3664_v3 = vmax.f32 %v3451_v4, 0.0  ;;  %v3454_v7 = vpop.f32.mrb[214].mxu0 }
 0x419   : > { %v3455_v6 = vadd.f32 %v3454_v7, %v6087_v55  ;;  %v3456_v9 = vpop.f32.mrb[215].mxu0 }
 0x41a   : > { %v3457_v10 = vadd.f32 %v3456_v9, %v6090_v58  ;;  %4020 = vmatprep.mubr.f32.mxu1 %v3664_v3 }
 0x41b   : > { %4021 = vmatmul.mubr.f32.gmra.mrb[212].mxu1 %v3663_v8  ;;  %v3665_v13 = vmax.f32 %v3455_v6, 0.0 }
 0x41c   : > { %v3666_v11 = vmax.f32 %v3457_v10, 0.0  ;;  %v3460_v12 = vpop.f32.mrb[216].mxu0 }
 0x41d   : > { %v3461_v14 = vadd.f32 %v3460_v12, %v6087_v55  ;;  %v3462_v15 = vpop.f32.mrb[217].mxu0 }
 0x41e   : > { %v3463_v18 = vadd.f32 %v3462_v15, %v6090_v58  ;;  %4025 = vmatprep.mubr.f32.mxu1 %v3666_v11  ;;  %v6226_v11 = vld [vmem:[%s6440_s10] ss:$0 sm:$0xff] }
 0x41f   : > { %4026 = vmatmul.mubr.f32.gmra.mrb[214].mxu1 %v3665_v13  ;;  %v3667_v30 = vmax.f32 %v3461_v14, 0.0 }
 0x420   : > { %v3668_v19 = vmax.f32 %v3463_v18, 0.0  ;;  %v3466_v21 = vpop.f32.mrb[218].mxu0 }
 0x421   : > { %v3467_v20 = vadd.f32 %v3466_v21, %v6087_v55  ;;  %v3468_v24 = vpop.f32.mrb[219].mxu0 }
 0x422   : > { %v3469_v33 = vadd.f32 %v3468_v24, %v6090_v58  ;;  %4030 = vmatprep.mubr.f32.mxu1 %v3668_v19 }
 0x423   : > { %4031 = vmatmul.mubr.f32.gmra.mrb[216].mxu1 %v3667_v30  ;;  %v3669_v26 = vmax.f32 %v3467_v20, 0.0 }
 0x424   : > { %v3670_v25 = vmax.f32 %v3469_v33, 0.0  ;;  %v3472_v16 = vpop.f32.mrb[220].mxu0 }
 0x425   : > { %v3473_v17 = vadd.f32 %v3472_v16, %v6087_v55  ;;  %v3474_v27 = vpop.f32.mrb[221].mxu0 }
 0x426   : > { %v3475_v31 = vadd.f32 %v3474_v27, %v6090_v58  ;;  %4035 = vmatprep.mubr.f32.mxu1 %v3670_v25 }
 0x427   : > { %4036 = vmatmul.mubr.f32.gmra.mrb[218].mxu1 %v3669_v26  ;;  %v3671_v32 = vmax.f32 %v3473_v17, 0.0 }
 0x428   : > { %v3672_v28 = vmax.f32 %v3475_v31, 0.0  ;;  %v3478_v29 = vpop.f32.mrb[222].mxu0 }
 0x429   : > { %v3479_v34 = vadd.f32 %v3478_v29, %v6087_v55  ;;  %v3480_v35 = vpop.f32.mrb[223].mxu0 }
 0x42a   : > { %v3481_v36 = vadd.f32 %v3480_v35, %v6090_v58  ;;  %4040 = vmatprep.mubr.f32.mxu1 %v3672_v28 }
 0x42b   : > { %4041 = vmatmul.mubr.f32.gmra.mrb[220].mxu1 %v3671_v32  ;;  %v3673_v39 = vmax.f32 %v3479_v34, 0.0 }
 0x42c   : > { %v3674_v37 = vmax.f32 %v3481_v36, 0.0  ;;  %v3484_v38 = vpop.f32.mrb[224].mxu0 }
 0x42d   : > { %v3485_v40 = vadd.f32 %v3484_v38, %v6087_v55  ;;  %v3486_v41 = vpop.f32.mrb[225].mxu0 }
 0x42e   : > { %v3487_v42 = vadd.f32 %v3486_v41, %v6090_v58  ;;  %4045 = vmatprep.mubr.f32.mxu1 %v3674_v37 }
 0x42f   : > { %4046 = vmatmul.mubr.f32.gmra.mrb[222].mxu1 %v3673_v39  ;;  %v3675_v23 = vmax.f32 %v3485_v40, 0.0 }
 0x430   : > { %v3676_v43 = vmax.f32 %v3487_v42, 0.0  ;;  %v3490_v44 = vpop.f32.mrb[226].mxu0 }
 0x431   : > { %v3491_v45 = vadd.f32 %v3490_v44, %v6087_v55  ;;  %v3492_v46 = vpop.f32.mrb[227].mxu0 }
 0x432   : > { %v3493_v47 = vadd.f32 %v3492_v46, %v6090_v58  ;;  %4050 = vmatprep.mubr.f32.mxu1 %v3676_v43 }
 0x433   : > { %4051 = vmatmul.mubr.f32.gmra.mrb[224].mxu1 %v3675_v23  ;;  %v3677_v49 = vmax.f32 %v3491_v45, 0.0 }
 0x434   : > { %v3678_v22 = vmax.f32 %v3493_v47, 0.0  ;;  %v3496_v48 = vpop.f32.mrb[228].mxu0 }
 0x435   : > { %v3497_v50 = vadd.f32 %v3496_v48, %v6087_v55  ;;  %v3498_v51 = vpop.f32.mrb[229].mxu0 }
 0x436   : > { %v3499_v52 = vadd.f32 %v3498_v51, %v6090_v58  ;;  %4055 = vmatprep.mubr.f32.mxu1 %v3678_v22 }
 0x437   : > { %4056 = vmatmul.mubr.f32.gmra.mrb[226].mxu1 %v3677_v49  ;;  %v3679_v56 = vmax.f32 %v3497_v50, 0.0 }
 0x438   : > { %v3680_v53 = vmax.f32 %v3499_v52, 0.0  ;;  %v3502_v54 = vpop.f32.mrb[230].mxu0 }
 0x439   : > { %v3503_v1 = vadd.f32 %v3502_v54, %v6087_v55  ;;  %v3504_v57 = vpop.f32.mrb[231].mxu0 }
 0x43a   : > { %v3505_v59 = vadd.f32 %v3504_v57, %v6090_v58  ;;  %4060 = vmatprep.mubr.f32.mxu1 %v3680_v53 }
 0x43b   : > { %4061 = vmatmul.mubr.f32.gmra.mrb[228].mxu1 %v3679_v56  ;;  %v3681_v61 = vmax.f32 %v3503_v1, 0.0 }
 0x43c   : > { %v3682_v5 = vmax.f32 %v3505_v59, 0.0  ;;  %v3508_v60 = vpop.f32.mrb[232].mxu0 }
 0x43d   : > { %v3509_v62 = vadd.f32 %v3508_v60, %v6087_v55  ;;  %v3510_v63 = vpop.f32.mrb[233].mxu0 }
 0x43e   : > { %v3511_v0 = vadd.f32 %v3510_v63, %v6090_v58  ;;  %4065 = vmatprep.mubr.f32.mxu1 %v3682_v5 }
 0x43f   : > { %4066 = vmatmul.mubr.f32.gmra.mrb[230].mxu1 %v3681_v61  ;;  %v3683_v3 = vmax.f32 %v3509_v62, 0.0 }
 0x440   : > { %v3684_v2 = vmax.f32 %v3511_v0, 0.0  ;;  %v3514_v4 = vpop.f32.mrb[234].mxu0 }
 0x441   : > { %v3515_v7 = vadd.f32 %v3514_v4, %v6087_v55  ;;  %v3516_v8 = vpop.f32.mrb[235].mxu0 }
 0x442   : > { %v3517_v6 = vadd.f32 %v3516_v8, %v6090_v58  ;;  %4070 = vmatprep.mubr.f32.mxu1 %v3684_v2 }
 0x443   : > { %4071 = vmatmul.mubr.f32.gmra.mrb[232].mxu1 %v3683_v3  ;;  %v3685_v12 = vmax.f32 %v3515_v7, 0.0 }
 0x444   : > { %v3686_v9 = vmax.f32 %v3517_v6, 0.0  ;;  %v3520_v10 = vpop.f32.mrb[236].mxu0 }
 0x445   : > { %v3521_v13 = vadd.f32 %v3520_v10, %v6087_v55  ;;  %v3522_v14 = vpop.f32.mrb[237].mxu0 }
 0x446   : > { %v3523_v15 = vadd.f32 %v3522_v14, %v6090_v58  ;;  %v3812_v18 = vpop.f32.mrb[128].mxu1  ;;  %4075 = vmatprep.mubr.f32.mxu1 %v3686_v9 }
 0x447   : > { %v3813_v19 = vadd.f32 %v6226_v11, %v3812_v18  ;;  %v3814_v21 = vpop.f32.mrb[129].mxu1  ;;  %4076 = vmatmul.mubr.f32.gmra.mrb[234].mxu1 %v3685_v12  ;;  %v3687_v24 = vmax.f32 %v3521_v13, 0.0 }
 0x448   : > { %v3688_v30 = vmax.f32 %v3523_v15, 0.0  ;;  %v3526_v20 = vpop.f32.mrb[238].mxu0 }
 0x449   : > { %4131 = vst [vmem:[%s6231_s30] sm:$0xff] %v3813_v19  ;;  %v3527_v33 = vadd.f32 %v3526_v20, %v6087_v55  ;;  %v3528_v25 = vpop.f32.mrb[239].mxu0 }
 0x44a   : > { %v3529_v16 = vadd.f32 %v3528_v25, %v6090_v58  ;;  %v3817_v26 = vpop.f32.mrb[130].mxu1  ;;  %4080 = vmatprep.mubr.f32.mxu1 %v3688_v30 }
 0x44b   : > { %v3818_v17 = vadd.f32 %v6226_v11, %v3817_v26  ;;  %v3819_v27 = vpop.f32.mrb[131].mxu1  ;;  %4081 = vmatmul.mubr.f32.gmra.mrb[236].mxu1 %v3687_v24  ;;  %v3689_v29 = vmax.f32 %v3527_v33, 0.0 }
 0x44c   : > { %v3690_v31 = vmax.f32 %v3529_v16, 0.0  ;;  %v3532_v28 = vpop.f32.mrb[240].mxu0 }
 0x44d   : > { %4132 = vst [vmem:[%s6231_s30 + $0x8] sm:$0xff] %v3818_v17  ;;  %v3533_v32 = vadd.f32 %v3532_v28, %v6087_v55  ;;  %v3534_v34 = vpop.f32.mrb[241].mxu0 }
 0x44e   : > { %v3535_v35 = vadd.f32 %v3534_v34, %v6090_v58  ;;  %v3822_v36 = vpop.f32.mrb[132].mxu1  ;;  %4085 = vmatprep.mubr.f32.mxu1 %v3690_v31 }
 0x44f   : > { %v3823_v37 = vadd.f32 %v6226_v11, %v3822_v36  ;;  %v3824_v38 = vpop.f32.mrb[133].mxu1  ;;  %4086 = vmatmul.mubr.f32.gmra.mrb[238].mxu1 %v3689_v29  ;;  %v3691_v41 = vmax.f32 %v3533_v32, 0.0 }
 0x450   : > { %v3692_v39 = vmax.f32 %v3535_v35, 0.0  ;;  %v3538_v40 = vpop.f32.mrb[242].mxu0 }
 0x451   : > { %4133 = vst [vmem:[%s6231_s30 + $0x10] sm:$0xff] %v3823_v37  ;;  %v3539_v42 = vadd.f32 %v3538_v40, %v6087_v55  ;;  %v3540_v43 = vpop.f32.mrb[243].mxu0 }
 0x452   : > { %v3541_v44 = vadd.f32 %v3540_v43, %v6090_v58  ;;  %v3827_v23 = vpop.f32.mrb[134].mxu1  ;;  %4090 = vmatprep.mubr.f32.mxu1 %v3692_v39 }
 0x453   : > { %v3828_v45 = vadd.f32 %v6226_v11, %v3827_v23  ;;  %v3829_v46 = vpop.f32.mrb[135].mxu1  ;;  %4091 = vmatmul.mubr.f32.gmra.mrb[240].mxu1 %v3691_v41  ;;  %v3693_v48 = vmax.f32 %v3539_v42, 0.0 }
 0x454   : > { %v3694_v47 = vmax.f32 %v3541_v44, 0.0  ;;  %v3544_v22 = vpop.f32.mrb[244].mxu0 }
 0x455   : > { %4134 = vst [vmem:[%s6231_s30 + $0x18] sm:$0xff] %v3828_v45  ;;  %v3545_v49 = vadd.f32 %v3544_v22, %v6087_v55  ;;  %v3546_v50 = vpop.f32.mrb[245].mxu0 }
 0x456   : > { %v3547_v51 = vadd.f32 %v3546_v50, %v6090_v58  ;;  %v3832_v52 = vpop.f32.mrb[136].mxu1  ;;  %4095 = vmatprep.mubr.f32.mxu1 %v3694_v47 }
 0x457   : > { %v3833_v53 = vadd.f32 %v6226_v11, %v3832_v52  ;;  %v3834_v54 = vpop.f32.mrb[137].mxu1  ;;  %4096 = vmatmul.mubr.f32.gmra.mrb[242].mxu1 %v3693_v48  ;;  %v3695_v57 = vmax.f32 %v3545_v49, 0.0 }
 0x458   : > { %v3696_v56 = vmax.f32 %v3547_v51, 0.0  ;;  %v3550_v1 = vpop.f32.mrb[246].mxu0 }
 0x459   : > { %4135 = vst [vmem:[%s6231_s30 + $0x20] sm:$0xff] %v3833_v53  ;;  %v3551_v59 = vadd.f32 %v3550_v1, %v6087_v55  ;;  %v3552_v5 = vpop.f32.mrb[247].mxu0 }
 0x45a   : > { %v3553_v60 = vadd.f32 %v3552_v5, %v6090_v58  ;;  %v3837_v61 = vpop.f32.mrb[138].mxu1  ;;  %4100 = vmatprep.mubr.f32.mxu1 %v3696_v56 }
 0x45b   : > { %v3838_v62 = vadd.f32 %v6226_v11, %v3837_v61  ;;  %v3839_v63 = vpop.f32.mrb[139].mxu1  ;;  %4101 = vmatmul.mubr.f32.gmra.mrb[244].mxu1 %v3695_v57  ;;  %v3697_v4 = vmax.f32 %v3551_v59, 0.0 }
 0x45c   : > { %v3698_v0 = vmax.f32 %v3553_v60, 0.0  ;;  %v3556_v2 = vpop.f32.mrb[248].mxu0 }
 0x45d   : > { %4136 = vst [vmem:[%s6231_s30 + $0x28] sm:$0xff] %v3838_v62  ;;  %v3557_v3 = vadd.f32 %v3556_v2, %v6087_v55  ;;  %v3558_v7 = vpop.f32.mrb[249].mxu0 }
 0x45e   : > { %v3559_v8 = vadd.f32 %v3558_v7, %v6090_v58  ;;  %v3842_v6 = vpop.f32.mrb[140].mxu1  ;;  %4105 = vmatprep.mubr.f32.mxu1 %v3698_v0 }
 0x45f   : > { %v3843_v9 = vadd.f32 %v6226_v11, %v3842_v6  ;;  %v3844_v10 = vpop.f32.mrb[141].mxu1  ;;  %4106 = vmatmul.mubr.f32.gmra.mrb[246].mxu1 %v3697_v4  ;;  %v3699_v14 = vmax.f32 %v3557_v3, 0.0 }
 0x460   : > { %v3700_v12 = vmax.f32 %v3559_v8, 0.0  ;;  %v3562_v13 = vpop.f32.mrb[250].mxu0 }
 0x461   : > { %4137 = vst [vmem:[%s6231_s30 + $0x30] sm:$0xff] %v3843_v9  ;;  %v3563_v15 = vadd.f32 %v3562_v13, %v6087_v55  ;;  %v3564_v18 = vpop.f32.mrb[251].mxu0 }
 0x462   : > { %v3565_v19 = vadd.f32 %v3564_v18, %v6090_v58  ;;  %v3847_v21 = vpop.f32.mrb[142].mxu1  ;;  %4110 = vmatprep.mubr.f32.mxu1 %v3700_v12 }
 0x463   : > { %v3848_v30 = vadd.f32 %v6226_v11, %v3847_v21  ;;  %v3849_v20 = vpop.f32.mrb[143].mxu1  ;;  %4111 = vmatmul.mubr.f32.gmra.mrb[248].mxu1 %v3699_v14  ;;  %v3701_v25 = vmax.f32 %v3563_v15, 0.0 }
 0x464   : > { %v3702_v24 = vmax.f32 %v3565_v19, 0.0  ;;  %v3568_v33 = vpop.f32.mrb[252].mxu0 }
 0x465   : > { %4138 = vst [vmem:[%s6231_s30 + $0x38] sm:$0xff] %v3848_v30  ;;  %v3569_v16 = vadd.f32 %v3568_v33, %v6087_v55  ;;  %v3570_v26 = vpop.f32.mrb[253].mxu0 }
 0x466   : > { %v3571_v17 = vadd.f32 %v3570_v26, %v6090_v58  ;;  %v3852_v27 = vpop.f32.mrb[144].mxu1  ;;  %4115 = vmatprep.mubr.f32.mxu1 %v3702_v24 }
 0x467   : > { %v3853_v31 = vadd.f32 %v6226_v11, %v3852_v27  ;;  %v3854_v28 = vpop.f32.mrb[145].mxu1  ;;  %4116 = vmatmul.mubr.f32.gmra.mrb[250].mxu1 %v3701_v25  ;;  %v3703_v34 = vmax.f32 %v3569_v16, 0.0 }
 0x468   : > { %v3704_v29 = vmax.f32 %v3571_v17, 0.0  ;;  %v3574_v32 = vpop.f32.mrb[254].mxu0 }
 0x469   : > { %4139 = vst [vmem:[%s6231_s30 + $0x40] sm:$0xff] %v3853_v31  ;;  %v3575_v35 = vadd.f32 %v3574_v32, %v6087_v55  ;;  %v3576_v36 = vpop.f32.mrb[255].mxu0 }
 0x46a   : > { %v3577_v37 = vadd.f32 %v3576_v36, %v6090_v58  ;;  %v3857_v38 = vpop.f32.mrb[146].mxu1  ;;  %4120 = vmatprep.mubr.f32.mxu1 %v3704_v29 }
 0x46b   : > { %v3858_v39 = vadd.f32 %v6226_v11, %v3857_v38  ;;  %v3859_v40 = vpop.f32.mrb[147].mxu1  ;;  %4121 = vmatmul.mubr.f32.gmra.mrb[252].mxu1 %v3703_v34  ;;  %v3705_v42 = vmax.f32 %v3575_v35, 0.0 }
 0x46c   : > { %v3706_v41 = vmax.f32 %v3577_v37, 0.0 }
 0x46d   : > { %4140 = vst [vmem:[%s6231_s30 + $0x48] sm:$0xff] %v3858_v39 }
 0x46e   : > { %v3862_v43 = vpop.f32.mrb[148].mxu1  ;;  %4125 = vmatprep.mubr.f32.mxu1 %v3706_v41 }
 0x46f   : > { %v3863_v55 = vadd.f32 %v6226_v11, %v3862_v43  ;;  %v3864_v44 = vpop.f32.mrb[149].mxu1  ;;  %4126 = vmatmul.mubr.f32.gmra.mrb[254].mxu1 %v3705_v42 }
 0x471   : > { %4141 = vst [vmem:[%s6231_s30 + $0x50] sm:$0xff] %v3863_v55 }
 0x472   : > { %v3867_v58 = vpop.f32.mrb[150].mxu1 }
 0x473   : > { %v3868_v23 = vadd.f32 %v6226_v11, %v3867_v58  ;;  %v3869_v45 = vpop.f32.mrb[151].mxu1 }
 0x475   : > { %4142 = vst [vmem:[%s6231_s30 + $0x58] sm:$0xff] %v3868_v23 }
 0x476   : > { %v3872_v46 = vpop.f32.mrb[152].mxu1 }
 0x477   : > { %v3873_v47 = vadd.f32 %v6226_v11, %v3872_v46  ;;  %v3874_v22 = vpop.f32.mrb[153].mxu1 }
 0x479   : > { %4143 = vst [vmem:[%s6231_s30 + $0x60] sm:$0xff] %v3873_v47 }
 0x47a   : > { %v3877_v48 = vpop.f32.mrb[154].mxu1 }
 0x47b   : > { %v3878_v49 = vadd.f32 %v6226_v11, %v3877_v48  ;;  %v3879_v50 = vpop.f32.mrb[155].mxu1 }
 0x47d   : > { %4144 = vst [vmem:[%s6231_s30 + $0x68] sm:$0xff] %v3878_v49 }
 0x47e   : > { %v3882_v51 = vpop.f32.mrb[156].mxu1 }
 0x47f   : > { %v3883_v52 = vadd.f32 %v6226_v11, %v3882_v51  ;;  %v3884_v53 = vpop.f32.mrb[157].mxu1 }
 0x481   : > { %4145 = vst [vmem:[%s6231_s30 + $0x70] sm:$0xff] %v3883_v52 }
 0x482   : > { %v3887_v54 = vpop.f32.mrb[158].mxu1 }
 0x483   : > { %v3888_v56 = vadd.f32 %v6226_v11, %v3887_v54  ;;  %v3889_v1 = vpop.f32.mrb[159].mxu1 }
 0x485   : > { %4146 = vst [vmem:[%s6231_s30 + $0x78] sm:$0xff] %v3888_v56 }
 0x486   : > { %v3892_v57 = vpop.f32.mrb[160].mxu1 }
 0x487   : > { %v3893_v59 = vadd.f32 %v6226_v11, %v3892_v57  ;;  %v3894_v5 = vpop.f32.mrb[161].mxu1 }
 0x489   : > { %4147 = vst [vmem:[%s6231_s30 + $0x80] sm:$0xff] %v3893_v59 }
 0x48a   : > { %v3897_v60 = vpop.f32.mrb[162].mxu1 }
 0x48b   : > { %v3898_v61 = vadd.f32 %v6226_v11, %v3897_v60  ;;  %v3899_v62 = vpop.f32.mrb[163].mxu1 }
 0x48d   : > { %4148 = vst [vmem:[%s6231_s30 + $0x88] sm:$0xff] %v3898_v61 }
 0x48e   : > { %v3902_v63 = vpop.f32.mrb[164].mxu1 }
 0x48f   : > { %v3903_v0 = vadd.f32 %v6226_v11, %v3902_v63  ;;  %v3904_v2 = vpop.f32.mrb[165].mxu1 }
 0x491   : > { %4149 = vst [vmem:[%s6231_s30 + $0x90] sm:$0xff] %v3903_v0 }
 0x492   : > { %v3907_v4 = vpop.f32.mrb[166].mxu1 }
 0x493   : > { %v3908_v3 = vadd.f32 %v6226_v11, %v3907_v4  ;;  %v3909_v7 = vpop.f32.mrb[167].mxu1 }
 0x495   : > { %4150 = vst [vmem:[%s6231_s30 + $0x98] sm:$0xff] %v3908_v3 }
 0x496   : > { %v3912_v8 = vpop.f32.mrb[168].mxu1 }
 0x497   : > { %v3913_v6 = vadd.f32 %v6226_v11, %v3912_v8  ;;  %v3914_v9 = vpop.f32.mrb[169].mxu1 }
 0x499   : > { %4151 = vst [vmem:[%s6231_s30 + $0xa0] sm:$0xff] %v3913_v6 }
 0x49a   : > { %v3917_v10 = vpop.f32.mrb[170].mxu1 }
 0x49b   : > { %v3918_v12 = vadd.f32 %v6226_v11, %v3917_v10  ;;  %v3919_v13 = vpop.f32.mrb[171].mxu1 }
 0x49d   : > { %4152 = vst [vmem:[%s6231_s30 + $0xa8] sm:$0xff] %v3918_v12 }
 0x49e   : > { %v3922_v14 = vpop.f32.mrb[172].mxu1 }
 0x49f   : > { %v3923_v15 = vadd.f32 %v6226_v11, %v3922_v14  ;;  %v3924_v18 = vpop.f32.mrb[173].mxu1 }
 0x4a1   : > { %4153 = vst [vmem:[%s6231_s30 + $0xb0] sm:$0xff] %v3923_v15 }
 0x4a2   : > { %v3927_v19 = vpop.f32.mrb[174].mxu1 }
 0x4a3   : > { %v3928_v21 = vadd.f32 %v6226_v11, %v3927_v19  ;;  %v3929_v30 = vpop.f32.mrb[175].mxu1 }
 0x4a5   : > { %4154 = vst [vmem:[%s6231_s30 + $0xb8] sm:$0xff] %v3928_v21 }
 0x4a6   : > { %v3932_v20 = vpop.f32.mrb[176].mxu1 }
 0x4a7   : > { %v3933_v24 = vadd.f32 %v6226_v11, %v3932_v20  ;;  %v3934_v33 = vpop.f32.mrb[177].mxu1 }
 0x4a9   : > { %4155 = vst [vmem:[%s6231_s30 + $0xc0] sm:$0xff] %v3933_v24 }
 0x4aa   : > { %v3937_v25 = vpop.f32.mrb[178].mxu1 }
 0x4ab   : > { %v3938_v16 = vadd.f32 %v6226_v11, %v3937_v25  ;;  %v3939_v26 = vpop.f32.mrb[179].mxu1 }
 0x4ad   : > { %4156 = vst [vmem:[%s6231_s30 + $0xc8] sm:$0xff] %v3938_v16 }
 0x4ae   : > { %v3942_v17 = vpop.f32.mrb[180].mxu1 }
 0x4af   : > { %v3943_v27 = vadd.f32 %v6226_v11, %v3942_v17  ;;  %v3944_v31 = vpop.f32.mrb[181].mxu1 }
 0x4b1   : > { %4157 = vst [vmem:[%s6231_s30 + $0xd0] sm:$0xff] %v3943_v27 }
 0x4b2   : > { %v3947_v28 = vpop.f32.mrb[182].mxu1 }
 0x4b3   : > { %v3948_v29 = vadd.f32 %v6226_v11, %v3947_v28  ;;  %v3949_v32 = vpop.f32.mrb[183].mxu1 }
 0x4b5   : > { %4158 = vst [vmem:[%s6231_s30 + $0xd8] sm:$0xff] %v3948_v29 }
 0x4b6   : > { %v3952_v34 = vpop.f32.mrb[184].mxu1 }
 0x4b7   : > { %v3953_v35 = vadd.f32 %v6226_v11, %v3952_v34  ;;  %v3954_v36 = vpop.f32.mrb[185].mxu1 }
 0x4b9   : > { %4159 = vst [vmem:[%s6231_s30 + $0xe0] sm:$0xff] %v3953_v35 }
 0x4ba   : > { %v3957_v37 = vpop.f32.mrb[186].mxu1 }
 0x4bb   : > { %v3958_v38 = vadd.f32 %v6226_v11, %v3957_v37  ;;  %v3959_v39 = vpop.f32.mrb[187].mxu1 }
 0x4bd   : > { %4160 = vst [vmem:[%s6231_s30 + $0xe8] sm:$0xff] %v3958_v38 }
 0x4be   : > { %v3962_v40 = vpop.f32.mrb[188].mxu1 }
 0x4bf   : > { %v3963_v41 = vadd.f32 %v6226_v11, %v3962_v40  ;;  %v3964_v42 = vpop.f32.mrb[189].mxu1 }
 0x4c1   : > { %4161 = vst [vmem:[%s6231_s30 + $0xf0] sm:$0xff] %v3963_v41 }
 0x4c2   : > { %v3967_v43 = vpop.f32.mrb[190].mxu1 }
 0x4c3   : > { %v3968_v55 = vadd.f32 %v6226_v11, %v3967_v43  ;;  %v3969_v44 = vpop.f32.mrb[191].mxu1 }
 0x4c5   : > { %4162 = vst [vmem:[%s6231_s30 + $0xf8] sm:$0xff] %v3968_v55 }
 0x4c6   : > { %v3972_v58 = vpop.f32.mrb[192].mxu1 }
 0x4c7   : > { %v3973_v23 = vadd.f32 %v6226_v11, %v3972_v58  ;;  %v3974_v45 = vpop.f32.mrb[193].mxu1 }
 0x4c9   : > { %4163 = vst [vmem:[%s6231_s30 + $0x100] sm:$0xff] %v3973_v23 }
 0x4ca   : > { %v3977_v46 = vpop.f32.mrb[194].mxu1 }
 0x4cb   : > { %v3978_v47 = vadd.f32 %v6226_v11, %v3977_v46  ;;  %v3979_v22 = vpop.f32.mrb[195].mxu1 }
 0x4cd   : > { %4164 = vst [vmem:[%s6231_s30 + $0x108] sm:$0xff] %v3978_v47 }
 0x4ce   : > { %v3982_v48 = vpop.f32.mrb[196].mxu1 }
 0x4cf   : > { %v3983_v49 = vadd.f32 %v6226_v11, %v3982_v48  ;;  %v3984_v50 = vpop.f32.mrb[197].mxu1 }
 0x4d1   : > { %4165 = vst [vmem:[%s6231_s30 + $0x110] sm:$0xff] %v3983_v49 }
 0x4d2   : > { %v3987_v51 = vpop.f32.mrb[198].mxu1 }
 0x4d3   : > { %v3988_v52 = vadd.f32 %v6226_v11, %v3987_v51  ;;  %v3989_v53 = vpop.f32.mrb[199].mxu1 }
 0x4d5   : > { %4166 = vst [vmem:[%s6231_s30 + $0x118] sm:$0xff] %v3988_v52 }
 0x4d6   : > { %v3992_v54 = vpop.f32.mrb[200].mxu1 }
 0x4d7   : > { %v3993_v56 = vadd.f32 %v6226_v11, %v3992_v54  ;;  %v3994_v1 = vpop.f32.mrb[201].mxu1 }
 0x4d9   : > { %4167 = vst [vmem:[%s6231_s30 + $0x120] sm:$0xff] %v3993_v56 }
 0x4da   : > { %v3997_v57 = vpop.f32.mrb[202].mxu1 }
 0x4db   : > { %v3998_v59 = vadd.f32 %v6226_v11, %v3997_v57  ;;  %v3999_v5 = vpop.f32.mrb[203].mxu1 }
 0x4dd   : > { %4168 = vst [vmem:[%s6231_s30 + $0x128] sm:$0xff] %v3998_v59 }
 0x4de   : > { %v4002_v60 = vpop.f32.mrb[204].mxu1 }
 0x4df   : > { %v4003_v61 = vadd.f32 %v6226_v11, %v4002_v60  ;;  %v4004_v62 = vpop.f32.mrb[205].mxu1 }
 0x4e1   : > { %4169 = vst [vmem:[%s6231_s30 + $0x130] sm:$0xff] %v4003_v61 }
 0x4e2   : > { %v4007_v63 = vpop.f32.mrb[206].mxu1 }
 0x4e3   : > { %v4008_v0 = vadd.f32 %v6226_v11, %v4007_v63  ;;  %v4009_v2 = vpop.f32.mrb[207].mxu1 }
 0x4e5   : > { %4170 = vst [vmem:[%s6231_s30 + $0x138] sm:$0xff] %v4008_v0 }
 0x4e6   : > { %v4012_v4 = vpop.f32.mrb[208].mxu1 }
 0x4e7   : > { %v4013_v3 = vadd.f32 %v6226_v11, %v4012_v4  ;;  %v4014_v7 = vpop.f32.mrb[209].mxu1 }
 0x4e9   : > { %4171 = vst [vmem:[%s6231_s30 + $0x140] sm:$0xff] %v4013_v3 }
 0x4ea   : > { %v4017_v8 = vpop.f32.mrb[210].mxu1 }
 0x4eb   : > { %v4018_v6 = vadd.f32 %v6226_v11, %v4017_v8  ;;  %v4019_v9 = vpop.f32.mrb[211].mxu1 }
 0x4ed   : > { %4172 = vst [vmem:[%s6231_s30 + $0x148] sm:$0xff] %v4018_v6 }
 0x4ee   : > { %v4022_v10 = vpop.f32.mrb[212].mxu1 }
 0x4ef   : > { %v4023_v12 = vadd.f32 %v6226_v11, %v4022_v10  ;;  %v4024_v13 = vpop.f32.mrb[213].mxu1 }
 0x4f1   : > { %4173 = vst [vmem:[%s6231_s30 + $0x150] sm:$0xff] %v4023_v12 }
 0x4f2   : > { %v4027_v14 = vpop.f32.mrb[214].mxu1 }
 0x4f3   : > { %v4028_v15 = vadd.f32 %v6226_v11, %v4027_v14  ;;  %v4029_v18 = vpop.f32.mrb[215].mxu1 }
 0x4f5   : > { %4174 = vst [vmem:[%s6231_s30 + $0x158] sm:$0xff] %v4028_v15 }
 0x4f6   : > { %v4032_v19 = vpop.f32.mrb[216].mxu1 }
 0x4f7   : > { %v4033_v21 = vadd.f32 %v6226_v11, %v4032_v19  ;;  %v4034_v30 = vpop.f32.mrb[217].mxu1 }
 0x4f9   : > { %4175 = vst [vmem:[%s6231_s30 + $0x160] sm:$0xff] %v4033_v21 }
 0x4fa   : > { %v4037_v20 = vpop.f32.mrb[218].mxu1 }
 0x4fb   : > { %v4038_v24 = vadd.f32 %v6226_v11, %v4037_v20  ;;  %v4039_v33 = vpop.f32.mrb[219].mxu1 }
 0x4fd   : > { %4176 = vst [vmem:[%s6231_s30 + $0x168] sm:$0xff] %v4038_v24 }
 0x4fe   : > { %v4042_v25 = vpop.f32.mrb[220].mxu1 }
 0x4ff   : > { %v4043_v16 = vadd.f32 %v6226_v11, %v4042_v25  ;;  %v4044_v26 = vpop.f32.mrb[221].mxu1 }
 0x501   : > { %4177 = vst [vmem:[%s6231_s30 + $0x170] sm:$0xff] %v4043_v16 }
 0x502   : > { %v4047_v17 = vpop.f32.mrb[222].mxu1 }
 0x503   : > { %v4048_v27 = vadd.f32 %v6226_v11, %v4047_v17  ;;  %v4049_v31 = vpop.f32.mrb[223].mxu1 }
 0x505   : > { %4178 = vst [vmem:[%s6231_s30 + $0x178] sm:$0xff] %v4048_v27 }
 0x506   : > { %v4052_v28 = vpop.f32.mrb[224].mxu1 }
 0x507   : > { %v4053_v29 = vadd.f32 %v6226_v11, %v4052_v28  ;;  %v4054_v32 = vpop.f32.mrb[225].mxu1 }
 0x509   : > { %4179 = vst [vmem:[%s6231_s30 + $0x180] sm:$0xff] %v4053_v29 }
 0x50a   : > { %v4057_v34 = vpop.f32.mrb[226].mxu1 }
 0x50b   : > { %v4058_v35 = vadd.f32 %v6226_v11, %v4057_v34  ;;  %v4059_v36 = vpop.f32.mrb[227].mxu1 }
 0x50d   : > { %4180 = vst [vmem:[%s6231_s30 + $0x188] sm:$0xff] %v4058_v35 }
 0x50e   : > { %v4062_v37 = vpop.f32.mrb[228].mxu1 }
 0x50f   : > { %v4063_v38 = vadd.f32 %v6226_v11, %v4062_v37  ;;  %v4064_v39 = vpop.f32.mrb[229].mxu1 }
 0x511   : > { %4181 = vst [vmem:[%s6231_s30 + $0x190] sm:$0xff] %v4063_v38 }
 0x512   : > { %v4067_v40 = vpop.f32.mrb[230].mxu1 }
 0x513   : > { %v4068_v41 = vadd.f32 %v6226_v11, %v4067_v40  ;;  %v4069_v42 = vpop.f32.mrb[231].mxu1 }
 0x515   : > { %4182 = vst [vmem:[%s6231_s30 + $0x198] sm:$0xff] %v4068_v41 }
 0x516   : > { %v4072_v43 = vpop.f32.mrb[232].mxu1 }
 0x517   : > { %v4073_v55 = vadd.f32 %v6226_v11, %v4072_v43  ;;  %v4074_v44 = vpop.f32.mrb[233].mxu1 }
 0x519   : > { %4183 = vst [vmem:[%s6231_s30 + $0x1a0] sm:$0xff] %v4073_v55 }
 0x51a   : > { %v4077_v58 = vpop.f32.mrb[234].mxu1 }
 0x51b   : > { %v4078_v23 = vadd.f32 %v6226_v11, %v4077_v58  ;;  %v4079_v45 = vpop.f32.mrb[235].mxu1 }
 0x51d   : > { %4184 = vst [vmem:[%s6231_s30 + $0x1a8] sm:$0xff] %v4078_v23 }
 0x51e   : > { %v4082_v46 = vpop.f32.mrb[236].mxu1 }
 0x51f   : > { %v4083_v47 = vadd.f32 %v6226_v11, %v4082_v46  ;;  %v4084_v22 = vpop.f32.mrb[237].mxu1 }
 0x521   : > { %4185 = vst [vmem:[%s6231_s30 + $0x1b0] sm:$0xff] %v4083_v47 }
 0x522   : > { %v4087_v48 = vpop.f32.mrb[238].mxu1 }
 0x523   : > { %v4088_v49 = vadd.f32 %v6226_v11, %v4087_v48  ;;  %v4089_v50 = vpop.f32.mrb[239].mxu1 }
 0x525   : > { %4186 = vst [vmem:[%s6231_s30 + $0x1b8] sm:$0xff] %v4088_v49 }
 0x526   : > { %v4092_v51 = vpop.f32.mrb[240].mxu1 }
 0x527   : > { %v4093_v52 = vadd.f32 %v6226_v11, %v4092_v51  ;;  %v4094_v53 = vpop.f32.mrb[241].mxu1 }
 0x529   : > { %4187 = vst [vmem:[%s6231_s30 + $0x1c0] sm:$0xff] %v4093_v52 }
 0x52a   : > { %v4097_v54 = vpop.f32.mrb[242].mxu1 }
 0x52b   : > { %v4098_v56 = vadd.f32 %v6226_v11, %v4097_v54  ;;  %v4099_v1 = vpop.f32.mrb[243].mxu1 }
 0x52d   : > { %4188 = vst [vmem:[%s6231_s30 + $0x1c8] sm:$0xff] %v4098_v56 }
 0x52e   : > { %v4102_v57 = vpop.f32.mrb[244].mxu1 }
 0x52f   : > { %v4103_v59 = vadd.f32 %v6226_v11, %v4102_v57  ;;  %v4104_v5 = vpop.f32.mrb[245].mxu1 }
 0x531   : > { %4189 = vst [vmem:[%s6231_s30 + $0x1d0] sm:$0xff] %v4103_v59 }
 0x532   : > { %v4107_v60 = vpop.f32.mrb[246].mxu1 }
 0x533   : > { %v4108_v61 = vadd.f32 %v6226_v11, %v4107_v60  ;;  %v4109_v62 = vpop.f32.mrb[247].mxu1 }
 0x535   : > { %4190 = vst [vmem:[%s6231_s30 + $0x1d8] sm:$0xff] %v4108_v61 }
 0x536   : > { %v4112_v63 = vpop.f32.mrb[248].mxu1 }
 0x537   : > { %v4113_v0 = vadd.f32 %v6226_v11, %v4112_v63  ;;  %v4114_v2 = vpop.f32.mrb[249].mxu1 }
 0x539   : > { %4191 = vst [vmem:[%s6231_s30 + $0x1e0] sm:$0xff] %v4113_v0 }
 0x53a   : > { %v4117_v4 = vpop.f32.mrb[250].mxu1 }
 0x53b   : > { %v4118_v3 = vadd.f32 %v6226_v11, %v4117_v4  ;;  %v4119_v7 = vpop.f32.mrb[251].mxu1 }
 0x53d   : > { %4192 = vst [vmem:[%s6231_s30 + $0x1e8] sm:$0xff] %v4118_v3 }
 0x53e   : > { %v4122_v8 = vpop.f32.mrb[252].mxu1 }
 0x53f   : > { %v4123_v6 = vadd.f32 %v6226_v11, %v4122_v8  ;;  %v4124_v9 = vpop.f32.mrb[253].mxu1 }
 0x541   : > { %4193 = vst [vmem:[%s6231_s30 + $0x1f0] sm:$0xff] %v4123_v6 }
 0x542   : > { %v4127_v10 = vpop.f32.mrb[254].mxu1 }
 0x543   : > { %v4128_v12 = vadd.f32 %v6226_v11, %v4127_v10  ;;  %v4129_v13 = vpop.f32.mrb[255].mxu1 }
 0x545   : > { %4194 = vst [vmem:[%s6231_s30 + $0x1f8] sm:$0xff] %v4128_v12 }
 0x546   : > { %4694 = shalt.err (!%p4691_p11)
}
 0x547   : > { %s4695_s15 = scalar_lea.hbm %s6381_s19, 8192  ;;  %s4699_s24 = scalar_lea.hbm %s6441_s11, 16384 }
 0x548   : > { %p4696_p13 = scmp.ne.s32.totalorder %s6381_s19, %s4695_s15  ;;  %p4700_p6 = scmp.lt.u32.totalorder %s6381_s19, %s6441_s11 }
 0x549   : > { %p4701_p9 = scmp.lt.u32.totalorder %s4699_s24, %s4695_s15  ;;  %p4703_p10 = scmp.lt.u32.totalorder %s4695_s15, %s6381_s19 }
 0x54a   : > { %p4697_p0 = pnand %p4696_p13, %p6464_p1 }
 0x54b   : > { %p4702_p12 = por %p4701_p9, %p4700_p6 }
 0x54c   : > { %p4698_p5 = pneg %p4697_p0 }
 0x54d   : > { %p4704_p2 = por %p4703_p10, %p4702_p12 }
 0x54f   : > { %p4705_p3 = pnand %p4704_p2, %p4698_p5 }
 0x551   : > { %4708 = shalt.err (!%p4705_p3)
}
 0x552   : > { %s4763_s14 = smov 128   ;;  %s4764_s17 = smov 8  }
 0x553   : > { %4559 = dma.vmem_to_hbm [thread:$0]  (%p6464_p1), %s6383_s12, 8192, %s6381_s19, %s6389_s28, %s4763_s14, %s4763_s14, %s4764_s17  }
 0x554 PF: > { %s6465_s23 = sld [smem:[#allocation11_spill]]  ;;  %s6466_s21 = sld [smem:[#allocation15_spill]] }
 0x555   : > { %p4576_p4 = scmp.ge.s32.totalorder %s4751_s20, 2 }
 0x55a   : > { %s4224_s16 = sand.u32 1, %s6465_s23   ;;  %p6467_p7 = scmp.ne.s32.totalorder %s6466_s21, 0 }
 0x55b   : > { %s4225_s13 = scalar_lea.sflag [#allocation4], %s4224_s16 }
 0x55c   : > { %p4569_p8 = pnand %p4576_p4, %p6467_p7 }
 0x55e   : > { %4734 = dma.done.wait (!%p4569_p8), %s4225_s13, 8192  }
 0x55f   : > { %4736 = vsyncadd (!%p4569_p8), %s4225_s13, 4294959104  ;;  %s6468_s20 = sld [smem:[#allocation13_spill]]  ;;  %s6469_s29 = sld [smem:[#allocation12_spill]] }
 0x560   : > { %s6470_s19 = sld [smem:[#allocation14_spill]]  ;;  %s6471_s17 = smov %s4743_s18 }
 0x565   : > { %p23_p11 = scmp.ge.s32.totalorder %s6468_s20, 4   ;;  %s6472_s18 = smov %s6469_s29 }
 0x567   :  { %25 = sbr.rel (!%p23_p11) target bundleno = 5 (0x5), region = 108 }
 0x56e   :  { %4230 = vsyncpa [#allocation3], 1 }
 0x56f   :  { %4232 = vsyncpa [#allocation3 + $0x1], 1 }
 0x570   :  { %4233 = vsyncpa [#allocation6], 1 }
 0x571   :  { %4234 = vsyncpa [#allocation4], 1 }
 0x572   :  { %4236 = vsyncpa [#allocation4 + $0x1], 1 }

</bundles_post_ra>
